<compile_context>
chip_gen: v5e
topology: v5e:2x2
jax: 0.10.0
libtpu: 0.0.40
codegen_flags: <defaults>
</compile_context>

<pallas_src>
import jax
import jax.numpy as jnp
from jax.experimental import pallas as pl
from jax.experimental.pallas import tpu as pltpu


def _round_up(x, m):
    return (x + m - 1) // m * m


def _conv_relu_flat(src, w_ref, b_ref, K, Ho, Wo):
    """Valid KxK conv + bias + ReLU as a kh-loop of im2col matmuls.

    src:   (Nb, Hs, Ws, C)  value (bf16)
    w_ref: (K, K*C, Cp)     VMEM ref (bf16), kh-major flattened HWIO weights
    b_ref: (1, Cp)          VMEM ref (f32)
    returns (Nb*Ho*Wo, Cp) f32, post bias + ReLU.
    """
    Nb, _, _, C = src.shape
    Cp = w_ref.shape[-1]
    M = Nb * Ho * Wo

    acc = jnp.zeros((M, Cp), jnp.float32)
    for kh in range(K):  # only K-fold (not K*K) patch expansion
        patch = jnp.concatenate(
            [src[:, kh:kh + Ho, kw:kw + Wo, :] for kw in range(K)],
            axis=-1,
        ).reshape(M, K * C)
        acc = acc + jnp.dot(patch, w_ref[kh],
                            preferred_element_type=jnp.float32)
    return jnp.maximum(acc + b_ref[...], 0.0)


def _block_kernel(x_ref, w1_ref, b1_ref, w2_ref, b2_ref, o_ref, mid_ref):
    """Fused conv1+ReLU+conv2+ReLU for `Nb` images (one grid step).

    x_ref:   (Nb, H, W, Cin)        VMEM, bf16
    w1_ref:  (K, K*Cin,  Cpm)       VMEM, bf16 (output channels zero-padded)
    b1_ref:  (1, Cpm)               VMEM, f32
    w2_ref:  (K, K*Cpm,  Cpo)       VMEM, bf16 (in/out channels zero-padded)
    b2_ref:  (1, Cpo)               VMEM, f32
    o_ref:   (Nb*Ho2*Wo2, Cpo)      VMEM, f32 (lane-dense output slab)
    mid_ref: (Nb, Ho1, Wo1, Cpm)    VMEM scratch, bf16 (conv1 activation)
    """
    Nb, H, W, Cin = x_ref.shape
    _, Ho1, Wo1, Cpm = mid_ref.shape
    K = H - Ho1 + 1
    Ho2, Wo2 = Ho1 - K + 1, Wo1 - K + 1

    # ---- conv1 + ReLU over all Nb images at once ---------------------------
    h = _conv_relu_flat(x_ref[...], w1_ref, b1_ref, K, Ho1, Wo1)
    # Intermediate stays on-chip: bf16, lane-dense (Cpm = multiple of 128).
    mid_ref[...] = h.reshape(Nb, Ho1, Wo1, Cpm).astype(mid_ref.dtype)

    # ---- conv2 + ReLU on the VMEM-resident intermediate --------------------
    y = _conv_relu_flat(mid_ref[...], w2_ref, b2_ref, K, Ho2, Wo2)
    o_ref[...] = y.astype(o_ref.dtype)   # lane-dense store, no relayout


def block_nhwc(x, w1, b1, w2, b2, *, images_per_step=1):
    """x: (N, H, W, Cin); w*: (K, K, Cin*, Cout*) HWIO -> (N, Ho2, Wo2, Cout)."""
    N, H, W, Cin = x.shape
    K, _, _, Cmid = w1.shape
    Cout = w2.shape[-1]
    Ho1, Wo1 = H - K + 1, W - K + 1
    Ho2, Wo2 = Ho1 - K + 1, Wo1 - K + 1

    nb = images_per_step
    assert N % nb == 0, (N, nb)

    # Pad channel dims to the 128-lane width so the MXU N-dim, the VMEM
    # intermediate and all stores are lane-dense; zero columns/rows are exact
    # no-ops through conv + ReLU and are sliced off after the call.
    Cpm = _round_up(Cmid, 128)
    Cpo = _round_up(Cout, 128)

    bf16 = jnp.bfloat16
    xb = x.astype(bf16)
    w1p = jnp.pad(w1, ((0, 0), (0, 0), (0, 0), (0, Cpm - Cmid))
                  ).astype(bf16).reshape(K, K * Cin, Cpm)
    w2p = jnp.pad(w2, ((0, 0), (0, 0), (0, Cpm - Cmid), (0, Cpo - Cout))
                  ).astype(bf16).reshape(K, K * Cpm, Cpo)
    b1p = jnp.pad(b1, (0, Cpm - Cmid)).reshape(1, Cpm).astype(jnp.float32)
    b2p = jnp.pad(b2, (0, Cpo - Cout)).reshape(1, Cpo).astype(jnp.float32)

    out = pl.pallas_call(
        _block_kernel,
        out_shape=jax.ShapeDtypeStruct((N * Ho2 * Wo2, Cpo), jnp.float32),
        grid=(N // nb,),
        in_specs=[
            pl.BlockSpec((nb, H, W, Cin), lambda n: (n, 0, 0, 0)),
            pl.BlockSpec((K, K * Cin, Cpm), lambda n: (0, 0, 0)),
            pl.BlockSpec((1, Cpm), lambda n: (0, 0)),
            pl.BlockSpec((K, K * Cpm, Cpo), lambda n: (0, 0, 0)),
            pl.BlockSpec((1, Cpo), lambda n: (0, 0)),
        ],
        out_specs=pl.BlockSpec((nb * Ho2 * Wo2, Cpo), lambda n: (n, 0)),
        scratch_shapes=[pltpu.VMEM((nb, Ho1, Wo1, Cpm), bf16)],
        compiler_params=pltpu.CompilerParams(
            dimension_semantics=("parallel",),
            vmem_limit_bytes=32 * 1024 * 1024,
        ),
    )(xb, w1p, b1p, w2p, b2p)

    # Wrapper-side glue: drop the channel padding, restore (N, Ho2, Wo2, Cout).
    return out.reshape(N, Ho2, Wo2, Cpo)[..., :Cout]


def init_block_params(key, in_channel, out_channel, kernel_size):
    """Parameter init mirroring the PyTorch module's __init__.

    Weights ~ N(0, std), std = 2 / sqrt(C * K^2); biases use the PyTorch
    Conv2d default U(-1/sqrt(fan_in), 1/sqrt(fan_in)).
    Weight layout is (K, K, Cin, Cout) (HWIO) for the NHWC kernel.
    """
    k1, k2, k3, k4 = jax.random.split(key, 4)

    def std(c, k):
        return 2.0 / jnp.sqrt(jnp.float32(c * k * k))

    w1 = jax.random.normal(
        k1, (kernel_size, kernel_size, in_channel, out_channel), jnp.float32
    ) * std(in_channel, kernel_size)
    w2 = jax.random.normal(
        k2, (kernel_size, kernel_size, out_channel, out_channel), jnp.float32
    ) * std(out_channel, kernel_size)

    bound1 = 1.0 / jnp.sqrt(jnp.float32(in_channel * kernel_size * kernel_size))
    bound2 = 1.0 / jnp.sqrt(jnp.float32(out_channel * kernel_size * kernel_size))
    b1 = jax.random.uniform(k3, (out_channel,), jnp.float32, -bound1, bound1)
    b2 = jax.random.uniform(k4, (out_channel,), jnp.float32, -bound2, bound2)
    return (w1, b1), (w2, b2)


def block_forward(x_nchw, params, *, images_per_step=1):
    """UNet Block forward. x_nchw: (N, Cin, H, W) -> (N, Cout, H-2(K-1), W-2(K-1))."""
    (w1, b1), (w2, b2) = params
    x = jnp.transpose(x_nchw, (0, 2, 3, 1))              # NCHW -> NHWC (glue)
    y = block_nhwc(x, w1, b1, w2, b2, images_per_step=images_per_step)
    return jnp.transpose(y, (0, 3, 1, 2))                 # NHWC -> NCHW


def _reference_block(x_nchw, params):
    """Pure-JAX reference using the same bf16-in / f32-accumulate numerics."""
    (w1, b1), (w2, b2) = params
    dn = ("NCHW", "HWIO", "NCHW")
    bf16 = jnp.bfloat16
    y = jax.lax.conv_general_dilated(
        x_nchw.astype(bf16), w1.astype(bf16), (1, 1), "VALID",
        dimension_numbers=dn, preferred_element_type=jnp.float32)
    y = jnp.maximum(y + b1[None, :, None, None], 0.0).astype(bf16)
    y = jax.lax.conv_general_dilated(
        y, w2.astype(bf16), (1, 1), "VALID",
        dimension_numbers=dn, preferred_element_type=jnp.float32)
    y = jnp.maximum(y + b2[None, :, None, None], 0.0)
    return y


if __name__ == "__main__":
    key = jax.random.PRNGKey(0)
    k_x, k_p = jax.random.split(key)

    N, Cin, Cout, H, W, K = 2, 4, 8, 16, 16, 3
    x = jax.random.normal(k_x, (N, Cin, H, W), jnp.float32)     # NCHW, like PyTorch
    params = init_block_params(k_p, Cin, Cout, K)

    out = jax.block_until_ready(block_forward(x, params))
    ref = jax.block_until_ready(_reference_block(x, params))

    assert out.shape == (N, Cout, H - 2 * (K - 1), W - 2 * (K - 1)), out.shape
    max_err = float(jnp.max(jnp.abs(out - ref)))
    # bf16 inputs/weights (f32 accumulation): tolerance loosened accordingly.
    assert jnp.allclose(out, ref, atol=1e-2, rtol=1e-2), max_err

    print("KERNEL_OK")
</pallas_src>

<mosaic_0001>
module attributes {stable_mosaic.version = 11 : i64} {
  func.func @_block_kernel(%arg0: i32, %arg1: memref<1x16x16x4xbf16, #tpu.memory_space<vmem>>, %arg2: memref<3x12x128xbf16, #tpu.memory_space<vmem>>, %arg3: memref<1x128xf32, #tpu.memory_space<vmem>>, %arg4: memref<3x384x128xbf16, #tpu.memory_space<vmem>>, %arg5: memref<1x128xf32, #tpu.memory_space<vmem>>, %arg6: memref<144x128xf32, #tpu.memory_space<vmem>>, %arg7: memref<1x14x14x128xbf16, #tpu.memory_space<vmem>>) attributes {dimension_semantics = [#tpu.dimension_semantics<parallel>], iteration_bounds = array<i64: 2>, scalar_prefetch = 0 : i64, scratch_operands = 1 : i64, tpu.core_type = #tpu.core_type<tc>, window_params = [{transform_indices = @transform_0, window_bounds = array<i64: 1, 16, 16, 4>}, {pipeline_mode = #tpu.pipeline_mode<synchronous>, transform_indices = @transform_1, window_bounds = array<i64: 3, 12, 128>}, {pipeline_mode = #tpu.pipeline_mode<synchronous>, transform_indices = @transform_2, window_bounds = array<i64: 1, 128>}, {pipeline_mode = #tpu.pipeline_mode<synchronous>, transform_indices = @transform_3, window_bounds = array<i64: 3, 384, 128>}, {pipeline_mode = #tpu.pipeline_mode<synchronous>, transform_indices = @transform_4, window_bounds = array<i64: 1, 128>}, {transform_indices = @transform_5, window_bounds = array<i64: 144, 128>}]} {
    %c0 = arith.constant 0 : index
    %c0_0 = arith.constant 0 : index
    %c0_1 = arith.constant 0 : index
    %c0_2 = arith.constant 0 : index
    %0 = vector.load %arg1[%c0, %c0_0, %c0_1, %c0_2] : memref<1x16x16x4xbf16, #tpu.memory_space<vmem>>, vector<1x16x16x4xbf16>
    %cst = arith.constant 0.000000e+00 : f32
    %1 = vector.broadcast %cst : f32 to vector<196x128xf32>
    %2 = vector.extract_strided_slice %0 {offsets = [0, 0, 0, 0], sizes = [1, 14, 14, 4], strides = [1, 1, 1, 1]} : vector<1x16x16x4xbf16> to vector<1x14x14x4xbf16>
    %3 = vector.extract_strided_slice %0 {offsets = [0, 0, 1, 0], sizes = [1, 14, 14, 4], strides = [1, 1, 1, 1]} : vector<1x16x16x4xbf16> to vector<1x14x14x4xbf16>
    %4 = vector.extract_strided_slice %0 {offsets = [0, 0, 2, 0], sizes = [1, 14, 14, 4], strides = [1, 1, 1, 1]} : vector<1x16x16x4xbf16> to vector<1x14x14x4xbf16>
    %5 = tpu.concatenate %2, %3, %4 in 3 : vector<1x14x14x4xbf16>, vector<1x14x14x4xbf16>, vector<1x14x14x4xbf16> -> vector<1x14x14x12xbf16>
    %6 = vector.shape_cast %5 : vector<1x14x14x12xbf16> to vector<196x12xbf16>
    %c0_3 = arith.constant 0 : index
    %c0_4 = arith.constant 0 : index
    %c0_5 = arith.constant 0 : index
    %7 = vector.load %arg2[%c0_3, %c0_4, %c0_5] : memref<3x12x128xbf16, #tpu.memory_space<vmem>>, vector<1x12x128xbf16>
    %8 = vector.shape_cast %7 : vector<1x12x128xbf16> to vector<12x128xbf16>
    %cst_6 = arith.constant dense<0.000000e+00> : vector<196x128xf32>
    %9 = tpu.matmul %6, %8, %cst_6 {dimension_numbers = #tpu.dot_dimension_numbers<[1], [0], [0], [1], [0, 0, 1, 1], [], []>} : vector<196x12xbf16>, vector<12x128xbf16>, vector<196x128xf32> -> vector<196x128xf32>
    %10 = arith.addf %1, %9 : vector<196x128xf32>
    %11 = vector.extract_strided_slice %0 {offsets = [0, 1, 0, 0], sizes = [1, 14, 14, 4], strides = [1, 1, 1, 1]} : vector<1x16x16x4xbf16> to vector<1x14x14x4xbf16>
    %12 = vector.extract_strided_slice %0 {offsets = [0, 1, 1, 0], sizes = [1, 14, 14, 4], strides = [1, 1, 1, 1]} : vector<1x16x16x4xbf16> to vector<1x14x14x4xbf16>
    %13 = vector.extract_strided_slice %0 {offsets = [0, 1, 2, 0], sizes = [1, 14, 14, 4], strides = [1, 1, 1, 1]} : vector<1x16x16x4xbf16> to vector<1x14x14x4xbf16>
    %14 = tpu.concatenate %11, %12, %13 in 3 : vector<1x14x14x4xbf16>, vector<1x14x14x4xbf16>, vector<1x14x14x4xbf16> -> vector<1x14x14x12xbf16>
    %15 = vector.shape_cast %14 : vector<1x14x14x12xbf16> to vector<196x12xbf16>
    %c1 = arith.constant 1 : index
    %c0_7 = arith.constant 0 : index
    %c0_8 = arith.constant 0 : index
    %16 = vector.load %arg2[%c1, %c0_7, %c0_8] : memref<3x12x128xbf16, #tpu.memory_space<vmem>>, vector<1x12x128xbf16>
    %17 = vector.shape_cast %16 : vector<1x12x128xbf16> to vector<12x128xbf16>
    %cst_9 = arith.constant dense<0.000000e+00> : vector<196x128xf32>
    %18 = tpu.matmul %15, %17, %cst_9 {dimension_numbers = #tpu.dot_dimension_numbers<[1], [0], [0], [1], [0, 0, 1, 1], [], []>} : vector<196x12xbf16>, vector<12x128xbf16>, vector<196x128xf32> -> vector<196x128xf32>
    %19 = arith.addf %10, %18 : vector<196x128xf32>
    %20 = vector.extract_strided_slice %0 {offsets = [0, 2, 0, 0], sizes = [1, 14, 14, 4], strides = [1, 1, 1, 1]} : vector<1x16x16x4xbf16> to vector<1x14x14x4xbf16>
    %21 = vector.extract_strided_slice %0 {offsets = [0, 2, 1, 0], sizes = [1, 14, 14, 4], strides = [1, 1, 1, 1]} : vector<1x16x16x4xbf16> to vector<1x14x14x4xbf16>
    %22 = vector.extract_strided_slice %0 {offsets = [0, 2, 2, 0], sizes = [1, 14, 14, 4], strides = [1, 1, 1, 1]} : vector<1x16x16x4xbf16> to vector<1x14x14x4xbf16>
    %23 = tpu.concatenate %20, %21, %22 in 3 : vector<1x14x14x4xbf16>, vector<1x14x14x4xbf16>, vector<1x14x14x4xbf16> -> vector<1x14x14x12xbf16>
    %24 = vector.shape_cast %23 : vector<1x14x14x12xbf16> to vector<196x12xbf16>
    %c2 = arith.constant 2 : index
    %c0_10 = arith.constant 0 : index
    %c0_11 = arith.constant 0 : index
    %25 = vector.load %arg2[%c2, %c0_10, %c0_11] : memref<3x12x128xbf16, #tpu.memory_space<vmem>>, vector<1x12x128xbf16>
    %26 = vector.shape_cast %25 : vector<1x12x128xbf16> to vector<12x128xbf16>
    %cst_12 = arith.constant dense<0.000000e+00> : vector<196x128xf32>
    %27 = tpu.matmul %24, %26, %cst_12 {dimension_numbers = #tpu.dot_dimension_numbers<[1], [0], [0], [1], [0, 0, 1, 1], [], []>} : vector<196x12xbf16>, vector<12x128xbf16>, vector<196x128xf32> -> vector<196x128xf32>
    %28 = arith.addf %19, %27 : vector<196x128xf32>
    %c0_13 = arith.constant 0 : index
    %c0_14 = arith.constant 0 : index
    %29 = vector.load %arg3[%c0_13, %c0_14] : memref<1x128xf32, #tpu.memory_space<vmem>>, vector<1x128xf32>
    %30 = vector.broadcast %29 : vector<1x128xf32> to vector<196x128xf32>
    %31 = arith.addf %28, %30 : vector<196x128xf32>
    %cst_15 = arith.constant 0.000000e+00 : f32
    %32 = vector.broadcast %cst_15 : f32 to vector<196x128xf32>
    %33 = arith.maximumf %31, %32 : vector<196x128xf32>
    %34 = vector.shape_cast %33 : vector<196x128xf32> to vector<1x14x14x128xf32>
    %35 = arith.truncf %34 : vector<1x14x14x128xf32> to vector<1x14x14x128xbf16>
    %c0_16 = arith.constant 0 : index
    %c0_17 = arith.constant 0 : index
    %c0_18 = arith.constant 0 : index
    %c0_19 = arith.constant 0 : index
    %36 = vector.load %arg7[%c0_16, %c0_17, %c0_18, %c0_19] : memref<1x14x14x128xbf16, #tpu.memory_space<vmem>>, vector<1x14x14x128xbf16>
    tpu.vector_store %arg7[%c0_16, %c0_17, %c0_18, %c0_19], %35 {strides = array<i32>} : memref<1x14x14x128xbf16, #tpu.memory_space<vmem>>, vector<1x14x14x128xbf16>,
    %c0_20 = arith.constant 0 : index
    %c0_21 = arith.constant 0 : index
    %c0_22 = arith.constant 0 : index
    %c0_23 = arith.constant 0 : index
    %37 = vector.load %arg7[%c0_20, %c0_21, %c0_22, %c0_23] : memref<1x14x14x128xbf16, #tpu.memory_space<vmem>>, vector<1x14x14x128xbf16>
    %cst_24 = arith.constant 0.000000e+00 : f32
    %38 = vector.broadcast %cst_24 : f32 to vector<144x128xf32>
    %39 = vector.extract_strided_slice %37 {offsets = [0, 0, 0, 0], sizes = [1, 12, 12, 128], strides = [1, 1, 1, 1]} : vector<1x14x14x128xbf16> to vector<1x12x12x128xbf16>
    %40 = vector.extract_strided_slice %37 {offsets = [0, 0, 1, 0], sizes = [1, 12, 12, 128], strides = [1, 1, 1, 1]} : vector<1x14x14x128xbf16> to vector<1x12x12x128xbf16>
    %41 = vector.extract_strided_slice %37 {offsets = [0, 0, 2, 0], sizes = [1, 12, 12, 128], strides = [1, 1, 1, 1]} : vector<1x14x14x128xbf16> to vector<1x12x12x128xbf16>
    %42 = tpu.concatenate %39, %40, %41 in 3 : vector<1x12x12x128xbf16>, vector<1x12x12x128xbf16>, vector<1x12x12x128xbf16> -> vector<1x12x12x384xbf16>
    %43 = vector.shape_cast %42 : vector<1x12x12x384xbf16> to vector<144x384xbf16>
    %c0_25 = arith.constant 0 : index
    %c0_26 = arith.constant 0 : index
    %c0_27 = arith.constant 0 : index
    %44 = vector.load %arg4[%c0_25, %c0_26, %c0_27] : memref<3x384x128xbf16, #tpu.memory_space<vmem>>, vector<1x384x128xbf16>
    %45 = vector.shape_cast %44 : vector<1x384x128xbf16> to vector<384x128xbf16>
    %cst_28 = arith.constant dense<0.000000e+00> : vector<144x128xf32>
    %46 = tpu.matmul %43, %45, %cst_28 {dimension_numbers = #tpu.dot_dimension_numbers<[1], [0], [0], [1], [0, 0, 1, 1], [], []>} : vector<144x384xbf16>, vector<384x128xbf16>, vector<144x128xf32> -> vector<144x128xf32>
    %47 = arith.addf %38, %46 : vector<144x128xf32>
    %48 = vector.extract_strided_slice %37 {offsets = [0, 1, 0, 0], sizes = [1, 12, 12, 128], strides = [1, 1, 1, 1]} : vector<1x14x14x128xbf16> to vector<1x12x12x128xbf16>
    %49 = vector.extract_strided_slice %37 {offsets = [0, 1, 1, 0], sizes = [1, 12, 12, 128], strides = [1, 1, 1, 1]} : vector<1x14x14x128xbf16> to vector<1x12x12x128xbf16>
    %50 = vector.extract_strided_slice %37 {offsets = [0, 1, 2, 0], sizes = [1, 12, 12, 128], strides = [1, 1, 1, 1]} : vector<1x14x14x128xbf16> to vector<1x12x12x128xbf16>
    %51 = tpu.concatenate %48, %49, %50 in 3 : vector<1x12x12x128xbf16>, vector<1x12x12x128xbf16>, vector<1x12x12x128xbf16> -> vector<1x12x12x384xbf16>
    %52 = vector.shape_cast %51 : vector<1x12x12x384xbf16> to vector<144x384xbf16>
    %c1_29 = arith.constant 1 : index
    %c0_30 = arith.constant 0 : index
    %c0_31 = arith.constant 0 : index
    %53 = vector.load %arg4[%c1_29, %c0_30, %c0_31] : memref<3x384x128xbf16, #tpu.memory_space<vmem>>, vector<1x384x128xbf16>
    %54 = vector.shape_cast %53 : vector<1x384x128xbf16> to vector<384x128xbf16>
    %cst_32 = arith.constant dense<0.000000e+00> : vector<144x128xf32>
    %55 = tpu.matmul %52, %54, %cst_32 {dimension_numbers = #tpu.dot_dimension_numbers<[1], [0], [0], [1], [0, 0, 1, 1], [], []>} : vector<144x384xbf16>, vector<384x128xbf16>, vector<144x128xf32> -> vector<144x128xf32>
    %56 = arith.addf %47, %55 : vector<144x128xf32>
    %57 = vector.extract_strided_slice %37 {offsets = [0, 2, 0, 0], sizes = [1, 12, 12, 128], strides = [1, 1, 1, 1]} : vector<1x14x14x128xbf16> to vector<1x12x12x128xbf16>
    %58 = vector.extract_strided_slice %37 {offsets = [0, 2, 1, 0], sizes = [1, 12, 12, 128], strides = [1, 1, 1, 1]} : vector<1x14x14x128xbf16> to vector<1x12x12x128xbf16>
    %59 = vector.extract_strided_slice %37 {offsets = [0, 2, 2, 0], sizes = [1, 12, 12, 128], strides = [1, 1, 1, 1]} : vector<1x14x14x128xbf16> to vector<1x12x12x128xbf16>
    %60 = tpu.concatenate %57, %58, %59 in 3 : vector<1x12x12x128xbf16>, vector<1x12x12x128xbf16>, vector<1x12x12x128xbf16> -> vector<1x12x12x384xbf16>
    %61 = vector.shape_cast %60 : vector<1x12x12x384xbf16> to vector<144x384xbf16>
    %c2_33 = arith.constant 2 : index
    %c0_34 = arith.constant 0 : index
    %c0_35 = arith.constant 0 : index
    %62 = vector.load %arg4[%c2_33, %c0_34, %c0_35] : memref<3x384x128xbf16, #tpu.memory_space<vmem>>, vector<1x384x128xbf16>
    %63 = vector.shape_cast %62 : vector<1x384x128xbf16> to vector<384x128xbf16>
    %cst_36 = arith.constant dense<0.000000e+00> : vector<144x128xf32>
    %64 = tpu.matmul %61, %63, %cst_36 {dimension_numbers = #tpu.dot_dimension_numbers<[1], [0], [0], [1], [0, 0, 1, 1], [], []>} : vector<144x384xbf16>, vector<384x128xbf16>, vector<144x128xf32> -> vector<144x128xf32>
    %65 = arith.addf %56, %64 : vector<144x128xf32>
    %c0_37 = arith.constant 0 : index
    %c0_38 = arith.constant 0 : index
    %66 = vector.load %arg5[%c0_37, %c0_38] : memref<1x128xf32, #tpu.memory_space<vmem>>, vector<1x128xf32>
    %67 = vector.broadcast %66 : vector<1x128xf32> to vector<144x128xf32>
    %68 = arith.addf %65, %67 : vector<144x128xf32>
    %cst_39 = arith.constant 0.000000e+00 : f32
    %69 = vector.broadcast %cst_39 : f32 to vector<144x128xf32>
    %70 = arith.maximumf %68, %69 : vector<144x128xf32>
    %c0_40 = arith.constant 0 : index
    %c0_41 = arith.constant 0 : index
    %71 = vector.load %arg6[%c0_40, %c0_41] : memref<144x128xf32, #tpu.memory_space<vmem>>, vector<144x128xf32>
    tpu.vector_store %arg6[%c0_40, %c0_41], %70 {strides = array<i32>} : memref<144x128xf32, #tpu.memory_space<vmem>>, vector<144x128xf32>,
    return
  }
  func.func @transform_0(%arg0: i32) -> (i32, i32, i32, i32) {
    %c0_i32 = arith.constant 0 : i32
    %c0_i32_0 = arith.constant 0 : i32
    %c0_i32_1 = arith.constant 0 : i32
    %c0_i32_2 = arith.constant 0 : i32
    return %arg0, %c0_i32, %c0_i32_0, %c0_i32_1 : i32, i32, i32, i32
  }
  func.func @transform_1(%arg0: i32) -> (i32, i32, i32) {
    %c0_i32 = arith.constant 0 : i32
    %c0_i32_0 = arith.constant 0 : i32
    %c0_i32_1 = arith.constant 0 : i32
    %c0_i32_2 = arith.constant 0 : i32
    return %c0_i32, %c0_i32_0, %c0_i32_1 : i32, i32, i32
  }
  func.func @transform_2(%arg0: i32) -> (i32, i32) {
    %c0_i32 = arith.constant 0 : i32
    %c0_i32_0 = arith.constant 0 : i32
    %c0_i32_1 = arith.constant 0 : i32
    return %c0_i32, %c0_i32_0 : i32, i32
  }
  func.func @transform_3(%arg0: i32) -> (i32, i32, i32) {
    %c0_i32 = arith.constant 0 : i32
    %c0_i32_0 = arith.constant 0 : i32
    %c0_i32_1 = arith.constant 0 : i32
    %c0_i32_2 = arith.constant 0 : i32
    return %c0_i32, %c0_i32_0, %c0_i32_1 : i32, i32, i32
  }
  func.func @transform_4(%arg0: i32) -> (i32, i32) {
    %c0_i32 = arith.constant 0 : i32
    %c0_i32_0 = arith.constant 0 : i32
    %c0_i32_1 = arith.constant 0 : i32
    return %c0_i32, %c0_i32_0 : i32, i32
  }
  func.func @transform_5(%arg0: i32) -> (i32, i32) {
    %c0_i32 = arith.constant 0 : i32
    %c0_i32_0 = arith.constant 0 : i32
    return %arg0, %c0_i32 : i32, i32
  }
}

</mosaic_0001>

<bundles_post_ra>
// kernel: tpu_custom_call.1
= control target key start
LH: loop header
LB: loop body
LE: loop exit
PB: predicated region body
PF: predicated region fallthrough
CT: control target
= control target key end

     0   :  { %10 = vsyncpa [#allocation4], 0  ;;  %s6680_s0 = inlined_call_operand.vmem [shape: bf16[2,16,16,4], index: 0, kind: input, shape index: {}]   ;;  %s6681_s1 = inlined_call_operand.vmem [shape: bf16[3,12,128], index: 1, kind: input, shape index: {}]   ;;  %s6682_s2 = inlined_call_operand.vmem [shape: f32[1,128], index: 2, kind: input, shape index: {}]   ;;  %s6683_s3 = inlined_call_operand.hbm [shape: bf16[3,384,128], index: 3, kind: input, shape index: {}]   ;;  %s6684_s4 = inlined_call_operand.vmem [shape: f32[1,128], index: 4, kind: input, shape index: {}]   ;;  %s6685_s5 = inlined_call_operand.hbm [shape: f32[288,128], index: 5, kind: output, shape index: {}]  }
   0x1   :  { %11 = vsyncpa [#allocation5], 0 }
   0x2   :  { %13 = vsyncpa [#allocation5 + $0x1], 0  ;;  %s4631_s18 = smov 0   ;;  %s4633_s19 = smov 0  }
   0x3   :  { %s4635_s20 = smov 0   ;;  %s4637_s21 = smov 0  }
   0x4 LB: > { %s4652_s22 = sadd.s32 4294967295, %s4593_s21   ;;  %s3858_s23 = sadd.s32 4294967294, %s4593_s21   ;;  %s4593_s21 = sphi %s4637_s21, %s7020_s21   ;;  %s4589_s20 = sphi %s4635_s20, %s7019_s20   ;;  %s4585_s19 = sphi %s4633_s19, %s7018_s19   ;;  %s4581_s18 = sphi %s4631_s18, %s7017_s18  }
   0x5   : > { %s4656_s24 = sadd.s32 1, %s4593_s21   ;;  %s136_s25 = sadd.s32 1, %s4589_s20 }
   0x6   : > { %s133_s26 = ssub.s32 %s4593_s21, %s4656_s24  ;;  %p146_p0 = scmp.ne.s32.totalorder %s4589_s20, %s4585_s19 }
   0x7   : > { %p134_p1 = scmp.eq.s32.totalorder %s133_s26, 0  ;;  %p147_p2 = scmp.eq.s32.totalorder %s4652_s22, 1 }
   0x8   : > { %p152_p3 = scmp.ne.s32.totalorder %s4585_s19, %s4581_s18  ;;  %p153_p4 = scmp.eq.s32.totalorder %s3858_s23, 1 }
   0x9   : > { %s4667_s27 = scalar_select %p134_p1, %s4589_s20, %s136_s25  }
   0xa   : > { %p4669_p5 = por %p147_p2, %p146_p0  ;;  %p4673_p6 = por %p153_p4, %p152_p3 }
   0xb   : > { %p3859_p7 = scmp.ge.s32.totalorder %s4593_s21, 1  ;;  %p160_p8 = scmp.lt.s32.totalorder %s4593_s21, 3 }
   0xc   : > { %p4454_p9 = scmp.eq.s32.totalorder %s4652_s22, 0  ;;  %s177_s7 = sshll.u32 %s6683_s3, 4  ;;  %s178_s7 = int_to_ptr.hbm [resolvable:$true] %s177_s7 }
   0xd   : > { %p161_p10 = pnand %p3859_p7, %p160_p8  ;;  %s4595_s8 = smov [#allocation3]  }
   0xe   : > { %s179_s9 = sshll.u32 %s4595_s8, 4  ;;  %s4596_s10 = smov 64   ;;  %s180_s9 = int_to_ptr.vmem [resolvable:$true] %s179_s9 }
   0xf   : > { %p4446_p11 = pneg %p161_p10  ;;  %s4597_s11 = smov 4  }
  0x10   : > { %206 = sbr.rel (%p161_p10) target bundleno = 1482 (0x5ca), region = 40 }
  0x11   : > { %p4447_p12 = pnand %p4454_p9, %p4446_p11 }
  0x13   : > { %4449 = dma.hbm_to_vmem [thread:$0]  (!%p4447_p12), %s178_s7, 9216, %s180_s9, [#allocation4], %s4596_s10, %s4596_s10, %s4597_s11  }
  0x15   : > { %4572 = dma.done.wait (%p4454_p9), [#allocation4], 9216  }
  0x16   : > { %4574 = vsyncadd (%p4454_p9), [#allocation4], 4294958080  ;;  %p235_p13 = scmp.lt.s32.totalorder %s4652_s22, 1  ;;  %s4598_s17 = smov 4   ;;  %vm935_vm0 = vcmask 1045504   ;;  %vm512_vm1 = vcmask 31744  }
  0x17   : > { %s4599_s23 = smov 8   ;;  %vm541_vm2 = vcmask 64512   ;;  %vm908_vm3 = vcmask 97280   ;;  %vm2106_vm4 = vcmask 1041408   ;;  %vm2109_vm5 = vcmask 1043456   ;;  %s4438_s7 = smul.u32 144, %s4652_s22 }
  0x18   : > { %s236_s12 = scalar_select %p235_p13, %s4652_s22, 1  ;;  %vm2112_vm6 = vcmask 1043458   ;;  %vm2114_vm7 = vcmask 1045506   ;;  %vm2118_vm8 = vcmask 1045508  }
  0x19   : > { %s3780_s10 = scalar_lea.hbm %s6685_s5, %s4438_s7  ;;  %s4547_s25 = scalar_lea.hbm %s6685_s5, 288 }
  0x1a   : > { %s4332_s13 = sshll.u32 %s236_s12, 7  ;;  %s3783_s22 = sshll.u32 %s3780_s10, 4  ;;  %s3784_s22 = int_to_ptr.hbm [resolvable:$true] %s3783_s22 }
  0x1b   : > { %s4694_s16 = scalar_lea.vmem %s6680_s0, %s4332_s13  ;;  %s4541_s13 = sshra.s32 %s3784_s22, 4  ;;  %s4542_s13 = int_to_ptr.hbm [resolvable:$true] %s4541_s13 }
  0x1c   : > { %v4697_v0 = vld [vmem:[%s4694_s16 + $0x10] sm:$0xff]  ;;  %v4700_v1 = vld [vmem:[%s4694_s16 + $0x8] sm:$0xff]  ;;  %v4703_v2 = vld [vmem:[%s4694_s16 + $0x18] sm:$0xff]  ;;  %s4543_s14 = scalar_lea.hbm %s4542_s13, 144  ;;  %p4548_p3 = scmp.lt.s32.totalorder %s4542_s13, %s6685_s5 }
  0x1d   : > { %v359_v3 = vshrl.u32 %v4697_v0, 16  ;;  %v361_v4 = vshll.u32 %v4697_v0, 16  ;;  %v352_v5 = vshrl.u32 %v4700_v1, 16  ;;  %v354_v6 = vshll.u32 %v4700_v1, 16  ;;  %v4714_v14 = vld [vmem:[%s4694_s16 + $0x20] sm:$0xff]  ;;  %v4721_v19 = vld [vmem:[%s4694_s16 + $0x28] sm:$0xff]  ;;  %p4544_p0 = scmp.ne.s32.totalorder %s4542_s13, %s4543_s14  ;;  %p4549_p4 = scmp.lt.s32.totalorder %s4547_s25, %s4543_s14 }
  0x1e   : > { %v366_v9 = vshrl.u32 %v4703_v2, 16  ;;  %v368_v10 = vshll.u32 %v4703_v2, 16  ;;  %v472_v16 = vrot.slane %v4697_v0, 1  ;;  %v471_v17 = vrot.slane %v4700_v1, 1  ;;  %v4729_v24 = vld [vmem:[%s4694_s16 + $0x30] sm:$0xff]  ;;  %v4739_v33 = vld [vmem:[%s4694_s16 + $0x38] sm:$0xff] }
  0x1f   : > { %v363_v7 = vrot.slane %v361_v4, 1  ;;  %v356_v8 = vrot.slane %v354_v6, 1  ;;  %v375_v18 = vshll.u32 %v4714_v14, 16  ;;  %v473_v20 = vrot.slane %v4703_v2, 1  ;;  %v4745_v37 = vld [vmem:[%s4694_s16 + $0x40] sm:$0xff]  ;;  %v4752_v41 = vld [vmem:[%s4694_s16 + $0x48] sm:$0xff]  ;;  %p4545_p1 = pnand %p4544_p0, %p4669_p5  ;;  %p4550_p7 = por %p4549_p4, %p4548_p3 }
  0x20   : > { %v370_v13 = vrot.slane %v368_v10, 1  ;;  %v382_v21 = vshll.u32 %v4721_v19, 16  ;;  %v373_v22 = vshrl.u32 %v4714_v14, 16  ;;  %v380_v25 = vshrl.u32 %v4721_v19, 16  ;;  %v4763_v51 = vld [vmem:[%s4694_s16 + $0x50] sm:$0xff]  ;;  %v4769_v55 = vld [vmem:[%s4694_s16 + $0x58] sm:$0xff] }
  0x21   : > { %v364_v11 = vor.u32 %v363_v7, %v359_v3  ;;  %v357_v12 = vor.u32 %v356_v8, %v352_v5  ;;  %v377_v23 = vrot.slane %v375_v18, 1  ;;  %v474_v28 = vrot.slane %v4714_v14, 1  ;;  %v4777_v60 = vld [vmem:[%s4694_s16 + $0x60] sm:$0xff]  ;;  %v4787_v8 = vld [vmem:[%s4694_s16 + $0x68] sm:$0xff]  ;;  %p4546_p2 = pneg %p4545_p1 }
  0x22   : > { %v371_v15 = vor.u32 %v370_v13, %v366_v9  ;;  %v384_v26 = vrot.slane %v382_v21, 1  ;;  %v389_v29 = vshll.u32 %v4729_v24, 16  ;;  %v387_v31 = vshrl.u32 %v4729_v24, 16  ;;  %v4805_v21 = vld [vmem:[%s4694_s16 + $0x70] sm:$0xff] }
  0x23   : > { %446 = vrot.lane.b32.xlu1 %v364_v11, %s4598_s17  ;;  %444 = vrot.lane.b32.xlu0 %v357_v12, %s4598_s17  ;;  %v378_v27 = vor.u32 %v377_v23, %v373_v22  ;;  %v475_v34 = vrot.slane %v4721_v19, 1  ;;  %v396_v36 = vshll.u32 %v4739_v33, 16  ;;  %v476_v38 = vrot.slane %v4729_v24, 1  ;;  %p4551_p8 = pnand %p4550_p7, %p4546_p2 }
  0x24   : > { %448 = vrot.lane.b32.xlu2 %v371_v15, %s4598_s17  ;;  %v385_v30 = vor.u32 %v384_v26, %v380_v25  ;;  %v391_v32 = vrot.slane %v389_v29, 1  ;;  %v394_v39 = vshrl.u32 %v4739_v33, 16  ;;  %v403_v42 = vshll.u32 %v4745_v37, 16 }
  0x25   : > { %v398_v40 = vrot.slane %v396_v36, 1  ;;  %v401_v43 = vshrl.u32 %v4745_v37, 16  ;;  %v477_v46 = vrot.slane %v4739_v33, 1  ;;  %v410_v47 = vshll.u32 %v4752_v41, 16 }
  0x26   : > { %v392_v35 = vor.u32 %v391_v32, %v387_v31  ;;  %v405_v44 = vrot.slane %v403_v42, 1  ;;  %v408_v49 = vshrl.u32 %v4752_v41, 16  ;;  %v478_v52 = vrot.slane %v4745_v37, 1  ;;  %v3930_v31 = vld [vmem:[%s6681_s1 + $0x8] sm:$0xf] }
  0x27   : > { %v399_v45 = vor.u32 %v398_v40, %v394_v39  ;;  %v412_v50 = vrot.slane %v410_v47, 1  ;;  %v417_v54 = vshll.u32 %v4763_v51, 16  ;;  %v479_v56 = vrot.slane %v4752_v41, 1  ;;  %v4350_v32 = vld [vmem:[%s6681_s1 + $0x8] sm:$0x30] }
  0x28   : > { %v406_v48 = vor.u32 %v405_v44, %v401_v43  ;;  %v424_v57 = vshll.u32 %v4769_v55, 16  ;;  %v415_v58 = vshrl.u32 %v4763_v51, 16  ;;  %v422_v61 = vshrl.u32 %v4769_v55, 16 }
  0x29   : > { %v413_v53 = vor.u32 %v412_v50, %v408_v49  ;;  %v419_v59 = vrot.slane %v417_v54, 1  ;;  %v480_v3 = vrot.slane %v4763_v51, 1  ;;  %v431_v4 = vshll.u32 %v4777_v60, 16 }
  0x2a   : > { %v426_v62 = vrot.slane %v424_v57, 1  ;;  %v429_v6 = vshrl.u32 %v4777_v60, 16  ;;  %v481_v9 = vrot.slane %v4769_v55, 1  ;;  %v438_v11 = vshll.u32 %v4787_v8, 16 }
  0x2b   : > { %488 = vrot.lane.b32.xlu1 %v472_v16, %s4599_s23  ;;  %486 = vrot.lane.b32.xlu0 %v471_v17, %s4599_s23  ;;  %v420_v63 = vor.u32 %v419_v59, %v415_v58  ;;  %v433_v7 = vrot.slane %v431_v4, 1  ;;  %v482_v12 = vrot.slane %v4777_v60, 1  ;;  %v436_v13 = vshrl.u32 %v4787_v8, 16  ;;  %v4797_v16 = vld [vmem:[%s4694_s16] sm:$0xff] }
  0x2c   : > { %490 = vrot.lane.b32.xlu2 %v473_v20, %s4599_s23  ;;  %v427_v5 = vor.u32 %v426_v62, %v422_v61  ;;  %v440_v15 = vrot.slane %v438_v11, 1  ;;  %v483_v18 = vrot.slane %v4787_v8, 1  ;;  %v347_v20 = vshll.u32 %v4797_v16, 16 }
  0x2d   : > { %v434_v10 = vor.u32 %v433_v7, %v429_v6  ;;  %v345_v22 = vshrl.u32 %v4797_v16, 16  ;;  %v684_v25 = vrot.slane %v4805_v21, 1  ;;  %v470_v39 = vrot.slane %v4797_v16, 1 }
  0x2e   : > { %v441_v17 = vor.u32 %v440_v15, %v436_v13  ;;  %v349_v23 = vrot.slane %v347_v20, 1 }
  0x30   : > { %v350_v26 = vor.u32 %v349_v23, %v345_v22 }
  0x33   : > { %450 = vrot.lane.b32.xlu0 %v378_v27, %s4598_s17  ;;  %492 = vrot.lane.b32.xlu1 %v474_v28, %s4599_s23  ;;  %v678_v27 = vshll.u32 %v4805_v21, 16  ;;  %v676_v28 = vshrl.u32 %v4805_v21, 16 }
  0x34   : > { %452 = vrot.lane.b32.xlu2 %v385_v30, %s4598_s17 }
  0x35   : > { %v680_v29 = vrot.slane %v678_v27, 1 }
  0x37   : > { %v681_v30 = vor.u32 %v680_v29, %v676_v28 }
  0x3b   : > { %494 = vrot.lane.b32.xlu0 %v475_v34, %s4599_s23  ;;  %454 = vrot.lane.b32.xlu1 %v392_v35, %s4598_s17  ;;  %v3931_v34 = vor.u32 %v4350_v32, %v3930_v31 }
  0x3c   : > { %496 = vrot.lane.b32.xlu2 %v476_v38, %s4599_s23 }
  0x3d   : > { %v937_v38 = vsel %vm935_vm0, %v3931_v34, 0 }
  0x3e   : > { %946 = vmatpush.bf16.msra.mxu0 %v937_v38 }
  0x43   : > { %456 = vrot.lane.b32.xlu0 %v399_v45, %s4598_s17  ;;  %498 = vrot.lane.b32.xlu1 %v477_v46, %s4599_s23 }
  0x44   : > { %458 = vrot.lane.b32.xlu2 %v406_v48, %s4598_s17 }
  0x4b   : > { %500 = vrot.lane.b32.xlu0 %v478_v52, %s4599_s23  ;;  %460 = vrot.lane.b32.xlu1 %v413_v53, %s4598_s17 }
  0x4c   : > { %502 = vrot.lane.b32.xlu2 %v479_v56, %s4599_s23 }
  0x53   : > { %462 = vrot.lane.b32.xlu0 %v420_v63, %s4598_s17  ;;  %504 = vrot.lane.b32.xlu1 %v480_v3, %s4599_s23 }
  0x54   : > { %464 = vrot.lane.b32.xlu2 %v427_v5, %s4598_s17 }
  0x5b   : > { %506 = vrot.lane.b32.xlu0 %v481_v9, %s4599_s23  ;;  %466 = vrot.lane.b32.xlu1 %v434_v10, %s4598_s17 }
  0x5c   : > { %508 = vrot.lane.b32.xlu2 %v482_v12, %s4599_s23 }
  0x63   : > { %468 = vrot.lane.b32.xlu0 %v441_v17, %s4598_s17  ;;  %510 = vrot.lane.b32.xlu1 %v483_v18, %s4599_s23 }
  0x64   : > { %682 = vrot.lane.b32.xlu2 %v681_v30, %s4598_s17 }
  0x6b   : > { %685 = vrot.lane.b32.xlu0 %v684_v25, %s4599_s23  ;;  %442 = vrot.lane.b32.xlu1 %v350_v26, %s4598_s17 }
  0x6c   : > { %484 = vrot.lane.b32.xlu2 %v470_v39, %s4599_s23 }
  0x7e   : > { %v449_v52 = vpop.permute.xlu2 %448 }
  0x7f   : > { %v520_v54 = vsel %vm512_vm1, %v4703_v2, %v449_v52 }
  0x86   : > { %v491_v58 = vpop.permute.xlu2 %490 }
  0x87   : > { %v4875_v2 = vsel %vm541_vm2, %v520_v54, %v491_v58 }
  0x88   : > { %v4884_v3 = vrot.slane %v4875_v2, 1  ;;  %v4891_v7 = vrot.slane %v4875_v2, 2  ;;  %v4894_v9 = vrot.slane %v4875_v2, 3  ;;  %v4900_v12 = vrot.slane %v4875_v2, 4 }
  0x89   : > { %v4904_v13 = vrot.slane %v4875_v2, 5 }
  0x8e   : > { %v453_v18 = vpop.permute.xlu2 %452 }
  0x8f   : > { %v524_v20 = vsel %vm512_vm1, %v4721_v19, %v453_v18 }
  0x95   : > { %v447_v35 = vpop.permute.xlu1 %446  ;;  %v445_v36 = vpop.permute.xlu0 %444 }
  0x96   : > { %v518_v40 = vsel %vm512_vm1, %v4697_v0, %v447_v35  ;;  %v516_v42 = vsel %vm512_vm1, %v4700_v1, %v445_v36  ;;  %v497_v35 = vpop.permute.xlu2 %496 }
  0x9d   : > { %v489_v43 = vpop.permute.xlu1 %488  ;;  %v487_v44 = vpop.permute.xlu0 %486 }
  0x9e   : > { %v4828_v45 = vsel %vm541_vm2, %v518_v40, %v489_v43  ;;  %v4831_v46 = vsel %vm541_vm2, %v516_v42, %v487_v44 }
  0x9f   : > { %721 = vst [vmem:[#allocation1 + $0x7] ss:$9 sm:$0xff] %v4828_v45  ;;  %v6691_v47 = vrot.slane %v4831_v46, 1  ;;  %v6690_v48 = vrot.slane %v4831_v46, 2  ;;  %v6689_v0 = vrot.slane %v4831_v46, 3  ;;  %v6688_v1 = vrot.slane %v4831_v46, 4 }
  0xa0   : > { %701 = vst [vmem:[#allocation1] ss:$9 sm:$0xff] %v4831_v46  ;;  %v6687_v49 = vrot.slane %v4831_v46, 5  ;;  %v6686_v50 = vrot.slane %v4831_v46, 6  ;;  %v4854_v53 = vrot.slane %v4828_v45, 1  ;;  %v4859_v56 = vrot.slane %v4828_v45, 2 }
  0xa1   : > { %704 = vst [vmem:[#allocation1 + $0x1] ss:$9 sm:$0xff] %v6691_v47  ;;  %v4862_v59 = vrot.slane %v4828_v45, 3  ;;  %v4867_v61 = vrot.slane %v4828_v45, 4  ;;  %v4871_v62 = vrot.slane %v4828_v45, 5  ;;  %v4878_v63 = vrot.slane %v4828_v45, 6 }
  0xa2   : > { %707 = vst [vmem:[#allocation1 + $0x2] ss:$9 sm:$0xff] %v6690_v48 }
  0xa3   : > { %710 = vst [vmem:[#allocation1 + $0x3] ss:$9 sm:$0xff] %v6689_v0 }
  0xa4   : > { %713 = vst [vmem:[#allocation1 + $0x4] ss:$9 sm:$0xff] %v6688_v1 }
  0xa5   : > { %716 = vst [vmem:[#allocation1 + $0x5] ss:$9 sm:$0xff] %v6687_v49  ;;  %v451_v4 = vpop.permute.xlu0 %450  ;;  %v493_v6 = vpop.permute.xlu1 %492 }
  0xa6   : > { %719 = vst [vmem:[#allocation1 + $0x6] ss:$9 sm:$0xff] %v6686_v50  ;;  %v522_v5 = vsel %vm512_vm1, %v4714_v14, %v451_v4  ;;  %v4909_v14 = vrot.slane %v4875_v2, 6 }
  0xa7   : > { %v4897_v11 = vsel %vm541_vm2, %v522_v5, %v493_v6 }
  0xa8   : > { %v4913_v15 = vrot.slane %v4897_v11, 1  ;;  %v4917_v17 = vrot.slane %v4897_v11, 2  ;;  %v4926_v23 = vrot.slane %v4897_v11, 3  ;;  %v4932_v26 = vrot.slane %v4897_v11, 4 }
  0xa9   : > { %v4935_v28 = vrot.slane %v4897_v11, 5  ;;  %v4939_v29 = vrot.slane %v4897_v11, 6 }
  0xad   : > { %v722_v57 = vld [vmem:[#allocation1] sm:$0xff]  ;;  %v495_v22 = vpop.permute.xlu0 %494  ;;  %v455_v32 = vpop.permute.xlu1 %454 }
  0xae   : > { %724 = vst [vmem:[#allocation1] ss:$9 sm:$0xff] %v4854_v53  ;;  %3932 = vmatmul.msk.bf16.vlgmr.msra.gmra.mxu0 %vm908_vm3, %v722_v57  ;;  %v4929_v25 = vsel %vm541_vm2, %v524_v20, %v495_v22  ;;  %v526_v34 = vsel %vm512_vm1, %v4729_v24, %v455_v32  ;;  %v459_v32 = vpop.permute.xlu2 %458 }
  0xaf   : > { %726 = vst [vmem:[#allocation1 + $0x1] ss:$9 sm:$0xff] %v4859_v56  ;;  %v4943_v19 = vrot.slane %v4929_v25, 1  ;;  %v4947_v30 = vrot.slane %v4929_v25, 2  ;;  %v4952_v31 = vrot.slane %v4929_v25, 3  ;;  %v4961_v36 = vsel %vm541_vm2, %v526_v34, %v497_v35 }
  0xb0   : > { %728 = vst [vmem:[#allocation1 + $0x2] ss:$9 sm:$0xff] %v4862_v59  ;;  %v4964_v38 = vrot.slane %v4929_v25, 4  ;;  %v4967_v39 = vrot.slane %v4929_v25, 5  ;;  %v4970_v42 = vrot.slane %v4929_v25, 6  ;;  %v4974_v43 = vrot.slane %v4961_v36, 1 }
  0xb1   : > { %730 = vst [vmem:[#allocation1 + $0x3] ss:$9 sm:$0xff] %v4867_v61  ;;  %v4978_v24 = vrot.slane %v4961_v36, 2  ;;  %v4982_v44 = vrot.slane %v4961_v36, 3  ;;  %v4985_v52 = vrot.slane %v4961_v36, 4  ;;  %v4999_v5 = vrot.slane %v4961_v36, 5 }
  0xb2   : > { %732 = vst [vmem:[#allocation1 + $0x4] ss:$9 sm:$0xff] %v4871_v62  ;;  %v5002_v6 = vrot.slane %v4961_v36, 6  ;;  %v530_v34 = vsel %vm512_vm1, %v4745_v37, %v459_v32 }
  0xb3   : > { %734 = vst [vmem:[#allocation1 + $0x5] ss:$9 sm:$0xff] %v4878_v63 }
  0xb4   : > { %735 = vst [vmem:[#allocation1 + $0x6] ss:$9 sm:$0xff] %v4875_v2 }
  0xb5   : > { %737 = vst [vmem:[#allocation1 + $0x7] ss:$9 sm:$0xff] %v4884_v3  ;;  %v457_v54 = vpop.permute.xlu0 %456  ;;  %v499_v58 = vpop.permute.xlu1 %498 }
  0xb6   : > { %v528_v57 = vsel %vm512_vm1, %v4739_v33, %v457_v54  ;;  %v503_v1 = vpop.permute.xlu2 %502 }
  0xb7   : > { %v4996_v4 = vsel %vm541_vm2, %v528_v57, %v499_v58 }
  0xb8   : > { %v5005_v18 = vrot.slane %v4996_v4, 1  ;;  %v5009_v20 = vrot.slane %v4996_v4, 2  ;;  %v5013_v33 = vrot.slane %v4996_v4, 3  ;;  %v5016_v22 = vrot.slane %v4996_v4, 4 }
  0xbc   : > { %v738_v10 = vld [vmem:[#allocation1] sm:$0xff] }
  0xbd   : > { %740 = vst [vmem:[#allocation1] ss:$9 sm:$0xff] %v4891_v7  ;;  %v501_v35 = vpop.permute.xlu0 %500 }
  0xbe   : > { %742 = vst [vmem:[#allocation1 + $0x1] ss:$9 sm:$0xff] %v4894_v9  ;;  %3933 = vmatmul.msk.bf16.gmra.mxu0 %vm908_vm3, %v738_v10 }
  0xbf   : > { %744 = vst [vmem:[#allocation1 + $0x2] ss:$9 sm:$0xff] %v4900_v12 }
  0xc0   : > { %746 = vst [vmem:[#allocation1 + $0x3] ss:$9 sm:$0xff] %v4904_v13 }
  0xc1   : > { %748 = vst [vmem:[#allocation1 + $0x4] ss:$9 sm:$0xff] %v4909_v14 }
  0xc2   : > { %749 = vst [vmem:[#allocation1 + $0x5] ss:$9 sm:$0xff] %v4897_v11 }
  0xc3   : > { %751 = vst [vmem:[#allocation1 + $0x6] ss:$9 sm:$0xff] %v4913_v15 }
  0xc4   : > { %753 = vst [vmem:[#allocation1 + $0x7] ss:$9 sm:$0xff] %v4917_v17 }
  0xc5   : > { %v463_v48 = vpop.permute.xlu0 %462 }
  0xcb   : > { %v754_v27 = vld [vmem:[#allocation1] sm:$0xff] }
  0xcc   : > { %756 = vst [vmem:[#allocation1] ss:$9 sm:$0xff] %v4926_v23 }
  0xcd   : > { %758 = vst [vmem:[#allocation1 + $0x1] ss:$9 sm:$0xff] %v4932_v26 }
  0xce   : > { %760 = vst [vmem:[#allocation1 + $0x2] ss:$9 sm:$0xff] %v4935_v28  ;;  %3934 = vmatmul.msk.bf16.gmra.mxu0 %vm908_vm3, %v754_v27  ;;  %v5020_v27 = vrot.slane %v4996_v4, 5 }
  0xcf   : > { %762 = vst [vmem:[#allocation1 + $0x3] ss:$9 sm:$0xff] %v4939_v29 }
  0xd0   : > { %763 = vst [vmem:[#allocation1 + $0x4] ss:$9 sm:$0xff] %v4929_v25 }
  0xd1   : > { %765 = vst [vmem:[#allocation1 + $0x5] ss:$9 sm:$0xff] %v4943_v19 }
  0xd2   : > { %767 = vst [vmem:[#allocation1 + $0x6] ss:$9 sm:$0xff] %v4947_v30 }
  0xd3   : > { %769 = vst [vmem:[#allocation1 + $0x7] ss:$9 sm:$0xff] %v4952_v31 }
  0xda   : > { %v770_v40 = vld [vmem:[#allocation1] sm:$0xff] }
  0xdb   : > { %772 = vst [vmem:[#allocation1] ss:$9 sm:$0xff] %v4964_v38 }
  0xdc   : > { %774 = vst [vmem:[#allocation1 + $0x1] ss:$9 sm:$0xff] %v4967_v39 }
  0xdd   : > { %776 = vst [vmem:[#allocation1 + $0x2] ss:$9 sm:$0xff] %v4970_v42 }
  0xde   : > { %777 = vst [vmem:[#allocation1 + $0x3] ss:$9 sm:$0xff] %v4961_v36  ;;  %3935 = vmatmul.msk.bf16.gmra.mxu0 %vm908_vm3, %v770_v40  ;;  %v5031_v40 = vsel %vm541_vm2, %v530_v34, %v501_v35  ;;  %v5056_v34 = vrot.slane %v4996_v4, 6  ;;  %v461_v35 = vpop.permute.xlu1 %460 }
  0xdf   : > { %779 = vst [vmem:[#allocation1 + $0x4] ss:$9 sm:$0xff] %v4974_v43  ;;  %v5034_v54 = vrot.slane %v5031_v40, 1  ;;  %v5037_v57 = vrot.slane %v5031_v40, 2  ;;  %v5043_v50 = vrot.slane %v5031_v40, 4  ;;  %v5047_v37 = vrot.slane %v5031_v40, 5 }
  0xe0   : > { %781 = vst [vmem:[#allocation1 + $0x5] ss:$9 sm:$0xff] %v4978_v24  ;;  %v5052_v32 = vrot.slane %v5031_v40, 6  ;;  %v532_v49 = vsel %vm512_vm1, %v4752_v41, %v461_v35  ;;  %v534_v41 = vsel %vm512_vm1, %v4763_v51, %v463_v48  ;;  %v465_v51 = vpop.permute.xlu2 %464 }
  0xe1   : > { %783 = vst [vmem:[#allocation1 + $0x6] ss:$9 sm:$0xff] %v4982_v44  ;;  %v5066_v0 = vsel %vm541_vm2, %v532_v49, %v503_v1  ;;  %v536_v48 = vsel %vm512_vm1, %v4769_v55, %v465_v51 }
  0xe2   : > { %785 = vst [vmem:[#allocation1 + $0x7] ss:$9 sm:$0xff] %v4985_v52  ;;  %v5069_v47 = vrot.slane %v5066_v0, 1  ;;  %v5082_v49 = vrot.slane %v5066_v0, 4  ;;  %v5086_v35 = vrot.slane %v5066_v0, 5 }
  0xe3   : > { %6780 = vst [vmem:[#allocation9_spill] sm:$0xff] %v5037_v57 }
  0xe4   : > { %6782 = vst [vmem:[#allocation11_spill] sm:$0xff] %v5043_v50 }
  0xe5   : > { %6783 = vst [vmem:[#allocation12_spill] sm:$0xff] %v5047_v37 }
  0xe6   : > { %6784 = vst [vmem:[#allocation13_spill] sm:$0xff] %v5052_v32  ;;  %v505_v1 = vpop.permute.xlu1 %504 }
  0xe7   : > { %6785 = vst [vmem:[#allocation14_spill] sm:$0xff] %v5066_v0 }
  0xe8   : > { %6786 = vst [vmem:[#allocation15_spill] sm:$0xff] %v5069_v47 }
  0xe9   : > { %v786_v10 = vld [vmem:[#allocation1] sm:$0xff]  ;;  %6789 = vst [vmem:[#allocation18_spill] sm:$0xff] %v5082_v49 }
  0xea   : > { %788 = vst [vmem:[#allocation1] ss:$9 sm:$0xff] %v4999_v5 }
  0xeb   : > { %790 = vst [vmem:[#allocation1 + $0x1] ss:$9 sm:$0xff] %v5002_v6 }
  0xec   : > { %791 = vst [vmem:[#allocation1 + $0x2] ss:$9 sm:$0xff] %v4996_v4 }
  0xed   : > { %793 = vst [vmem:[#allocation1 + $0x3] ss:$9 sm:$0xff] %v5005_v18 }
  0xee   : > { %795 = vst [vmem:[#allocation1 + $0x4] ss:$9 sm:$0xff] %v5009_v20  ;;  %3936 = vmatmul.msk.bf16.gmra.mxu0 %vm908_vm3, %v786_v10  ;;  %v5040_v10 = vrot.slane %v5031_v40, 3 }
  0xef   : > { %797 = vst [vmem:[#allocation1 + $0x5] ss:$9 sm:$0xff] %v5013_v33 }
  0xf0   : > { %799 = vst [vmem:[#allocation1 + $0x6] ss:$9 sm:$0xff] %v5016_v22 }
  0xf1   : > { %801 = vst [vmem:[#allocation1 + $0x7] ss:$9 sm:$0xff] %v5020_v27 }
  0xf2   : > { %6781 = vst [vmem:[#allocation10_spill] sm:$0xff] %v5040_v10 }
  0xf3   : > { %6790 = vst [vmem:[#allocation19_spill] sm:$0xff] %v5086_v35 }
  0xf8   : > { %v802_v58 = vld [vmem:[#allocation1] sm:$0xff] }
  0xf9   : > { %805 = vst [vmem:[#allocation1 + $0x1] ss:$9 sm:$0xff] %v5031_v40 }
  0xfa   : > { %807 = vst [vmem:[#allocation1 + $0x2] ss:$9 sm:$0xff] %v5034_v54 }
  0xfb   : > { %809 = vst [vmem:[#allocation1 + $0x3] ss:$9 sm:$0xff] %v5037_v57 }
  0xfc   : > { %811 = vst [vmem:[#allocation1 + $0x4] ss:$9 sm:$0xff] %v5040_v10 }
  0xfd   : > { %813 = vst [vmem:[#allocation1 + $0x5] ss:$9 sm:$0xff] %v5043_v50 }
  0xfe   : > { %815 = vst [vmem:[#allocation1 + $0x6] ss:$9 sm:$0xff] %v5047_v37  ;;  %3937 = vmatmul.msk.bf16.gmra.mxu0 %vm908_vm3, %v802_v58  ;;  %v5072_v37 = vrot.slane %v5066_v0, 2  ;;  %v5076_v58 = vrot.slane %v5066_v0, 3 }
  0xff   : > { %804 = vst [vmem:[#allocation1] ss:$9 sm:$0xff] %v5056_v34 }
 0x100   : > { %817 = vst [vmem:[#allocation1 + $0x7] ss:$9 sm:$0xff] %v5052_v32  ;;  %v5090_v32 = vrot.slane %v5066_v0, 6 }
 0x101   : > { %6787 = vst [vmem:[#allocation16_spill] sm:$0xff] %v5072_v37 }
 0x102   : > { %6788 = vst [vmem:[#allocation17_spill] sm:$0xff] %v5076_v58 }
 0x103   : > { %6791 = vst [vmem:[#allocation20_spill] sm:$0xff] %v5090_v32 }
 0x107   : > { %v818_v50 = vld [vmem:[#allocation1] sm:$0xff] }
 0x108   : > { %819 = vst [vmem:[#allocation1] ss:$9 sm:$0xff] %v5066_v0 }
 0x109   : > { %821 = vst [vmem:[#allocation1 + $0x1] ss:$9 sm:$0xff] %v5069_v47  ;;  %v5094_v47 = vsel %vm541_vm2, %v534_v41, %v505_v1 }
 0x10a   : > { %823 = vst [vmem:[#allocation1 + $0x2] ss:$9 sm:$0xff] %v5072_v37  ;;  %v5103_v37 = vrot.slane %v5094_v47, 1  ;;  %v5109_v1 = vrot.slane %v5094_v47, 3  ;;  %v5120_v55 = vrot.slane %v5094_v47, 5  ;;  %v5124_v51 = vrot.slane %v5094_v47, 6 }
 0x10b   : > { %825 = vst [vmem:[#allocation1 + $0x3] ss:$9 sm:$0xff] %v5076_v58  ;;  %v507_v58 = vpop.permute.xlu0 %506 }
 0x10c   : > { %827 = vst [vmem:[#allocation1 + $0x4] ss:$9 sm:$0xff] %v5082_v49  ;;  %v5106_v49 = vrot.slane %v5094_v47, 2 }
 0x10d   : > { %6792 = vst [vmem:[#allocation21_spill] sm:$0xff] %v5094_v47 }
 0x10e   : > { %829 = vst [vmem:[#allocation1 + $0x5] ss:$9 sm:$0xff] %v5086_v35  ;;  %3938 = vmatmul.msk.bf16.gmra.mxu0 %vm908_vm3, %v818_v50  ;;  %v5113_v50 = vsel %vm541_vm2, %v536_v48, %v507_v58  ;;  %v467_v58 = vpop.permute.xlu1 %466 }
 0x10f   : > { %831 = vst [vmem:[#allocation1 + $0x6] ss:$9 sm:$0xff] %v5090_v32  ;;  %v5116_v32 = vrot.slane %v5094_v47, 4  ;;  %v538_v48 = vsel %vm512_vm1, %v4777_v60, %v467_v58  ;;  %v5155_v60 = vrot.slane %v5113_v50, 6 }
 0x110   : > { %832 = vst [vmem:[#allocation1 + $0x7] ss:$9 sm:$0xff] %v5094_v47  ;;  %v5147_v47 = vrot.slane %v5113_v50, 4 }
 0x111   : > { %6793 = vst [vmem:[#allocation22_spill] sm:$0xff] %v5103_v37 }
 0x112   : > { %6794 = vst [vmem:[#allocation23_spill] sm:$0xff] %v5106_v49 }
 0x113   : > { %6795 = vst [vmem:[#allocation24_spill] sm:$0xff] %v5109_v1 }
 0x114   : > { %6796 = vst [vmem:[#allocation25_spill] sm:$0xff] %v5113_v50 }
 0x115   : > { %6797 = vst [vmem:[#allocation26_spill] sm:$0xff] %v5116_v32 }
 0x116   : > { %6798 = vst [vmem:[#allocation27_spill] sm:$0xff] %v5120_v55 }
 0x117   : > { %v833_v41 = vld [vmem:[#allocation1] sm:$0xff]  ;;  %6799 = vst [vmem:[#allocation28_spill] sm:$0xff] %v5124_v51 }
 0x118   : > { %835 = vst [vmem:[#allocation1] ss:$9 sm:$0xff] %v5103_v37  ;;  %v5128_v37 = vrot.slane %v5113_v50, 1 }
 0x119   : > { %837 = vst [vmem:[#allocation1 + $0x1] ss:$9 sm:$0xff] %v5106_v49  ;;  %v5141_v49 = vrot.slane %v5113_v50, 3 }
 0x11a   : > { %839 = vst [vmem:[#allocation1 + $0x2] ss:$9 sm:$0xff] %v5109_v1  ;;  %v509_v1 = vpop.permute.xlu2 %508 }
 0x11b   : > { %841 = vst [vmem:[#allocation1 + $0x3] ss:$9 sm:$0xff] %v5116_v32  ;;  %v5138_v32 = vrot.slane %v5113_v50, 2 }
 0x11c   : > { %6800 = vst [vmem:[#allocation29_spill] sm:$0xff] %v5128_v37 }
 0x11d   : > { %843 = vst [vmem:[#allocation1 + $0x4] ss:$9 sm:$0xff] %v5120_v55 }
 0x11e   : > { %845 = vst [vmem:[#allocation1 + $0x5] ss:$9 sm:$0xff] %v5124_v51  ;;  %3939 = vmatmul.msk.bf16.gmra.mxu0 %vm908_vm3, %v833_v41  ;;  %v5144_v51 = vsel %vm541_vm2, %v538_v48, %v509_v1  ;;  %v5151_v41 = vrot.slane %v5113_v50, 5  ;;  %v469_v48 = vpop.permute.xlu0 %468 }
 0x11f   : > { %846 = vst [vmem:[#allocation1 + $0x6] ss:$9 sm:$0xff] %v5113_v50  ;;  %v5159_v58 = vrot.slane %v5144_v51, 1  ;;  %v5163_v1 = vrot.slane %v5144_v51, 2 }
 0x120   : > { %848 = vst [vmem:[#allocation1 + $0x7] ss:$9 sm:$0xff] %v5128_v37 }
 0x121   : > { %6801 = vst [vmem:[#allocation30_spill] sm:$0xff] %v5138_v32 }
 0x122   : > { %6802 = vst [vmem:[#allocation31_spill] sm:$0xff] %v5141_v49 }
 0x123   : > { %6803 = vst [vmem:[#allocation32_spill] sm:$0xff] %v5144_v51 }
 0x124   : > { %6804 = vst [vmem:[#allocation33_spill] sm:$0xff] %v5147_v47 }
 0x125   : > { %6805 = vst [vmem:[#allocation34_spill] sm:$0xff] %v5151_v41 }
 0x126   : > { %6806 = vst [vmem:[#allocation35_spill] sm:$0xff] %v5155_v60 }
 0x127   : > { %v849_v55 = vld [vmem:[#allocation1] sm:$0xff]  ;;  %6807 = vst [vmem:[#allocation36_spill] sm:$0xff] %v5159_v58 }
 0x128   : > { %851 = vst [vmem:[#allocation1] ss:$9 sm:$0xff] %v5138_v32 }
 0x129   : > { %853 = vst [vmem:[#allocation1 + $0x1] ss:$9 sm:$0xff] %v5141_v49  ;;  %v511_v49 = vpop.permute.xlu1 %510 }
 0x12a   : > { %855 = vst [vmem:[#allocation1 + $0x2] ss:$9 sm:$0xff] %v5147_v47  ;;  %v540_v47 = vsel %vm512_vm1, %v4787_v8, %v469_v48  ;;  %v683_v48 = vpop.permute.xlu2 %682 }
 0x12b   : > { %857 = vst [vmem:[#allocation1 + $0x3] ss:$9 sm:$0xff] %v5151_v41  ;;  %v5173_v41 = vrot.slane %v5144_v51, 3  ;;  %v5176_v32 = vsel %vm541_vm2, %v540_v47, %v511_v49 }
 0x12c   : > { %6808 = vst [vmem:[#allocation37_spill] sm:$0xff] %v5163_v1  ;;  %v5190_v8 = vrot.slane %v5176_v32, 1  ;;  %v5194_v47 = vrot.slane %v5176_v32, 2  ;;  %v5198_v49 = vrot.slane %v5176_v32, 3 }
 0x12d   : > { %859 = vst [vmem:[#allocation1 + $0x4] ss:$9 sm:$0xff] %v5155_v60  ;;  %v5179_v60 = vrot.slane %v5144_v51, 4 }
 0x12e   : > { %860 = vst [vmem:[#allocation1 + $0x5] ss:$9 sm:$0xff] %v5144_v51  ;;  %3940 = vmatmul.msk.bf16.gmra.mxu0 %vm908_vm3, %v849_v55  ;;  %v5186_v55 = vrot.slane %v5144_v51, 6 }
 0x12f   : > { %862 = vst [vmem:[#allocation1 + $0x6] ss:$9 sm:$0xff] %v5159_v58  ;;  %v5182_v58 = vrot.slane %v5144_v51, 5 }
 0x130   : > { %864 = vst [vmem:[#allocation1 + $0x7] ss:$9 sm:$0xff] %v5163_v1  ;;  %v5214_v1 = vrot.slane %v5176_v32, 5 }
 0x131   : > { %6809 = vst [vmem:[#allocation38_spill] sm:$0xff] %v5173_v41 }
 0x132   : > { %6810 = vst [vmem:[#allocation39_spill] sm:$0xff] %v5176_v32 }
 0x133   : > { %6811 = vst [vmem:[#allocation40_spill] sm:$0xff] %v5179_v60 }
 0x134   : > { %6812 = vst [vmem:[#allocation41_spill] sm:$0xff] %v5182_v58 }
 0x135   : > { %6813 = vst [vmem:[#allocation42_spill] sm:$0xff] %v5186_v55 }
 0x136   : > { %6814 = vst [vmem:[#allocation43_spill] sm:$0xff] %v5190_v8 }
 0x137   : > { %v865_v37 = vld [vmem:[#allocation1] sm:$0xff]  ;;  %6815 = vst [vmem:[#allocation44_spill] sm:$0xff] %v5194_v47 }
 0x138   : > { %867 = vst [vmem:[#allocation1] ss:$9 sm:$0xff] %v5173_v41  ;;  %v5211_v41 = vrot.slane %v5176_v32, 4 }
 0x139   : > { %869 = vst [vmem:[#allocation1 + $0x1] ss:$9 sm:$0xff] %v5179_v60  ;;  %v686_v60 = vpop.permute.xlu0 %685 }
 0x13a   : > { %871 = vst [vmem:[#allocation1 + $0x2] ss:$9 sm:$0xff] %v5182_v58  ;;  %v688_v58 = vsel %vm512_vm1, %v4805_v21, %v683_v48 }
 0x13b   : > { %873 = vst [vmem:[#allocation1 + $0x3] ss:$9 sm:$0xff] %v5186_v55  ;;  %v5208_v55 = vsel %vm541_vm2, %v688_v58, %v686_v60 }
 0x13c   : > { %6816 = vst [vmem:[#allocation45_spill] sm:$0xff] %v5198_v49  ;;  %v6759_v21 = vrot.slane %v5208_v55, 1  ;;  %v6756_v60 = vrot.slane %v5208_v55, 3  ;;  %v6758_v58 = vrot.slane %v5208_v55, 4  ;;  %v6769_v48 = vrot.slane %v5208_v55, 5 }
 0x13d   : > { %874 = vst [vmem:[#allocation1 + $0x4] ss:$9 sm:$0xff] %v5176_v32 }
 0x13e   : > { %876 = vst [vmem:[#allocation1 + $0x5] ss:$9 sm:$0xff] %v5190_v8  ;;  %3941 = vmatmul.msk.bf16.gmra.mxu0 %vm908_vm3, %v865_v37  ;;  %v6757_v37 = vrot.slane %v5208_v55, 2 }
 0x13f   : > { %878 = vst [vmem:[#allocation1 + $0x6] ss:$9 sm:$0xff] %v5194_v47  ;;  %v5217_v47 = vrot.slane %v5176_v32, 6 }
 0x140   : > { %880 = vst [vmem:[#allocation1 + $0x7] ss:$9 sm:$0xff] %v5198_v49 }
 0x141   : > { %6817 = vst [vmem:[#allocation46_spill] sm:$0xff] %v5208_v55 }
 0x142   : > { %6818 = vst [vmem:[#allocation47_spill] sm:$0xff] %v5211_v41 }
 0x143   : > { %6819 = vst [vmem:[#allocation48_spill] sm:$0xff] %v5214_v1 }
 0x144   : > { %6820 = vst [vmem:[#allocation49_spill] sm:$0xff] %v5217_v47 }
 0x147   : > { %v881_v8 = vld [vmem:[#allocation1] sm:$0xff] }
 0x148   : > { %883 = vst [vmem:[#allocation1] ss:$9 sm:$0xff] %v5211_v41 }
 0x149   : > { %885 = vst [vmem:[#allocation1 + $0x1] ss:$9 sm:$0xff] %v5214_v1  ;;  %v6768_v1 = vrot.slane %v5208_v55, 6 }
 0x14a   : > { %887 = vst [vmem:[#allocation1 + $0x2] ss:$9 sm:$0xff] %v5217_v47  ;;  %v443_v47 = vpop.permute.xlu1 %442 }
 0x14b   : > { %888 = vst [vmem:[#allocation1 + $0x3] ss:$9 sm:$0xff] %v5208_v55  ;;  %v6833_v55 = vld [vmem:[#allocation18_spill] sm:$0xff] }
 0x14c   : > { %890 = vst [vmem:[#allocation1 + $0x4] ss:$9 sm:$0xff] %v6759_v21 }
 0x14d   : > { %892 = vst [vmem:[#allocation1 + $0x5] ss:$9 sm:$0xff] %v6757_v37  ;;  %v485_v37 = vpop.permute.xlu2 %484 }
 0x14e   : > { %894 = vst [vmem:[#allocation1 + $0x6] ss:$9 sm:$0xff] %v6756_v60  ;;  %3942 = vmatmul.msk.bf16.gmra.mxu0 %vm908_vm3, %v881_v8  ;;  %v514_v60 = vsel %vm512_vm1, %v4797_v16, %v443_v47  ;;  %v6821_v47 = vrot.slane %v4831_v46, 1 }
 0x14f   : > { %896 = vst [vmem:[#allocation1 + $0x7] ss:$9 sm:$0xff] %v6758_v58  ;;  %v543_v58 = vsel %vm541_vm2, %v514_v60, %v485_v37  ;;  %v6822_v37 = vrot.slane %v4831_v46, 2  ;;  %v6823_v60 = vrot.slane %v4831_v46, 3 }
 0x150   : > { %v584_v21 = vrot.slane %v543_v58, 1  ;;  %v585_v49 = vrot.slane %v543_v58, 2  ;;  %v586_v32 = vrot.slane %v543_v58, 3  ;;  %v587_v51 = vrot.slane %v543_v58, 4 }
 0x151   : > { %v588_v50 = vrot.slane %v543_v58, 5 }
 0x156   : > { %v897_v41 = vld [vmem:[#allocation1] sm:$0xff] }
 0x157   : > { %899 = vst [vmem:[#allocation1] ss:$9 sm:$0xff] %v6769_v48  ;;  %v6832_v48 = vld [vmem:[#allocation17_spill] sm:$0xff] }
 0x158   : > { %901 = vst [vmem:[#allocation1 + $0x1] ss:$9 sm:$0xff] %v6768_v1  ;;  %v589_v1 = vrot.slane %v543_v58, 6 }
 0x15e   : > { %3943 = vmatmul.msk.bf16.gmra.mxu0 %vm908_vm3, %v897_v41  ;;  %v6825_v41 = vrot.slane %v4831_v46, 5 }
 0x15f   : > { %v5245_v8 = vld [vmem:[#allocation1] sm:$0xff] }
 0x160   : > { %1032 = vst [vmem:[#allocation1 + $0x7] ss:$9 sm:$0xff] %v4831_v46 }
 0x161   : > { %1012 = vst [vmem:[#allocation1] ss:$9 sm:$0xff] %v543_v58 }
 0x162   : > { %1015 = vst [vmem:[#allocation1 + $0x1] ss:$9 sm:$0xff] %v584_v21  ;;  %v6824_v21 = vrot.slane %v4831_v46, 4 }
 0x163   : > { %1018 = vst [vmem:[#allocation1 + $0x2] ss:$9 sm:$0xff] %v585_v49 }
 0x164   : > { %1021 = vst [vmem:[#allocation1 + $0x3] ss:$9 sm:$0xff] %v586_v32  ;;  %v6826_v32 = vrot.slane %v4831_v46, 6 }
 0x165   : > { %1024 = vst [vmem:[#allocation1 + $0x4] ss:$9 sm:$0xff] %v587_v51 }
 0x166   : > { %1027 = vst [vmem:[#allocation1 + $0x5] ss:$9 sm:$0xff] %v588_v50 }
 0x167   : > { %1030 = vst [vmem:[#allocation1 + $0x6] ss:$9 sm:$0xff] %v589_v1 }
 0x16e   : > { %v5249_v16 = vld [vmem:[#allocation1] sm:$0xff] }
 0x16f   : > { %1034 = vst [vmem:[#allocation1] ss:$9 sm:$0xff] %v6821_v47  ;;  %v6827_v47 = vld [vmem:[#allocation11_spill] sm:$0xff] }
 0x170   : > { %1035 = vst [vmem:[#allocation1 + $0x1] ss:$9 sm:$0xff] %v6822_v37  ;;  %v6828_v37 = vld [vmem:[#allocation12_spill] sm:$0xff] }
 0x171   : > { %1036 = vst [vmem:[#allocation1 + $0x2] ss:$9 sm:$0xff] %v6823_v60  ;;  %v6829_v60 = vld [vmem:[#allocation13_spill] sm:$0xff] }
 0x172   : > { %1037 = vst [vmem:[#allocation1 + $0x3] ss:$9 sm:$0xff] %v6824_v21 }
 0x173   : > { %1038 = vst [vmem:[#allocation1 + $0x4] ss:$9 sm:$0xff] %v6825_v41  ;;  %v6830_v41 = vld [vmem:[#allocation15_spill] sm:$0xff] }
 0x174   : > { %1039 = vst [vmem:[#allocation1 + $0x5] ss:$9 sm:$0xff] %v6826_v32  ;;  %v6831_v32 = vld [vmem:[#allocation16_spill] sm:$0xff] }
 0x175   : > { %1040 = vst [vmem:[#allocation1 + $0x6] ss:$9 sm:$0xff] %v4828_v45 }
 0x176   : > { %1041 = vst [vmem:[#allocation1 + $0x7] ss:$9 sm:$0xff] %v4854_v53 }
 0x17d   : > { %v5265_v50 = vld [vmem:[#allocation1] sm:$0xff] }
 0x17e   : > { %1043 = vst [vmem:[#allocation1] ss:$9 sm:$0xff] %v4859_v56 }
 0x17f   : > { %1044 = vst [vmem:[#allocation1 + $0x1] ss:$9 sm:$0xff] %v4862_v59 }
 0x180   : > { %1045 = vst [vmem:[#allocation1 + $0x2] ss:$9 sm:$0xff] %v4867_v61 }
 0x181   : > { %1046 = vst [vmem:[#allocation1 + $0x3] ss:$9 sm:$0xff] %v4871_v62 }
 0x182   : > { %1047 = vst [vmem:[#allocation1 + $0x4] ss:$9 sm:$0xff] %v4878_v63 }
 0x183   : > { %1048 = vst [vmem:[#allocation1 + $0x5] ss:$9 sm:$0xff] %v4875_v2 }
 0x184   : > { %1049 = vst [vmem:[#allocation1 + $0x6] ss:$9 sm:$0xff] %v4884_v3 }
 0x185   : > { %1050 = vst [vmem:[#allocation1 + $0x7] ss:$9 sm:$0xff] %v4891_v7 }
 0x18c   : > { %v5275_v46 = vld [vmem:[#allocation1] sm:$0xff] }
 0x18d   : > { %1052 = vst [vmem:[#allocation1] ss:$9 sm:$0xff] %v4894_v9 }
 0x18e   : > { %1053 = vst [vmem:[#allocation1 + $0x1] ss:$9 sm:$0xff] %v4900_v12 }
 0x18f   : > { %1054 = vst [vmem:[#allocation1 + $0x2] ss:$9 sm:$0xff] %v4904_v13 }
 0x190   : > { %1055 = vst [vmem:[#allocation1 + $0x3] ss:$9 sm:$0xff] %v4909_v14 }
 0x191   : > { %1056 = vst [vmem:[#allocation1 + $0x4] ss:$9 sm:$0xff] %v4897_v11 }
 0x192   : > { %1057 = vst [vmem:[#allocation1 + $0x5] ss:$9 sm:$0xff] %v4913_v15 }
 0x193   : > { %1058 = vst [vmem:[#allocation1 + $0x6] ss:$9 sm:$0xff] %v4917_v17 }
 0x194   : > { %1059 = vst [vmem:[#allocation1 + $0x7] ss:$9 sm:$0xff] %v4926_v23 }
 0x19b   : > { %v5285_v51 = vld [vmem:[#allocation1] sm:$0xff] }
 0x19c   : > { %1061 = vst [vmem:[#allocation1] ss:$9 sm:$0xff] %v4932_v26 }
 0x19d   : > { %1062 = vst [vmem:[#allocation1 + $0x1] ss:$9 sm:$0xff] %v4935_v28 }
 0x19e   : > { %1063 = vst [vmem:[#allocation1 + $0x2] ss:$9 sm:$0xff] %v4939_v29 }
 0x19f   : > { %1064 = vst [vmem:[#allocation1 + $0x3] ss:$9 sm:$0xff] %v4929_v25 }
 0x1a0   : > { %1065 = vst [vmem:[#allocation1 + $0x4] ss:$9 sm:$0xff] %v4943_v19 }
 0x1a1   : > { %1066 = vst [vmem:[#allocation1 + $0x5] ss:$9 sm:$0xff] %v4947_v30 }
 0x1a2   : > { %1067 = vst [vmem:[#allocation1 + $0x6] ss:$9 sm:$0xff] %v4952_v31 }
 0x1a3   : > { %1068 = vst [vmem:[#allocation1 + $0x7] ss:$9 sm:$0xff] %v4964_v38 }
 0x1aa   : > { %v5295_v1 = vld [vmem:[#allocation1] sm:$0xff] }
 0x1ab   : > { %1070 = vst [vmem:[#allocation1] ss:$9 sm:$0xff] %v4967_v39 }
 0x1ac   : > { %1071 = vst [vmem:[#allocation1 + $0x1] ss:$9 sm:$0xff] %v4970_v42 }
 0x1ad   : > { %1072 = vst [vmem:[#allocation1 + $0x2] ss:$9 sm:$0xff] %v4961_v36 }
 0x1ae   : > { %1073 = vst [vmem:[#allocation1 + $0x3] ss:$9 sm:$0xff] %v4974_v43 }
 0x1af   : > { %1074 = vst [vmem:[#allocation1 + $0x4] ss:$9 sm:$0xff] %v4978_v24 }
 0x1b0   : > { %1075 = vst [vmem:[#allocation1 + $0x5] ss:$9 sm:$0xff] %v4982_v44 }
 0x1b1   : > { %1076 = vst [vmem:[#allocation1 + $0x6] ss:$9 sm:$0xff] %v4985_v52 }
 0x1b2   : > { %1077 = vst [vmem:[#allocation1 + $0x7] ss:$9 sm:$0xff] %v4999_v5 }
 0x1b9   : > { %v5305_v49 = vld [vmem:[#allocation1] sm:$0xff] }
 0x1ba   : > { %1079 = vst [vmem:[#allocation1] ss:$9 sm:$0xff] %v5002_v6 }
 0x1bb   : > { %1080 = vst [vmem:[#allocation1 + $0x1] ss:$9 sm:$0xff] %v4996_v4 }
 0x1bc   : > { %1081 = vst [vmem:[#allocation1 + $0x2] ss:$9 sm:$0xff] %v5005_v18 }
 0x1bd   : > { %1082 = vst [vmem:[#allocation1 + $0x3] ss:$9 sm:$0xff] %v5009_v20 }
 0x1be   : > { %1083 = vst [vmem:[#allocation1 + $0x4] ss:$9 sm:$0xff] %v5013_v33 }
 0x1bf   : > { %1084 = vst [vmem:[#allocation1 + $0x5] ss:$9 sm:$0xff] %v5016_v22 }
 0x1c0   : > { %1085 = vst [vmem:[#allocation1 + $0x6] ss:$9 sm:$0xff] %v5020_v27 }
 0x1c1   : > { %1086 = vst [vmem:[#allocation1 + $0x7] ss:$9 sm:$0xff] %v5056_v34 }
 0x1c8   : > { %v5315_v58 = vld [vmem:[#allocation1] sm:$0xff] }
 0x1c9   : > { %1088 = vst [vmem:[#allocation1] ss:$9 sm:$0xff] %v5031_v40 }
 0x1ca   : > { %1089 = vst [vmem:[#allocation1 + $0x1] ss:$9 sm:$0xff] %v5034_v54 }
 0x1cb   : > { %1090 = vst [vmem:[#allocation1 + $0x2] ss:$9 sm:$0xff] %v5037_v57  ;;  %v6842_v57 = vld [vmem:[#allocation25_spill] sm:$0xff] }
 0x1cc   : > { %1091 = vst [vmem:[#allocation1 + $0x3] ss:$9 sm:$0xff] %v5040_v10  ;;  %v6834_v10 = vld [vmem:[#allocation20_spill] sm:$0xff] }
 0x1cd   : > { %1092 = vst [vmem:[#allocation1 + $0x4] ss:$9 sm:$0xff] %v6827_v47  ;;  %v6835_v47 = vld [vmem:[#allocation21_spill] sm:$0xff] }
 0x1ce   : > { %1093 = vst [vmem:[#allocation1 + $0x5] ss:$9 sm:$0xff] %v6828_v37  ;;  %v6836_v37 = vld [vmem:[#allocation22_spill] sm:$0xff] }
 0x1cf   : > { %1094 = vst [vmem:[#allocation1 + $0x6] ss:$9 sm:$0xff] %v6829_v60  ;;  %v6841_v60 = vld [vmem:[#allocation28_spill] sm:$0xff] }
 0x1d0   : > { %1095 = vst [vmem:[#allocation1 + $0x7] ss:$9 sm:$0xff] %v5066_v0  ;;  %v3947_v0 = vld [vmem:[%s6681_s1] sm:$0xf] }
 0x1d7   : > { %v5325_v21 = vld [vmem:[#allocation1] sm:$0xff] }
 0x1d8   : > { %1097 = vst [vmem:[#allocation1] ss:$9 sm:$0xff] %v6830_v41 }
 0x1d9   : > { %1098 = vst [vmem:[#allocation1 + $0x1] ss:$9 sm:$0xff] %v6831_v32  ;;  %v4349_v32 = vld [vmem:[%s6681_s1] sm:$0x30] }
 0x1da   : > { %1099 = vst [vmem:[#allocation1 + $0x2] ss:$9 sm:$0xff] %v6832_v48  ;;  %v3948_v41 = vor.u32 %v4349_v32, %v3947_v0  ;;  %v6843_v0 = vld [vmem:[#allocation29_spill] sm:$0xff]  ;;  %v6844_v32 = vld [vmem:[#allocation30_spill] sm:$0xff] }
 0x1db   : > { %1100 = vst [vmem:[#allocation1 + $0x3] ss:$9 sm:$0xff] %v6833_v55 }
 0x1dc   : > { %1101 = vst [vmem:[#allocation1 + $0x4] ss:$9 sm:$0xff] %v5086_v35  ;;  %v1168_v55 = vsel %vm935_vm0, %v3948_v41, 0  ;;  %v6837_v35 = vld [vmem:[#allocation23_spill] sm:$0xff] }
 0x1dd   : > { %1102 = vst [vmem:[#allocation1 + $0x5] ss:$9 sm:$0xff] %v6834_v10  ;;  %1177 = vmatpush.bf16.msra.mxu1 %v1168_v55  ;;  %v6838_v10 = vld [vmem:[#allocation24_spill] sm:$0xff]  ;;  %v6845_v55 = vld [vmem:[#allocation31_spill] sm:$0xff] }
 0x1de   : > { %1103 = vst [vmem:[#allocation1 + $0x6] ss:$9 sm:$0xff] %v6835_v47  ;;  %v6839_v47 = vld [vmem:[#allocation26_spill] sm:$0xff] }
 0x1df   : > { %1104 = vst [vmem:[#allocation1 + $0x7] ss:$9 sm:$0xff] %v6836_v37  ;;  %v6840_v37 = vld [vmem:[#allocation27_spill] sm:$0xff] }
 0x1e0   : > { %3949 = vmatmul.msk.bf16.vlgmr.msra.gmra.mxu1 %vm908_vm3, %v5249_v16  ;;  %v6850_v16 = vld [vmem:[#allocation36_spill] sm:$0xff] }
 0x1e6   : > { %v5341_v48 = vld [vmem:[#allocation1] sm:$0xff] }
 0x1e7   : > { %1106 = vst [vmem:[#allocation1] ss:$9 sm:$0xff] %v6837_v35  ;;  %v6849_v35 = vld [vmem:[#allocation32_spill] sm:$0xff] }
 0x1e8   : > { %1107 = vst [vmem:[#allocation1 + $0x1] ss:$9 sm:$0xff] %v6838_v10  ;;  %v6846_v10 = vld [vmem:[#allocation33_spill] sm:$0xff] }
 0x1e9   : > { %1108 = vst [vmem:[#allocation1 + $0x2] ss:$9 sm:$0xff] %v6839_v47  ;;  %v6847_v47 = vld [vmem:[#allocation34_spill] sm:$0xff] }
 0x1ea   : > { %1109 = vst [vmem:[#allocation1 + $0x3] ss:$9 sm:$0xff] %v6840_v37  ;;  %v6848_v37 = vld [vmem:[#allocation35_spill] sm:$0xff] }
 0x1eb   : > { %1110 = vst [vmem:[#allocation1 + $0x4] ss:$9 sm:$0xff] %v6841_v60 }
 0x1ec   : > { %1111 = vst [vmem:[#allocation1 + $0x5] ss:$9 sm:$0xff] %v6842_v57  ;;  %v5366_v57 = vpop.f32.mrf.mxu0 }
 0x1ed   : > { %1112 = vst [vmem:[#allocation1 + $0x6] ss:$9 sm:$0xff] %v6843_v0  ;;  %v6851_v0 = vld [vmem:[#allocation37_spill] sm:$0xff] }
 0x1ee   : > { %1113 = vst [vmem:[#allocation1 + $0x7] ss:$9 sm:$0xff] %v6844_v32  ;;  %v6852_v32 = vld [vmem:[#allocation38_spill] sm:$0xff] }
 0x1ef   : > { %6853 = vst [vmem:[#allocation28_spill] sm:$0xff] %v5366_v57  ;;  %v6861_v57 = vld [vmem:[#allocation45_spill] sm:$0xff] }
 0x1f0   : > { %3950 = vmatmul.msk.bf16.gmra.mxu1 %vm908_vm3, %v5265_v50  ;;  %v6858_v50 = vld [vmem:[#allocation39_spill] sm:$0xff] }
 0x1f5   : > { %v5354_v41 = vld [vmem:[#allocation1] sm:$0xff] }
 0x1f6   : > { %1115 = vst [vmem:[#allocation1] ss:$9 sm:$0xff] %v6845_v55 }
 0x1f7   : > { %1116 = vst [vmem:[#allocation1 + $0x1] ss:$9 sm:$0xff] %v6846_v10  ;;  %v6854_v10 = vld [vmem:[#allocation40_spill] sm:$0xff] }
 0x1f8   : > { %1117 = vst [vmem:[#allocation1 + $0x2] ss:$9 sm:$0xff] %v6847_v47  ;;  %v6855_v47 = vld [vmem:[#allocation41_spill] sm:$0xff] }
 0x1f9   : > { %1118 = vst [vmem:[#allocation1 + $0x3] ss:$9 sm:$0xff] %v6848_v37  ;;  %v6856_v37 = vld [vmem:[#allocation42_spill] sm:$0xff] }
 0x1fa   : > { %1119 = vst [vmem:[#allocation1 + $0x4] ss:$9 sm:$0xff] %v6849_v35  ;;  %v5373_v35 = vpop.f32.mrf.mxu0  ;;  %3944 = vmatmul.msk.bf16.gmra.mxu0 %vm908_vm3, %v5245_v8  ;;  %v6864_v8 = vld [vmem:[#allocation49_spill] sm:$0xff] }
 0x1fb   : > { %1120 = vst [vmem:[#allocation1 + $0x5] ss:$9 sm:$0xff] %v6850_v16 }
 0x1fc   : > { %1121 = vst [vmem:[#allocation1 + $0x6] ss:$9 sm:$0xff] %v6851_v0  ;;  %v6859_v0 = vld [vmem:[#allocation43_spill] sm:$0xff] }
 0x1fd   : > { %1122 = vst [vmem:[#allocation1 + $0x7] ss:$9 sm:$0xff] %v6852_v32  ;;  %v6860_v32 = vld [vmem:[#allocation44_spill] sm:$0xff] }
 0x1fe   : > { %6857 = vst [vmem:[#allocation36_spill] sm:$0xff] %v5373_v35 }
 0x200   : > { %3951 = vmatmul.msk.bf16.gmra.mxu1 %vm908_vm3, %v5275_v46 }
 0x204   : > { %v5368_v55 = vld [vmem:[#allocation1] sm:$0xff] }
 0x205   : > { %1124 = vst [vmem:[#allocation1] ss:$9 sm:$0xff] %v6854_v10  ;;  %v6862_v10 = vld [vmem:[#allocation47_spill] sm:$0xff] }
 0x206   : > { %1125 = vst [vmem:[#allocation1 + $0x1] ss:$9 sm:$0xff] %v6855_v47  ;;  %v6863_v47 = vld [vmem:[#allocation48_spill] sm:$0xff] }
 0x207   : > { %1126 = vst [vmem:[#allocation1 + $0x2] ss:$9 sm:$0xff] %v6856_v37  ;;  %v5384_v37 = vpop.f32.mrf.mxu0 }
 0x208   : > { %1127 = vst [vmem:[#allocation1 + $0x3] ss:$9 sm:$0xff] %v6858_v50 }
 0x209   : > { %1128 = vst [vmem:[#allocation1 + $0x4] ss:$9 sm:$0xff] %v6859_v0 }
 0x20a   : > { %1129 = vst [vmem:[#allocation1 + $0x5] ss:$9 sm:$0xff] %v6860_v32 }
 0x20b   : > { %1130 = vst [vmem:[#allocation1 + $0x6] ss:$9 sm:$0xff] %v6861_v57 }
 0x20c   : > { %1131 = vst [vmem:[#allocation1 + $0x7] ss:$9 sm:$0xff] %v6862_v10 }
 0x20f   : > { %v5390_v50 = vpop.f32.mrf.mxu0 }
 0x210   : > { %6865 = vst [vmem:[#allocation43_spill] sm:$0xff] %v5390_v50  ;;  %3952 = vmatmul.msk.bf16.gmra.mxu1 %vm908_vm3, %v5285_v51  ;;  %v5406_v50 = vld [vmem:[%s4694_s16 + $0x78] sm:$0xff] }
 0x213   : > { %v5386_v35 = vld [vmem:[#allocation1] sm:$0xff] }
 0x214   : > { %1133 = vst [vmem:[#allocation1] ss:$9 sm:$0xff] %v6863_v47 }
 0x215   : > { %1134 = vst [vmem:[#allocation1 + $0x1] ss:$9 sm:$0xff] %v6864_v8 }
 0x217   : > { %v5399_v46 = vpop.f32.mrf.mxu0 }
 0x218   : > { %6866 = vst [vmem:[#allocation45_spill] sm:$0xff] %v5399_v46 }
 0x21c   : > { %v5394_v32 = vld [vmem:[#allocation1] sm:$0xff] }
 0x21d   : > { %1274 = vst [vmem:[#allocation1] ss:$9 sm:$0xff] %v4828_v45  ;;  %v1251_v45 = vshll.u32 %v5406_v50, 16 }
 0x21e   : > { %1276 = vst [vmem:[#allocation1 + $0x1] ss:$9 sm:$0xff] %v4854_v53  ;;  %v1249_v53 = vshrl.u32 %v5406_v50, 16 }
 0x21f   : > { %1278 = vst [vmem:[#allocation1 + $0x2] ss:$9 sm:$0xff] %v4859_v56  ;;  %v5410_v51 = vpop.f32.mrf.mxu0  ;;  %v1253_v56 = vrot.slane %v1251_v45, 1 }
 0x220   : > { %1280 = vst [vmem:[#allocation1 + $0x3] ss:$9 sm:$0xff] %v4862_v59  ;;  %3953 = vmatmul.msk.bf16.gmra.mxu1 %vm908_vm3, %v5295_v1  ;;  %v1257_v59 = vrot.slane %v5406_v50, 1 }
 0x221   : > { %1282 = vst [vmem:[#allocation1 + $0x4] ss:$9 sm:$0xff] %v4867_v61  ;;  %v1254_v46 = vor.u32 %v1253_v56, %v1249_v53 }
 0x222   : > { %1284 = vst [vmem:[#allocation1 + $0x5] ss:$9 sm:$0xff] %v4871_v62  ;;  %1258 = vrot.lane.b32.xlu1 %v1257_v59, %s4599_s23  ;;  %v6886_v59 = vld [vmem:[#allocation29_spill] sm:$0xff] }
 0x223   : > { %1286 = vst [vmem:[#allocation1 + $0x6] ss:$9 sm:$0xff] %v4878_v63  ;;  %1255 = vrot.lane.b32.xlu0 %v1254_v46, %s4598_s17  ;;  %v6885_v46 = vld [vmem:[#allocation25_spill] sm:$0xff]  ;;  %s232_s17 = sand.u32 1, %s4585_s19  }
 0x224   : > { %1288 = vst [vmem:[#allocation1 + $0x7] ss:$9 sm:$0xff] %v4875_v2  ;;  %s4439_s30 = smul.u32 144, %s232_s17  ;;  %s3769_s12 = scalar_lea.sflag [#allocation5], %s232_s17 }
 0x226   : > { %s6531_s6 = scalar_lea.vmem [#allocation6], %s4439_s30 }
 0x227   : > { %v5422_v62 = vpop.f32.mrf.mxu0  ;;  %s3781_s11 = sshll.u32 %s6531_s6, 4  ;;  %s3782_s11 = int_to_ptr.vmem [resolvable:$true] %s3781_s11 }
 0x22b   : > { %v1289_v61 = vld [vmem:[#allocation1] sm:$0xff] }
 0x22c   : > { %1290 = vst [vmem:[#allocation1] ss:$9 sm:$0xff] %v4884_v3 }
 0x22d   : > { %1291 = vst [vmem:[#allocation1 + $0x1] ss:$9 sm:$0xff] %v4891_v7 }
 0x22e   : > { %1292 = vst [vmem:[#allocation1 + $0x2] ss:$9 sm:$0xff] %v4894_v9 }
 0x22f   : > { %1293 = vst [vmem:[#allocation1 + $0x3] ss:$9 sm:$0xff] %v4900_v12  ;;  %v5428_v2 = vpop.f32.mrf.mxu0  ;;  %v4351_v12 = vld [vmem:[%s6681_s1 + $0x10] sm:$0x30] }
 0x230   : > { %1294 = vst [vmem:[#allocation1 + $0x4] ss:$9 sm:$0xff] %v4904_v13  ;;  %3954 = vmatmul.msk.bf16.gmra.mxu1 %vm908_vm3, %v5305_v49  ;;  %v6881_v49 = vld [vmem:[#allocation23_spill] sm:$0xff] }
 0x231   : > { %1295 = vst [vmem:[#allocation1 + $0x5] ss:$9 sm:$0xff] %v4909_v14 }
 0x232   : > { %1296 = vst [vmem:[#allocation1 + $0x6] ss:$9 sm:$0xff] %v4897_v11  ;;  %v3970_v11 = vld [vmem:[%s6681_s1 + $0x10] sm:$0xf] }
 0x233   : > { %1297 = vst [vmem:[#allocation1 + $0x7] ss:$9 sm:$0xff] %v4913_v15  ;;  %v3971_v13 = vor.u32 %v4351_v12, %v3970_v11  ;;  %v6890_v11 = vld [vmem:[#allocation34_spill] sm:$0xff]  ;;  %v6891_v12 = vld [vmem:[#allocation35_spill] sm:$0xff] }
 0x235   : > { %v1430_v14 = vsel %vm935_vm0, %v3971_v13, 0  ;;  %v6892_v13 = vld [vmem:[#allocation32_spill] sm:$0xff] }
 0x236   : > { %1439 = vmatpush.bf16.msra.mxu2 %v1430_v14 }
 0x237   : > { %v5437_v3 = vpop.f32.mrf.mxu0 }
 0x239   : > { %3972 = vmatmul.msk.bf16.vlgmr.msra.gmra.mxu2 %vm908_vm3, %v1289_v61  ;;  %v6887_v61 = vld [vmem:[#allocation30_spill] sm:$0xff] }
 0x23a   : > { %v1298_v63 = vld [vmem:[#allocation1] sm:$0xff] }
 0x23b   : > { %1299 = vst [vmem:[#allocation1] ss:$9 sm:$0xff] %v4917_v17 }
 0x23c   : > { %1300 = vst [vmem:[#allocation1 + $0x1] ss:$9 sm:$0xff] %v4926_v23 }
 0x23d   : > { %1301 = vst [vmem:[#allocation1 + $0x2] ss:$9 sm:$0xff] %v4932_v26 }
 0x23e   : > { %1302 = vst [vmem:[#allocation1 + $0x3] ss:$9 sm:$0xff] %v4935_v28 }
 0x23f   : > { %1303 = vst [vmem:[#allocation1 + $0x4] ss:$9 sm:$0xff] %v4939_v29  ;;  %v5442_v7 = vpop.f32.mrf.mxu0 }
 0x240   : > { %1304 = vst [vmem:[#allocation1 + $0x5] ss:$9 sm:$0xff] %v4929_v25  ;;  %3955 = vmatmul.msk.bf16.gmra.mxu1 %vm908_vm3, %v5315_v58  ;;  %v6882_v58 = vld [vmem:[#allocation24_spill] sm:$0xff] }
 0x241   : > { %1305 = vst [vmem:[#allocation1 + $0x6] ss:$9 sm:$0xff] %v4943_v19  ;;  %v6867_v19 = vld [vmem:[#allocation9_spill] sm:$0xff] }
 0x242   : > { %1306 = vst [vmem:[#allocation1 + $0x7] ss:$9 sm:$0xff] %v4947_v30  ;;  %v6868_v30 = vld [vmem:[#allocation10_spill] sm:$0xff] }
 0x247   : > { %v5459_v15 = vpop.f32.mrf.mxu0 }
 0x249   : > { %v1307_v9 = vld [vmem:[#allocation1] sm:$0xff]  ;;  %3973 = vmatmul.msk.bf16.gmra.mxu2 %vm908_vm3, %v1298_v63  ;;  %v6888_v63 = vld [vmem:[#allocation31_spill] sm:$0xff] }
 0x24a   : > { %1308 = vst [vmem:[#allocation1] ss:$9 sm:$0xff] %v4952_v31  ;;  %v6869_v31 = vld [vmem:[#allocation11_spill] sm:$0xff] }
 0x24b   : > { %1309 = vst [vmem:[#allocation1 + $0x1] ss:$9 sm:$0xff] %v4964_v38 }
 0x24c   : > { %1310 = vst [vmem:[#allocation1 + $0x2] ss:$9 sm:$0xff] %v4967_v39 }
 0x24d   : > { %1311 = vst [vmem:[#allocation1 + $0x3] ss:$9 sm:$0xff] %v4970_v42 }
 0x24e   : > { %1312 = vst [vmem:[#allocation1 + $0x4] ss:$9 sm:$0xff] %v4961_v36  ;;  %v6870_v36 = vld [vmem:[#allocation12_spill] sm:$0xff] }
 0x24f   : > { %1313 = vst [vmem:[#allocation1 + $0x5] ss:$9 sm:$0xff] %v4974_v43  ;;  %v5464_v17 = vpop.f32.mrf.mxu0  ;;  %v6871_v43 = vld [vmem:[#allocation13_spill] sm:$0xff] }
 0x250   : > { %1314 = vst [vmem:[#allocation1 + $0x6] ss:$9 sm:$0xff] %v4978_v24  ;;  %3956 = vmatmul.msk.bf16.gmra.mxu1 %vm908_vm3, %v5325_v21  ;;  %v6883_v21 = vld [vmem:[#allocation26_spill] sm:$0xff] }
 0x251   : > { %1315 = vst [vmem:[#allocation1 + $0x7] ss:$9 sm:$0xff] %v4982_v44 }
 0x257   : > { %v5475_v25 = vpop.f32.mrf.mxu0 }
 0x258   : > { %v1316_v23 = vld [vmem:[#allocation1] sm:$0xff] }
 0x259   : > { %1317 = vst [vmem:[#allocation1] ss:$9 sm:$0xff] %v4985_v52  ;;  %3974 = vmatmul.msk.bf16.gmra.mxu2 %vm908_vm3, %v1307_v9  ;;  %v6872_v52 = vld [vmem:[#allocation14_spill] sm:$0xff] }
 0x25a   : > { %1318 = vst [vmem:[#allocation1 + $0x1] ss:$9 sm:$0xff] %v4999_v5  ;;  %v6874_v5 = vld [vmem:[#allocation16_spill] sm:$0xff] }
 0x25b   : > { %1319 = vst [vmem:[#allocation1 + $0x2] ss:$9 sm:$0xff] %v5002_v6  ;;  %v6875_v6 = vld [vmem:[#allocation17_spill] sm:$0xff] }
 0x25c   : > { %1320 = vst [vmem:[#allocation1 + $0x3] ss:$9 sm:$0xff] %v4996_v4  ;;  %v6873_v4 = vld [vmem:[#allocation15_spill] sm:$0xff] }
 0x25d   : > { %1321 = vst [vmem:[#allocation1 + $0x4] ss:$9 sm:$0xff] %v5005_v18  ;;  %v5481_v29 = vpop.f32.mrf.mxu1  ;;  %v6876_v18 = vld [vmem:[#allocation18_spill] sm:$0xff] }
 0x25e   : > { %1322 = vst [vmem:[#allocation1 + $0x5] ss:$9 sm:$0xff] %v5009_v20  ;;  %v6877_v20 = vld [vmem:[#allocation19_spill] sm:$0xff] }
 0x25f   : > { %1323 = vst [vmem:[#allocation1 + $0x6] ss:$9 sm:$0xff] %v5013_v33  ;;  %v5479_v28 = vpop.f32.mrf.mxu0  ;;  %v6878_v33 = vld [vmem:[#allocation20_spill] sm:$0xff] }
 0x260   : > { %1324 = vst [vmem:[#allocation1 + $0x7] ss:$9 sm:$0xff] %v5016_v22  ;;  %3957 = vmatmul.msk.bf16.gmra.mxu1 %vm908_vm3, %v5341_v48 }
 0x265   : > { %v5495_v39 = vpop.f32.mrf.mxu1 }
 0x267   : > { %v1325_v26 = vld [vmem:[#allocation1] sm:$0xff]  ;;  %v5493_v38 = vpop.f32.mrf.mxu0 }
 0x268   : > { %1326 = vst [vmem:[#allocation1] ss:$9 sm:$0xff] %v5020_v27 }
 0x269   : > { %1327 = vst [vmem:[#allocation1 + $0x1] ss:$9 sm:$0xff] %v5056_v34  ;;  %3975 = vmatmul.msk.bf16.gmra.mxu2 %vm908_vm3, %v1316_v23  ;;  %v6880_v34 = vld [vmem:[#allocation22_spill] sm:$0xff] }
 0x26a   : > { %1328 = vst [vmem:[#allocation1 + $0x2] ss:$9 sm:$0xff] %v5031_v40 }
 0x26b   : > { %1329 = vst [vmem:[#allocation1 + $0x3] ss:$9 sm:$0xff] %v5034_v54  ;;  %v6879_v54 = vld [vmem:[#allocation21_spill] sm:$0xff] }
 0x26c   : > { %1330 = vst [vmem:[#allocation1 + $0x4] ss:$9 sm:$0xff] %v6867_v19  ;;  %v6893_v19 = vld [vmem:[#allocation37_spill] sm:$0xff] }
 0x26d   : > { %1331 = vst [vmem:[#allocation1 + $0x5] ss:$9 sm:$0xff] %v6868_v30  ;;  %v5501_v44 = vpop.f32.mrf.mxu1  ;;  %v6894_v30 = vld [vmem:[#allocation38_spill] sm:$0xff] }
 0x26e   : > { %1332 = vst [vmem:[#allocation1 + $0x6] ss:$9 sm:$0xff] %v6869_v31  ;;  %v6895_v31 = vld [vmem:[#allocation40_spill] sm:$0xff] }
 0x26f   : > { %1333 = vst [vmem:[#allocation1 + $0x7] ss:$9 sm:$0xff] %v6870_v36  ;;  %v5499_v24 = vpop.f32.mrf.mxu0  ;;  %v6896_v36 = vld [vmem:[#allocation41_spill] sm:$0xff] }
 0x270   : > { %3958 = vmatmul.msk.bf16.gmra.mxu1 %vm908_vm3, %v5354_v41  ;;  %v6884_v41 = vld [vmem:[#allocation27_spill] sm:$0xff] }
 0x275   : > { %v5514_v27 = vpop.f32.mrf.mxu1 }
 0x276   : > { %v1334_v42 = vld [vmem:[#allocation1] sm:$0xff] }
 0x277   : > { %1335 = vst [vmem:[#allocation1] ss:$9 sm:$0xff] %v6871_v43  ;;  %v5512_v22 = vpop.f32.mrf.mxu0 }
 0x278   : > { %1336 = vst [vmem:[#allocation1 + $0x1] ss:$9 sm:$0xff] %v6872_v52  ;;  %v6898_v52 = vld [vmem:[#allocation39_spill] sm:$0xff] }
 0x279   : > { %1337 = vst [vmem:[#allocation1 + $0x2] ss:$9 sm:$0xff] %v6873_v4  ;;  %3976 = vmatmul.msk.bf16.gmra.mxu2 %vm908_vm3, %v1325_v26 }
 0x27a   : > { %1338 = vst [vmem:[#allocation1 + $0x3] ss:$9 sm:$0xff] %v6874_v5 }
 0x27b   : > { %1339 = vst [vmem:[#allocation1 + $0x4] ss:$9 sm:$0xff] %v6875_v6 }
 0x27c   : > { %1340 = vst [vmem:[#allocation1 + $0x5] ss:$9 sm:$0xff] %v6876_v18 }
 0x27d   : > { %1341 = vst [vmem:[#allocation1 + $0x6] ss:$9 sm:$0xff] %v6877_v20  ;;  %v5521_v1 = vpop.f32.mrf.mxu1 }
 0x27e   : > { %1342 = vst [vmem:[#allocation1 + $0x7] ss:$9 sm:$0xff] %v6878_v33 }
 0x27f   : > { %v5519_v48 = vpop.f32.mrf.mxu0 }
 0x280   : > { %3959 = vmatmul.msk.bf16.gmra.mxu1 %vm908_vm3, %v5368_v55 }
 0x285   : > { %v1343_v40 = vld [vmem:[#allocation1] sm:$0xff]  ;;  %v5533_v53 = vpop.f32.mrf.mxu1 }
 0x286   : > { %1344 = vst [vmem:[#allocation1] ss:$9 sm:$0xff] %v6879_v54 }
 0x287   : > { %1345 = vst [vmem:[#allocation1 + $0x1] ss:$9 sm:$0xff] %v6880_v34  ;;  %v5531_v45 = vpop.f32.mrf.mxu0 }
 0x288   : > { %1346 = vst [vmem:[#allocation1 + $0x2] ss:$9 sm:$0xff] %v6881_v49 }
 0x289   : > { %1347 = vst [vmem:[#allocation1 + $0x3] ss:$9 sm:$0xff] %v6882_v58  ;;  %3977 = vmatmul.msk.bf16.gmra.mxu2 %vm908_vm3, %v1334_v42  ;;  %v6899_v42 = vld [vmem:[#allocation44_spill] sm:$0xff] }
 0x28a   : > { %1348 = vst [vmem:[#allocation1 + $0x4] ss:$9 sm:$0xff] %v6883_v21 }
 0x28b   : > { %1349 = vst [vmem:[#allocation1 + $0x5] ss:$9 sm:$0xff] %v6884_v41 }
 0x28c   : > { %1350 = vst [vmem:[#allocation1 + $0x6] ss:$9 sm:$0xff] %v6841_v60  ;;  %v6889_v60 = vld [vmem:[#allocation33_spill] sm:$0xff] }
 0x28d   : > { %1351 = vst [vmem:[#allocation1 + $0x7] ss:$9 sm:$0xff] %v6885_v46  ;;  %v5541_v9 = vpop.f32.mrf.mxu1 }
 0x28f   : > { %v5539_v55 = vpop.f32.mrf.mxu0 }
 0x290   : > { %3960 = vmatmul.msk.bf16.gmra.mxu1 %vm908_vm3, %v5386_v35 }
 0x294   : > { %v1352_v56 = vld [vmem:[#allocation1] sm:$0xff] }
 0x295   : > { %1353 = vst [vmem:[#allocation1] ss:$9 sm:$0xff] %v6886_v59  ;;  %v5552_v23 = vpop.f32.mrf.mxu1 }
 0x296   : > { %1354 = vst [vmem:[#allocation1 + $0x1] ss:$9 sm:$0xff] %v6887_v61 }
 0x297   : > { %1355 = vst [vmem:[#allocation1 + $0x2] ss:$9 sm:$0xff] %v6888_v63  ;;  %v5550_v14 = vpop.f32.mrf.mxu0 }
 0x298   : > { %1356 = vst [vmem:[#allocation1 + $0x3] ss:$9 sm:$0xff] %v6889_v60 }
 0x299   : > { %1357 = vst [vmem:[#allocation1 + $0x4] ss:$9 sm:$0xff] %v6890_v11  ;;  %3978 = vmatmul.msk.bf16.gmra.mxu2 %vm908_vm3, %v1343_v40  ;;  %v1256_v40 = vpop.permute.xlu0 %1255 }
 0x29a   : > { %1358 = vst [vmem:[#allocation1 + $0x5] ss:$9 sm:$0xff] %v6891_v12 }
 0x29b   : > { %1359 = vst [vmem:[#allocation1 + $0x6] ss:$9 sm:$0xff] %v6892_v13 }
 0x29c   : > { %1360 = vst [vmem:[#allocation1 + $0x7] ss:$9 sm:$0xff] %v6850_v16  ;;  %v6897_v16 = vld [vmem:[#allocation42_spill] sm:$0xff] }
 0x29d   : > { %v5561_v43 = vpop.f32.mrf.mxu1 }
 0x29f   : > { %v5559_v35 = vpop.f32.mrf.mxu0 }
 0x2a0   : > { %3961 = vmatmul.msk.bf16.gmra.mxu1 %vm908_vm3, %v5394_v32 }
 0x2a3   : > { %v1361_v26 = vld [vmem:[#allocation1] sm:$0xff] }
 0x2a4   : > { %1362 = vst [vmem:[#allocation1] ss:$9 sm:$0xff] %v6893_v19  ;;  %v6907_v19 = vld [vmem:[#allocation28_spill] sm:$0xff] }
 0x2a5   : > { %1363 = vst [vmem:[#allocation1 + $0x1] ss:$9 sm:$0xff] %v6894_v30  ;;  %v5571_v5 = vpop.f32.mrf.mxu1  ;;  %v1180_v30 = vadd.f32 %v5481_v29, %v6907_v19 }
 0x2a6   : > { %1364 = vst [vmem:[#allocation1 + $0x2] ss:$9 sm:$0xff] %v6895_v31  ;;  %v5617_v31 = vld [vmem:[%s6682_s2] ss:$0 sm:$0xff] }
 0x2a7   : > { %1365 = vst [vmem:[#allocation1 + $0x3] ss:$9 sm:$0xff] %v6896_v36  ;;  %v5569_v4 = vpop.f32.mrf.mxu0 }
 0x2a8   : > { %1366 = vst [vmem:[#allocation1 + $0x4] ss:$9 sm:$0xff] %v6897_v16 }
 0x2a9   : > { %1367 = vst [vmem:[#allocation1 + $0x5] ss:$9 sm:$0xff] %v6898_v52  ;;  %3979 = vmatmul.msk.bf16.gmra.mxu2 %vm908_vm3, %v1352_v56 }
 0x2aa   : > { %1368 = vst [vmem:[#allocation1 + $0x6] ss:$9 sm:$0xff] %v6859_v0  ;;  %v6900_v0 = vld [vmem:[#allocation46_spill] sm:$0xff] }
 0x2ab   : > { %1369 = vst [vmem:[#allocation1 + $0x7] ss:$9 sm:$0xff] %v6899_v42  ;;  %v6901_v20 = vrot.slane %v6900_v0, 1  ;;  %v6902_v33 = vrot.slane %v6900_v0, 2  ;;  %v6904_v21 = vrot.slane %v6900_v0, 4  ;;  %v6905_v46 = vrot.slane %v6900_v0, 5 }
 0x2ac   : > { %v6906_v59 = vrot.slane %v6900_v0, 6 }
 0x2ad   : > { %v5581_v18 = vpop.f32.mrf.mxu1 }
 0x2af   : > { %v5579_v32 = vpop.f32.mrf.mxu0 }
 0x2b2   : > { %v1370_v6 = vld [vmem:[#allocation1] sm:$0xff] }
 0x2b3   : > { %1371 = vst [vmem:[#allocation1] ss:$9 sm:$0xff] %v6861_v57  ;;  %v6903_v57 = vrot.slane %v6900_v0, 3 }
 0x2b4   : > { %1372 = vst [vmem:[#allocation1 + $0x1] ss:$9 sm:$0xff] %v6862_v10  ;;  %v1261_v10 = vsel %vm512_vm1, %v5406_v50, %v1256_v40 }
 0x2b5   : > { %1373 = vst [vmem:[#allocation1 + $0x2] ss:$9 sm:$0xff] %v6863_v47  ;;  %v1259_v47 = vpop.permute.xlu1 %1258  ;;  %v5594_v34 = vpop.f32.mrf.mxu1 }
 0x2b6   : > { %1374 = vst [vmem:[#allocation1 + $0x3] ss:$9 sm:$0xff] %v6864_v8  ;;  %v1263_v8 = vsel %vm541_vm2, %v1261_v10, %v1259_v47 }
 0x2b7   : > { %1375 = vst [vmem:[#allocation1 + $0x4] ss:$9 sm:$0xff] %v6900_v0  ;;  %v5592_v54 = vpop.f32.mrf.mxu0  ;;  %v1265_v58 = vrot.slane %v1263_v8, 1  ;;  %v1266_v41 = vrot.slane %v1263_v8, 2  ;;  %v1267_v50 = vrot.slane %v1263_v8, 3  ;;  %v1268_v61 = vrot.slane %v1263_v8, 4 }
 0x2b8   : > { %1376 = vst [vmem:[#allocation1 + $0x5] ss:$9 sm:$0xff] %v6901_v20  ;;  %v1269_v56 = vrot.slane %v1263_v8, 5  ;;  %v1270_v11 = vrot.slane %v1263_v8, 6 }
 0x2b9   : > { %1377 = vst [vmem:[#allocation1 + $0x6] ss:$9 sm:$0xff] %v6902_v33  ;;  %3980 = vmatmul.msk.bf16.gmra.mxu2 %vm908_vm3, %v1361_v26  ;;  %v6908_v33 = vld [vmem:[#allocation36_spill] sm:$0xff] }
 0x2ba   : > { %1378 = vst [vmem:[#allocation1 + $0x7] ss:$9 sm:$0xff] %v6903_v57  ;;  %v1182_v26 = vadd.f32 %v5495_v39, %v6908_v33 }
 0x2bc   : > { %v1441_v36 = vpop.f32.mrf.mxu2 }
 0x2bd   : > { %v5605_v60 = vpop.f32.mrf.mxu1  ;;  %v1505_v16 = vadd.f32 %v1441_v36, %v1180_v30 }
 0x2bf   : > { %v1010_v63 = vpop.f32.mrf.mxu0  ;;  %v1534_v42 = vadd.f32 %v5617_v31, %v1505_v16 }
 0x2c1   : > { %v5596_v49 = vld [vmem:[#allocation1] sm:$0xff]  ;;  %v1559_v0 = vmax.f32 %v1534_v42, 0.0 }
 0x2c2   : > { %1380 = vst [vmem:[#allocation1] ss:$9 sm:$0xff] %v6904_v21 }
 0x2c3   : > { %1381 = vst [vmem:[#allocation1 + $0x1] ss:$9 sm:$0xff] %v6905_v46  ;;  %v1609_v40 = vrot.slane %v1559_v0, 2  ;;  %v1610_v57 = vrot.slane %v1559_v0, 4  ;;  %v1611_v29 = vrot.slane %v1559_v0, 6 }
 0x2c4   : > { %1382 = vst [vmem:[#allocation1 + $0x2] ss:$9 sm:$0xff] %v6906_v59  ;;  %v1443_v10 = vpop.f32.mrf.mxu2 }
 0x2c5   : > { %1383 = vst [vmem:[#allocation1 + $0x3] ss:$9 sm:$0xff] %v1263_v8  ;;  %v5607_v12 = vpop.f32.mrf.mxu1  ;;  %v1506_v47 = vadd.f32 %v1443_v10, %v1182_v26 }
 0x2c6   : > { %1385 = vst [vmem:[#allocation1 + $0x4] ss:$9 sm:$0xff] %v1265_v58 }
 0x2c7   : > { %1387 = vst [vmem:[#allocation1 + $0x5] ss:$9 sm:$0xff] %v1266_v41  ;;  %v1535_v8 = vadd.f32 %v5617_v31, %v1506_v47  ;;  %v1185_v41 = vadd.f32 %v5501_v44, %v5384_v37 }
 0x2c8   : > { %1389 = vst [vmem:[#allocation1 + $0x6] ss:$9 sm:$0xff] %v1267_v50 }
 0x2c9   : > { %1391 = vst [vmem:[#allocation1 + $0x7] ss:$9 sm:$0xff] %v1268_v61  ;;  %v1560_v21 = vmax.f32 %v1535_v8, 0.0  ;;  %3981 = vmatmul.msk.bf16.gmra.mxu2 %vm908_vm3, %v1370_v6  ;;  %v6909_v6 = vld [vmem:[#allocation43_spill] sm:$0xff] }
 0x2ca   : > { %v1187_v37 = vadd.f32 %v5514_v27, %v6909_v6 }
 0x2cb   : > { %v1612_v39 = vrot.slane %v1560_v21, 2  ;;  %v1613_v46 = vrot.slane %v1560_v21, 4  ;;  %v1614_v50 = vrot.slane %v1560_v21, 6 }
 0x2cc   : > { %v1446_v59 = vpop.f32.mrf.mxu2 }
 0x2cd   : > { %v5619_v52 = vpop.f32.mrf.mxu1  ;;  %v1507_v61 = vadd.f32 %v1446_v59, %v1185_v41 }
 0x2d0   : > { %v5609_v13 = vld [vmem:[#allocation1] sm:$0xff] }
 0x2d1   : > { %1394 = vst [vmem:[#allocation1] ss:$9 sm:$0xff] %v1269_v56  ;;  %v1536_v56 = vadd.f32 %v5617_v31, %v1507_v61 }
 0x2d2   : > { %1396 = vst [vmem:[#allocation1 + $0x1] ss:$9 sm:$0xff] %v1270_v11 }
 0x2d3   : > { %1690 = vst [vmem:[#allocation1 + $0x20] ss:$4 sm:$0xff] %v1560_v21  ;;  %v1561_v19 = vmax.f32 %v1536_v56, 0.0 }
 0x2d4   : > { %1692 = vst [vmem:[#allocation1 + $0x21] ss:$4 sm:$0xff] %v1612_v39  ;;  %v1448_v42 = vpop.f32.mrf.mxu2 }
 0x2d5   : > { %v5627_v58 = vpop.f32.mrf.mxu1  ;;  %1694 = vst [vmem:[#allocation1 + $0x22] ss:$4 sm:$0xff] %v1613_v46  ;;  %v1615_v44 = vrot.slane %v1561_v19, 2  ;;  %v1616_v36 = vrot.slane %v1561_v19, 4  ;;  %v1617_v16 = vrot.slane %v1561_v19, 6  ;;  %v1508_v33 = vadd.f32 %v1448_v42, %v1187_v37 }
 0x2d9   : > { %v5622_v20 = vld [vmem:[#allocation1] sm:$0xff]  ;;  %3982 = vmatmul.msk.bf16.gmra.mxu2 %vm908_vm3, %v5596_v49 }
 0x2da   : > { %1682 = vst [vmem:[#allocation1] ss:$4 sm:$0xff] %v1559_v0 }
 0x2db   : > { %1684 = vst [vmem:[#allocation1 + $0x1] ss:$4 sm:$0xff] %v1609_v40  ;;  %v1537_v40 = vadd.f32 %v5617_v31, %v1508_v33 }
 0x2dc   : > { %1686 = vst [vmem:[#allocation1 + $0x2] ss:$4 sm:$0xff] %v1610_v57  ;;  %v1696_v0 = vld.sshfl [vmem:[#allocation1 + $0x20] sm:$0xff pattern:$0x73625140]  ;;  %v1451_v41 = vpop.f32.mrf.mxu2 }
 0x2dd   : > { %1688 = vst [vmem:[#allocation1 + $0x3] ss:$4 sm:$0xff] %v1611_v29  ;;  %v5633_v30 = vpop.f32.mrf.mxu1  ;;  %v1843_v26 = vpack.c.bf16 %v1696_v0, %v1696_v0  ;;  %v1562_v57 = vmax.f32 %v1537_v40, 0.0  ;;  %v6910_v29 = vld [vmem:[#allocation45_spill] sm:$0xff] }
 0x2de   : > { %1701 = vst [vmem:[#allocation1 + $0x20] ss:$4 sm:$0xff] %v1617_v16  ;;  %v1190_v27 = vadd.f32 %v5521_v1, %v6910_v29  ;;  %v1192_v1 = vadd.f32 %v5533_v53, %v5410_v51  ;;  %v1195_v51 = vadd.f32 %v5541_v9, %v5422_v62 }
 0x2df   : > { %1871 = vst [vmem:[#allocation2 + $0x4] sm:$0x7] %v1843_v26  ;;  %v1618_v10 = vrot.slane %v1562_v57, 2  ;;  %v1619_v47 = vrot.slane %v1562_v57, 4  ;;  %v1620_v21 = vrot.slane %v1562_v57, 6 }
 0x2e0   : > { %1702 = vst [vmem:[#allocation1 + $0x21] ss:$4 sm:$0xff] %v1562_v57  ;;  %v1509_v39 = vadd.f32 %v1451_v41, %v1190_v27 }
 0x2e1   : > { %1703 = vst [vmem:[#allocation1 + $0x22] ss:$4 sm:$0xff] %v1618_v10 }
 0x2e2   : > { %v1538_v59 = vadd.f32 %v5617_v31, %v1509_v39 }
 0x2e4   : > { %v1695_v63 = vld.sshfl [vmem:[#allocation1] sm:$0xff pattern:$0x73625140]  ;;  %v1563_v49 = vmax.f32 %v1538_v59, 0.0  ;;  %v1453_v6 = vpop.f32.mrf.mxu2 }
 0x2e5   : > { %1697 = vst [vmem:[#allocation1] ss:$4 sm:$0xff] %v1614_v50  ;;  %v1842_v11 = vpack.c.bf16 %v1695_v63, %v1695_v63  ;;  %v5642_v8 = vpop.f32.mrf.mxu1 }
 0x2e6   : > { %1698 = vst [vmem:[#allocation1 + $0x1] ss:$4 sm:$0xff] %v1561_v19  ;;  %v1621_v61 = vrot.slane %v1563_v49, 2  ;;  %v1622_v63 = vrot.slane %v1563_v49, 4  ;;  %v1623_v19 = vrot.slane %v1563_v49, 6 }
 0x2e7   : > { %1870 = vst [vmem:[#allocation2] sm:$0xf] %v1842_v11 }
 0x2e8   : > { %1699 = vst [vmem:[#allocation1 + $0x2] ss:$4 sm:$0xff] %v1615_v44  ;;  %v1705_v11 = vld.sshfl [vmem:[#allocation1 + $0x20] sm:$0xff pattern:$0x73625140]  ;;  %v1510_v44 = vadd.f32 %v1453_v6, %v1192_v1 }
 0x2e9   : > { %1700 = vst [vmem:[#allocation1 + $0x3] ss:$4 sm:$0xff] %v1616_v36  ;;  %v1845_v37 = vpack.c.bf16 %v1705_v11, %v1705_v11  ;;  %3983 = vmatmul.msk.bf16.gmra.mxu2 %vm908_vm3, %v5609_v13  ;;  %v1197_v13 = vadd.f32 %v5552_v23, %v5428_v2  ;;  %v1200_v23 = vadd.f32 %v5561_v43, %v5437_v3 }
 0x2ea   : > { %1710 = vst [vmem:[#allocation1 + $0x20] ss:$4 sm:$0xff] %v1622_v63  ;;  %v1539_v36 = vadd.f32 %v5617_v31, %v1510_v44  ;;  %v1202_v43 = vadd.f32 %v5571_v5, %v5442_v7  ;;  %v1205_v7 = vadd.f32 %v5581_v18, %v5459_v15  ;;  %v1207_v15 = vadd.f32 %v5594_v34, %v5464_v17 }
 0x2eb   : > { %1873 = vst [vmem:[#allocation2 + $0xc] sm:$0x7] %v1845_v37 }
 0x2ec   : > { %1711 = vst [vmem:[#allocation1 + $0x21] ss:$4 sm:$0xff] %v1623_v19  ;;  %v1564_v16 = vmax.f32 %v1539_v36, 0.0  ;;  %v1456_v26 = vpop.f32.mrf.mxu2 }
 0x2ed   : > { %v5647_v56 = vpop.f32.mrf.mxu1  ;;  %v1511_v57 = vadd.f32 %v1456_v26, %v1195_v51 }
 0x2ee   : > { %v1624_v53 = vrot.slane %v1564_v16, 2  ;;  %1712 = vst [vmem:[#allocation1 + $0x22] ss:$4 sm:$0xff] %v1564_v16  ;;  %v1625_v33 = vrot.slane %v1564_v16, 4  ;;  %v1626_v40 = vrot.slane %v1564_v16, 6 }
 0x2ef   : > { %v1540_v29 = vadd.f32 %v5617_v31, %v1511_v57 }
 0x2f0   : > { %v1704_v46 = vld.sshfl [vmem:[#allocation1] sm:$0xff pattern:$0x73625140] }
 0x2f1   : > { %1706 = vst [vmem:[#allocation1] ss:$4 sm:$0xff] %v1619_v47  ;;  %v1844_v50 = vpack.c.bf16 %v1704_v46, %v1704_v46  ;;  %v1565_v27 = vmax.f32 %v1540_v29, 0.0 }
 0x2f2   : > { %1707 = vst [vmem:[#allocation1 + $0x1] ss:$4 sm:$0xff] %v1620_v21 }
 0x2f3   : > { %1872 = vst [vmem:[#allocation2 + $0x8] sm:$0xf] %v1844_v50  ;;  %v1627_v10 = vrot.slane %v1565_v27, 2  ;;  %v1628_v62 = vrot.slane %v1565_v27, 4  ;;  %v1629_v21 = vrot.slane %v1565_v27, 6 }
 0x2f4   : > { %1708 = vst [vmem:[#allocation1 + $0x2] ss:$4 sm:$0xff] %v1563_v49  ;;  %v1458_v41 = vpop.f32.mrf.mxu2 }
 0x2f5   : > { %1709 = vst [vmem:[#allocation1 + $0x3] ss:$4 sm:$0xff] %v1621_v61  ;;  %v5654_v42 = vpop.f32.mrf.mxu1  ;;  %v1714_v47 = vld.sshfl [vmem:[#allocation1 + $0x20] sm:$0xff pattern:$0x73625140]  ;;  %v1512_v39 = vadd.f32 %v1458_v41, %v1197_v13 }
 0x2f6   : > { %1719 = vst [vmem:[#allocation1 + $0x20] ss:$4 sm:$0xff] %v1627_v10  ;;  %v1847_v44 = vpack.c.bf16 %v1714_v47, %v1714_v47 }
 0x2f7   : > { %1720 = vst [vmem:[#allocation1 + $0x21] ss:$4 sm:$0xff] %v1628_v62  ;;  %v1541_v50 = vadd.f32 %v5617_v31, %v1512_v39 }
 0x2f8   : > { %1721 = vst [vmem:[#allocation1 + $0x22] ss:$4 sm:$0xff] %v1629_v21 }
 0x2f9   : > { %v1566_v59 = vmax.f32 %v1541_v50, 0.0  ;;  %3984 = vmatmul.msk.bf16.gmra.mxu2 %vm908_vm3, %v5622_v20  ;;  %1875 = vst [vmem:[#allocation2 + $0x14] sm:$0x7] %v1847_v44 }
 0x2fb   : > { %v1630_v1 = vrot.slane %v1566_v59, 2  ;;  %v1631_v63 = vrot.slane %v1566_v59, 4  ;;  %v1632_v11 = vrot.slane %v1566_v59, 6 }
 0x2fc   : > { %v1713_v0 = vld.sshfl [vmem:[#allocation1] sm:$0xff pattern:$0x73625140]  ;;  %v1461_v19 = vpop.f32.mrf.mxu2 }
 0x2fd   : > { %1715 = vst [vmem:[#allocation1] ss:$4 sm:$0xff] %v1624_v53  ;;  %v5659_v9 = vpop.f32.mrf.mxu1  ;;  %v1846_v46 = vpack.c.bf16 %v1713_v0, %v1713_v0  ;;  %v1513_v6 = vadd.f32 %v1461_v19, %v1200_v23 }
 0x2fe   : > { %1716 = vst [vmem:[#allocation1 + $0x1] ss:$4 sm:$0xff] %v1625_v33 }
 0x2ff   : > { %1717 = vst [vmem:[#allocation1 + $0x2] ss:$4 sm:$0xff] %v1626_v40  ;;  %v1723_v37 = vld.sshfl [vmem:[#allocation1 + $0x20] sm:$0xff pattern:$0x73625140]  ;;  %v1542_v20 = vadd.f32 %v5617_v31, %v1513_v6  ;;  %v1210_v6 = vadd.f32 %v5605_v60, %v5475_v25 }
 0x300   : > { %1718 = vst [vmem:[#allocation1 + $0x3] ss:$4 sm:$0xff] %v1565_v27  ;;  %v1849_v36 = vpack.c.bf16 %v1723_v37, %v1723_v37 }
 0x301   : > { %1874 = vst [vmem:[#allocation2 + $0x10] sm:$0xf] %v1846_v46  ;;  %v1567_v3 = vmax.f32 %v1542_v20, 0.0 }
 0x302   : > { %1877 = vst [vmem:[#allocation2 + $0x1c] sm:$0x7] %v1849_v36 }
 0x303   : > { %v1633_v16 = vrot.slane %v1567_v3, 2  ;;  %v1634_v51 = vrot.slane %v1567_v3, 4  ;;  %1728 = vst [vmem:[#allocation1 + $0x20] ss:$4 sm:$0xff] %v1567_v3  ;;  %v1635_v0 = vrot.slane %v1567_v3, 6 }
 0x304   : > { %v1463_v33 = vpop.f32.mrf.mxu2 }
 0x305   : > { %v5666_v61 = vpop.f32.mrf.mxu1  ;;  %1729 = vst [vmem:[#allocation1 + $0x21] ss:$4 sm:$0xff] %v1633_v16  ;;  %v1514_v26 = vadd.f32 %v1463_v33, %v1202_v43 }
 0x306   : > { %1730 = vst [vmem:[#allocation1 + $0x22] ss:$4 sm:$0xff] %v1634_v51 }
 0x307   : > { %v1722_v2 = vld.sshfl [vmem:[#allocation1] sm:$0xff pattern:$0x73625140]  ;;  %v1543_v57 = vadd.f32 %v5617_v31, %v1514_v26 }
 0x308   : > { %v1848_v49 = vpack.c.bf16 %v1722_v2, %v1722_v2  ;;  %1724 = vst [vmem:[#allocation1] ss:$4 sm:$0xff] %v1566_v59 }
 0x309   : > { %1725 = vst [vmem:[#allocation1 + $0x1] ss:$4 sm:$0xff] %v1630_v1  ;;  %v1568_v27 = vmax.f32 %v1543_v57, 0.0 }
 0x30a   : > { %1876 = vst [vmem:[#allocation2 + $0x18] sm:$0xf] %v1848_v49 }
 0x30b   : > { %1726 = vst [vmem:[#allocation1 + $0x2] ss:$4 sm:$0xff] %v1631_v63  ;;  %v1636_v5 = vrot.slane %v1568_v27, 2  ;;  %v1637_v10 = vrot.slane %v1568_v27, 4  ;;  %v1638_v21 = vrot.slane %v1568_v27, 6 }
 0x30c   : > { %1727 = vst [vmem:[#allocation1 + $0x3] ss:$4 sm:$0xff] %v1632_v11  ;;  %v1466_v62 = vpop.f32.mrf.mxu2 }
 0x30d   : > { %v5671_v53 = vpop.f32.mrf.mxu1  ;;  %v1732_v47 = vld.sshfl [vmem:[#allocation1 + $0x20] sm:$0xff pattern:$0x73625140]  ;;  %v1515_v41 = vadd.f32 %v1466_v62, %v1205_v7 }
 0x30e   : > { %v1851_v39 = vpack.c.bf16 %v1732_v47, %v1732_v47  ;;  %1737 = vst [vmem:[#allocation1 + $0x20] ss:$4 sm:$0xff] %v1638_v21 }
 0x30f   : > { %v1544_v46 = vadd.f32 %v5617_v31, %v1515_v41 }
 0x310   : > { %1879 = vst [vmem:[#allocation2 + $0x24] sm:$0x7] %v1851_v39 }
 0x311   : > { %v1569_v50 = vmax.f32 %v1544_v46, 0.0 }
 0x313   : > { %v1731_v40 = vld.sshfl [vmem:[#allocation1] sm:$0xff pattern:$0x73625140]  ;;  %v1639_v18 = vrot.slane %v1569_v50, 2  ;;  %v1640_v59 = vrot.slane %v1569_v50, 4  ;;  %v1641_v23 = vrot.slane %v1569_v50, 6 }
 0x314   : > { %v1850_v29 = vpack.c.bf16 %v1731_v40, %v1731_v40  ;;  %1733 = vst [vmem:[#allocation1] ss:$4 sm:$0xff] %v1635_v0  ;;  %v1468_v49 = vpop.f32.mrf.mxu2  ;;  %v1212_v0 = vadd.f32 %v5607_v12, %v5479_v28  ;;  %v1215_v28 = vadd.f32 %v5619_v52, %v5493_v38 }
 0x315   : > { %1734 = vst [vmem:[#allocation1 + $0x1] ss:$4 sm:$0xff] %v1568_v27  ;;  %v5676_v13 = vpop.f32.mrf.mxu1  ;;  %v1516_v1 = vadd.f32 %v1468_v49, %v1207_v15 }
 0x316   : > { %1878 = vst [vmem:[#allocation2 + $0x20] sm:$0xf] %v1850_v29 }
 0x317   : > { %1735 = vst [vmem:[#allocation1 + $0x2] ss:$4 sm:$0xff] %v1636_v5  ;;  %v1545_v11 = vadd.f32 %v5617_v31, %v1516_v1 }
 0x318   : > { %1736 = vst [vmem:[#allocation1 + $0x3] ss:$4 sm:$0xff] %v1637_v10 }
 0x319   : > { %1738 = vst [vmem:[#allocation1 + $0x21] ss:$4 sm:$0xff] %v1569_v50  ;;  %v1570_v19 = vmax.f32 %v1545_v11, 0.0 }
 0x31a   : > { %1739 = vst [vmem:[#allocation1 + $0x22] ss:$4 sm:$0xff] %v1639_v18  ;;  %v1217_v18 = vadd.f32 %v5627_v58, %v5499_v24  ;;  %v1220_v24 = vadd.f32 %v5633_v30, %v5512_v22  ;;  %v1222_v22 = vadd.f32 %v5642_v8, %v5519_v48  ;;  %v1225_v48 = vadd.f32 %v5647_v56, %v5531_v45 }
 0x31b   : > { %v1642_v37 = vrot.slane %v1570_v19, 2  ;;  %v1643_v17 = vrot.slane %v1570_v19, 4  ;;  %v1644_v34 = vrot.slane %v1570_v19, 6 }
 0x31c   : > { %v1471_v20 = vpop.f32.mrf.mxu2 }
 0x31d   : > { %v5681_v2 = vpop.f32.mrf.mxu1  ;;  %v1517_v3 = vadd.f32 %v1471_v20, %v1210_v6 }
 0x31f   : > { %v1740_v63 = vld.sshfl [vmem:[#allocation1] sm:$0xff pattern:$0x73625140]  ;;  %v1546_v16 = vadd.f32 %v5617_v31, %v1517_v3 }
 0x320   : > { %1742 = vst [vmem:[#allocation1] ss:$4 sm:$0xff] %v1640_v59  ;;  %v1852_v43 = vpack.c.bf16 %v1740_v63, %v1740_v63 }
 0x321   : > { %1743 = vst [vmem:[#allocation1 + $0x1] ss:$4 sm:$0xff] %v1641_v23  ;;  %v1741_v36 = vld.sshfl [vmem:[#allocation1 + $0x20] sm:$0xff pattern:$0x73625140]  ;;  %v1571_v51 = vmax.f32 %v1546_v16, 0.0 }
 0x322   : > { %1744 = vst [vmem:[#allocation1 + $0x2] ss:$4 sm:$0xff] %v1570_v19  ;;  %v1853_v27 = vpack.c.bf16 %v1741_v36, %v1741_v36  ;;  %v4381_v36 = vld [vmem:[#allocation3 + $0x78] sm:$0xff] }
 0x323   : > { %1745 = vst [vmem:[#allocation1 + $0x3] ss:$4 sm:$0xff] %v1642_v37  ;;  %v1645_v25 = vrot.slane %v1571_v51, 2  ;;  %v1646_v60 = vrot.slane %v1571_v51, 4  ;;  %v1647_v26 = vrot.slane %v1571_v51, 6  ;;  %3103 = vmatpush.bf16.msrb.mxu2 %v4381_v36  ;;  %v4413_v16 = vld [vmem:[#allocation3 + $0x178] sm:$0xff] }
 0x324   : > { %1746 = vst [vmem:[#allocation1 + $0x20] ss:$4 sm:$0xff] %v1643_v17  ;;  %v1473_v40 = vpop.f32.mrf.mxu2  ;;  %2752 = vmatpush.bf16.msrb.mxu0 %v4413_v16 }
 0x325   : > { %v1241_v44 = vpop.f32.mrf.mxu1  ;;  %1747 = vst [vmem:[#allocation1 + $0x21] ss:$4 sm:$0xff] %v1644_v34  ;;  %v1518_v29 = vadd.f32 %v1473_v40, %v1212_v0 }
 0x326   : > { %1880 = vst [vmem:[#allocation2 + $0x28] sm:$0xf] %v1852_v43 }
 0x327   : > { %1748 = vst [vmem:[#allocation1 + $0x22] ss:$4 sm:$0xff] %v1571_v51  ;;  %v1547_v7 = vadd.f32 %v5617_v31, %v1518_v29 }
 0x328   : > { %1881 = vst [vmem:[#allocation2 + $0x2c] sm:$0x7] %v1853_v27 }
 0x329   : > { %v1572_v5 = vmax.f32 %v1547_v7, 0.0 }
 0x32a   : > { %v1749_v33 = vld.sshfl [vmem:[#allocation1] sm:$0xff pattern:$0x73625140] }
 0x32b   : > { %v1854_v57 = vpack.c.bf16 %v1749_v33, %v1749_v33  ;;  %1751 = vst [vmem:[#allocation1] ss:$4 sm:$0xff] %v1645_v25  ;;  %v1648_v12 = vrot.slane %v1572_v5, 2  ;;  %v1649_v62 = vrot.slane %v1572_v5, 4  ;;  %v1650_v47 = vrot.slane %v1572_v5, 6 }
 0x32c   : > { %1752 = vst [vmem:[#allocation1 + $0x1] ss:$4 sm:$0xff] %v1646_v60  ;;  %v1476_v41 = vpop.f32.mrf.mxu2 }
 0x32d   : > { %1882 = vst [vmem:[#allocation2 + $0x30] sm:$0xf] %v1854_v57  ;;  %v1519_v39 = vadd.f32 %v1476_v41, %v1215_v28  ;;  %v4373_v57 = vld [vmem:[#allocation3 + $0x38] sm:$0xff]  ;;  %v1227_v41 = vadd.f32 %v5654_v42, %v5539_v55  ;;  %v1230_v55 = vadd.f32 %v5659_v9, %v5550_v14  ;;  %v1232_v14 = vadd.f32 %v5666_v61, %v5559_v35 }
 0x32e   : > { %1753 = vst [vmem:[#allocation1 + $0x2] ss:$4 sm:$0xff] %v1647_v26  ;;  %v1750_v10 = vld.sshfl [vmem:[#allocation1 + $0x20] sm:$0xff pattern:$0x73625140]  ;;  %3049 = vmatpush.bf16.msrb.mxu1 %v4373_v57  ;;  %v1235_v35 = vadd.f32 %v5671_v53, %v5569_v4 }
 0x32f   : > { %1754 = vst [vmem:[#allocation1 + $0x3] ss:$4 sm:$0xff] %v1572_v5  ;;  %v1855_v21 = vpack.c.bf16 %v1750_v10, %v1750_v10  ;;  %v1548_v46 = vadd.f32 %v5617_v31, %v1519_v39  ;;  %v3999_v4 = vld [vmem:[#allocation2 + $0x18] sm:$0xf] }
 0x330   : > { %1755 = vst [vmem:[#allocation1 + $0x20] ss:$4 sm:$0xff] %v1648_v12 }
 0x331   : > { %1756 = vst [vmem:[#allocation1 + $0x21] ss:$4 sm:$0xff] %v1649_v62  ;;  %v1573_v50 = vmax.f32 %v1548_v46, 0.0 }
 0x332   : > { %1757 = vst [vmem:[#allocation1 + $0x22] ss:$4 sm:$0xff] %v1650_v47 }
 0x333   : > { %1883 = vst [vmem:[#allocation2 + $0x34] sm:$0x7] %v1855_v21  ;;  %v1651_v59 = vrot.slane %v1573_v50, 2  ;;  %v1652_v38 = vrot.slane %v1573_v50, 4  ;;  %v1653_v52 = vrot.slane %v1573_v50, 6 }
 0x334   : > { %v1478_v49 = vpop.f32.mrf.mxu2 }
 0x335   : > { %v1520_v1 = vadd.f32 %v1478_v49, %v1217_v18 }
 0x336   : > { %v1758_v15 = vld.sshfl [vmem:[#allocation1] sm:$0xff pattern:$0x73625140] }
 0x337   : > { %1760 = vst [vmem:[#allocation1] ss:$4 sm:$0xff] %v1573_v50  ;;  %v1856_v23 = vpack.c.bf16 %v1758_v15, %v1758_v15  ;;  %v1549_v19 = vadd.f32 %v5617_v31, %v1520_v1 }
 0x338   : > { %1761 = vst [vmem:[#allocation1 + $0x1] ss:$4 sm:$0xff] %v1651_v59 }
 0x339   : > { %v1759_v63 = vld.sshfl [vmem:[#allocation1 + $0x20] sm:$0xff pattern:$0x73625140]  ;;  %1762 = vst [vmem:[#allocation1 + $0x2] ss:$4 sm:$0xff] %v1652_v38  ;;  %v1574_v6 = vmax.f32 %v1549_v19, 0.0 }
 0x33a   : > { %v1857_v11 = vpack.c.bf16 %v1759_v63, %v1759_v63  ;;  %1763 = vst [vmem:[#allocation1 + $0x3] ss:$4 sm:$0xff] %v1653_v52  ;;  %v4380_v38 = vld [vmem:[#allocation3 + $0x70] sm:$0xff] }
 0x33b   : > { %1884 = vst [vmem:[#allocation2 + $0x38] sm:$0xf] %v1856_v23  ;;  %v1654_v58 = vrot.slane %v1574_v6, 2  ;;  %v1655_v37 = vrot.slane %v1574_v6, 4  ;;  %v1656_v17 = vrot.slane %v1574_v6, 6  ;;  %3104 = vmatpush.bf16.msrb.mxu2 %v4380_v38  ;;  %v4412_v23 = vld [vmem:[#allocation3 + $0x170] sm:$0xff] }
 0x33c   : > { %1885 = vst [vmem:[#allocation2 + $0x3c] sm:$0x7] %v1857_v11  ;;  %v1481_v34 = vpop.f32.mrf.mxu2  ;;  %2753 = vmatpush.bf16.msrb.mxu0 %v4412_v23 }
 0x33d   : > { %1764 = vst [vmem:[#allocation1 + $0x20] ss:$4 sm:$0xff] %v1574_v6  ;;  %v1521_v44 = vadd.f32 %v1481_v34, %v1220_v24 }
 0x33e   : > { %1765 = vst [vmem:[#allocation1 + $0x21] ss:$4 sm:$0xff] %v1654_v58  ;;  %v4372_v58 = vld [vmem:[#allocation3 + $0x30] sm:$0xff] }
 0x33f   : > { %1766 = vst [vmem:[#allocation1 + $0x22] ss:$4 sm:$0xff] %v1655_v37  ;;  %v1550_v43 = vadd.f32 %v5617_v31, %v1521_v44  ;;  %3050 = vmatpush.bf16.msrb.mxu1 %v4372_v58 }
 0x341   : > { %v1767_v20 = vld.sshfl [vmem:[#allocation1] sm:$0xff pattern:$0x73625140]  ;;  %v1575_v51 = vmax.f32 %v1550_v43, 0.0  ;;  %v4353_v43 = vld [vmem:[#allocation2 + $0x8] sm:$0x70] }
 0x342   : > { %v1858_v3 = vpack.c.bf16 %v1767_v20, %v1767_v20  ;;  %1769 = vst [vmem:[#allocation1] ss:$4 sm:$0xff] %v1656_v17 }
 0x343   : > { %v1657_v30 = vrot.slane %v1575_v51, 2  ;;  %v1658_v0 = vrot.slane %v1575_v51, 4  ;;  %v1659_v25 = vrot.slane %v1575_v51, 6  ;;  %1770 = vst [vmem:[#allocation1 + $0x1] ss:$4 sm:$0xff] %v1575_v51 }
 0x344   : > { %1886 = vst [vmem:[#allocation2 + $0x40] sm:$0xf] %v1858_v3  ;;  %v1483_v60 = vpop.f32.mrf.mxu2  ;;  %v3991_v51 = vld [vmem:[#allocation2 + $0x8] sm:$0xf] }
 0x345   : > { %1771 = vst [vmem:[#allocation1 + $0x2] ss:$4 sm:$0xff] %v1657_v30  ;;  %v1522_v26 = vadd.f32 %v1483_v60, %v1222_v22  ;;  %v5714_v30 = vor.u32 %v4353_v43, %v3991_v51 }
 0x346   : > { %v1768_v33 = vld.sshfl [vmem:[#allocation1 + $0x20] sm:$0xff pattern:$0x73625140]  ;;  %1772 = vst [vmem:[#allocation1 + $0x3] ss:$4 sm:$0xff] %v1658_v0 }
 0x347   : > { %v1859_v40 = vpack.c.bf16 %v1768_v33, %v1768_v33  ;;  %1773 = vst [vmem:[#allocation1 + $0x20] ss:$4 sm:$0xff] %v1659_v25  ;;  %v1551_v29 = vadd.f32 %v5617_v31, %v1522_v26 }
 0x349   : > { %1887 = vst [vmem:[#allocation2 + $0x44] sm:$0x7] %v1859_v40  ;;  %v1576_v27 = vmax.f32 %v1551_v29, 0.0  ;;  %v4355_v40 = vld [vmem:[#allocation2 + $0x18] sm:$0x70] }
 0x34a   : > { %v4354_v29 = vld [vmem:[#allocation2 + $0x10] sm:$0x70] }
 0x34b   : > { %v1660_v8 = vrot.slane %v1576_v27, 2  ;;  %v1661_v7 = vrot.slane %v1576_v27, 4  ;;  %v1662_v5 = vrot.slane %v1576_v27, 6  ;;  %1774 = vst [vmem:[#allocation1 + $0x21] ss:$4 sm:$0xff] %v1576_v27  ;;  %v1996_v27 = vshll.u32 %v5714_v30, 16 }
 0x34c   : > { %v1486_v10 = vpop.f32.mrf.mxu2 }
 0x34d   : > { %v1776_v28 = vld.sshfl [vmem:[#allocation1] sm:$0xff pattern:$0x73625140]  ;;  %1775 = vst [vmem:[#allocation1 + $0x22] ss:$4 sm:$0xff] %v1660_v8  ;;  %v1523_v12 = vadd.f32 %v1486_v10, %v1225_v48  ;;  %v5722_v10 = vor.u32 %v4355_v40, %v3999_v4 }
 0x34e   : > { %v1860_v62 = vpack.c.bf16 %v1776_v28, %v1776_v28  ;;  %1778 = vst [vmem:[#allocation1] ss:$4 sm:$0xff] %v1661_v7 }
 0x34f   : > { %1779 = vst [vmem:[#allocation1 + $0x1] ss:$4 sm:$0xff] %v1662_v5  ;;  %v1552_v47 = vadd.f32 %v5617_v31, %v1523_v12  ;;  %v3995_v5 = vld [vmem:[#allocation2 + $0x10] sm:$0xf]  ;;  %v1998_v12 = vrot.slane %v1996_v27, 1 }
 0x350   : > { %1888 = vst [vmem:[#allocation2 + $0x48] sm:$0xf] %v1860_v62  ;;  %v5720_v53 = vor.u32 %v4354_v29, %v3995_v5  ;;  %v1237_v62 = vadd.f32 %v5676_v13, %v5579_v32  ;;  %v4396_v32 = vld [vmem:[#allocation3 + $0xf0] sm:$0xff] }
 0x351   : > { %v1577_v21 = vmax.f32 %v1552_v47, 0.0 }
 0x352   : > { %v2072_v5 = vrot.slane %v5720_v53, 1 }
 0x353   : > { %v1663_v39 = vrot.slane %v1577_v21, 2  ;;  %v1664_v45 = vrot.slane %v1577_v21, 4  ;;  %v1665_v56 = vrot.slane %v1577_v21, 6  ;;  %1780 = vst [vmem:[#allocation1 + $0x2] ss:$4 sm:$0xff] %v1577_v21 }
 0x354   : > { %v1777_v46 = vld.sshfl [vmem:[#allocation1 + $0x20] sm:$0xff pattern:$0x73625140]  ;;  %v1488_v50 = vpop.f32.mrf.mxu2 }
 0x355   : > { %v1861_v15 = vpack.c.bf16 %v1777_v46, %v1777_v46  ;;  %1781 = vst [vmem:[#allocation1 + $0x3] ss:$4 sm:$0xff] %v1663_v39  ;;  %v1524_v18 = vadd.f32 %v1488_v50, %v1227_v41  ;;  %v1994_v39 = vshrl.u32 %v5714_v30, 16  ;;  %v2003_v46 = vshll.u32 %v5720_v53, 16 }
 0x356   : > { %1782 = vst [vmem:[#allocation1 + $0x20] ss:$4 sm:$0xff] %v1664_v45  ;;  %v4397_v45 = vld [vmem:[#allocation3 + $0xf8] sm:$0xff]  ;;  %v2010_v50 = vshll.u32 %v5722_v10, 16 }
 0x357   : > { %1783 = vst [vmem:[#allocation1 + $0x21] ss:$4 sm:$0xff] %v1665_v56  ;;  %v1553_v59 = vadd.f32 %v5617_v31, %v1524_v18  ;;  %v4357_v18 = vld [vmem:[#allocation2 + $0x28] sm:$0x70]  ;;  %2644 = vmatpush.bf16.msra.mxu3 %v4397_v45  ;;  %v1999_v13 = vor.u32 %v1998_v12, %v1994_v39 }
 0x358   : > { %1889 = vst [vmem:[#allocation2 + $0x4c] sm:$0x7] %v1861_v15  ;;  %v4409_v39 = vld [vmem:[#allocation3 + $0x158] sm:$0xff] }
 0x359   : > { %v1578_v52 = vmax.f32 %v1553_v59, 0.0  ;;  %v4411_v59 = vld [vmem:[#allocation3 + $0x168] sm:$0xff]  ;;  %v2084_v58 = vrot.slane %v1999_v13, 6 }
 0x35a   : > { %2754 = vmatpush.bf16.msrb.mxu0 %v4411_v59 }
 0x35b   : > { %v1666_v42 = vrot.slane %v1578_v52, 2  ;;  %v1667_v49 = vrot.slane %v1578_v52, 4  ;;  %1784 = vst [vmem:[#allocation1 + $0x22] ss:$4 sm:$0xff] %v1578_v52  ;;  %v1668_v63 = vrot.slane %v1578_v52, 6  ;;  %2645 = vmatpush.bf16.msra.mxu3 %v4396_v32  ;;  %v2124_v40 = vsel %vm2106_vm4, %v5714_v30, %v2084_v58 }
 0x35c   : > { %v1785_v1 = vld.sshfl [vmem:[#allocation1] sm:$0xff pattern:$0x73625140]  ;;  %v1491_v11 = vpop.f32.mrf.mxu2 }
 0x35d   : > { %v1862_v19 = vpack.c.bf16 %v1785_v1, %v1785_v1  ;;  %1787 = vst [vmem:[#allocation1] ss:$4 sm:$0xff] %v1666_v42  ;;  %v1525_v6 = vadd.f32 %v1491_v11, %v1230_v55  ;;  %v4410_v55 = vld [vmem:[#allocation3 + $0x160] sm:$0xff]  ;;  %v4007_v42 = vld [vmem:[#allocation2 + $0x28] sm:$0xf]  ;;  %v2012_v11 = vrot.slane %v2010_v50, 1 }
 0x35e   : > { %1788 = vst [vmem:[#allocation1 + $0x1] ss:$4 sm:$0xff] %v1667_v49  ;;  %v2005_v49 = vrot.slane %v2003_v46, 1  ;;  %2755 = vmatpush.bf16.msrb.mxu0 %v4410_v55  ;;  %v4360_v55 = vld [vmem:[#allocation2 + $0x40] sm:$0x70] }
 0x35f   : > { %1890 = vst [vmem:[#allocation2 + $0x50] sm:$0xf] %v1862_v19  ;;  %v1554_v24 = vadd.f32 %v5617_v31, %v1525_v6  ;;  %v2001_v19 = vshrl.u32 %v5720_v53, 16  ;;  %v4395_v6 = vld [vmem:[#allocation3 + $0xe8] sm:$0xff] }
 0x360   : > { %1789 = vst [vmem:[#allocation1 + $0x2] ss:$4 sm:$0xff] %v1668_v63  ;;  %v5730_v63 = vor.u32 %v4357_v18, %v4007_v42  ;;  %2646 = vmatpush.bf16.msra.mxu3 %v4395_v6  ;;  %v4392_v6 = vld [vmem:[#allocation3 + $0xd0] sm:$0xff] }
 0x361   : > { %v1579_v37 = vmax.f32 %v1554_v24, 0.0  ;;  %v2071_v24 = vrot.slane %v5714_v30, 1 }
 0x362   : > { %v1786_v17 = vld.sshfl [vmem:[#allocation1 + $0x20] sm:$0xff pattern:$0x73625140]  ;;  %2756 = vmatpush.bf16.msrb.mxu0 %v4409_v39 }
 0x363   : > { %v1669_v9 = vrot.slane %v1579_v37, 2  ;;  %v1670_v34 = vrot.slane %v1579_v37, 4  ;;  %v1671_v44 = vrot.slane %v1579_v37, 6  ;;  %1790 = vst [vmem:[#allocation1 + $0x3] ss:$4 sm:$0xff] %v1579_v37  ;;  %v1863_v36 = vpack.c.bf16 %v1786_v17, %v1786_v17 }
 0x364   : > { %v1493_v20 = vpop.f32.mrf.mxu2  ;;  %v1240_v37 = vadd.f32 %v5681_v2, %v5592_v54  ;;  %v2008_v17 = vshrl.u32 %v5722_v10, 16  ;;  %v4394_v54 = vld [vmem:[#allocation3 + $0xe0] sm:$0xff]  ;;  %v2127_v2 = vsel %vm2112_vm6, %v5714_v30, %v2084_v58 }
 0x365   : > { %1791 = vst [vmem:[#allocation1 + $0x20] ss:$4 sm:$0xff] %v1669_v9  ;;  %v1526_v3 = vadd.f32 %v1493_v20, %v1232_v14  ;;  %2647 = vmatpush.bf16.msra.mxu3 %v4394_v54 }
 0x366   : > { %1792 = vst [vmem:[#allocation1 + $0x21] ss:$4 sm:$0xff] %v1670_v34  ;;  %v2006_v34 = vor.u32 %v2005_v49, %v2001_v19 }
 0x367   : > { %1793 = vst [vmem:[#allocation1 + $0x22] ss:$4 sm:$0xff] %v1671_v44  ;;  %v1555_v16 = vadd.f32 %v5617_v31, %v1526_v3  ;;  %v2024_v3 = vshll.u32 %v5730_v63, 16 }
 0x368   : > { %1891 = vst [vmem:[#allocation2 + $0x54] sm:$0x7] %v1863_v36  ;;  %v4356_v36 = vld [vmem:[#allocation2 + $0x20] sm:$0x70] }
 0x369   : > { %v1580_v22 = vmax.f32 %v1555_v16, 0.0  ;;  %v2013_v16 = vor.u32 %v2012_v11, %v2008_v17  ;;  %v2026_v29 = vrot.slane %v2024_v3, 1 }
 0x36a   : > { %v1794_v0 = vld.sshfl [vmem:[#allocation1] sm:$0xff pattern:$0x73625140] }
 0x36b   : > { %v1672_v61 = vrot.slane %v1580_v22, 2  ;;  %v1673_v25 = vrot.slane %v1580_v22, 4  ;;  %v1674_v60 = vrot.slane %v1580_v22, 6  ;;  %1796 = vst [vmem:[#allocation1] ss:$4 sm:$0xff] %v1580_v22  ;;  %v1864_v33 = vpack.c.bf16 %v1794_v0, %v1794_v0 }
 0x36c   : > { %v1496_v26 = vpop.f32.mrf.mxu2  ;;  %v4003_v0 = vld [vmem:[#allocation2 + $0x20] sm:$0xf] }
 0x36d   : > { %1797 = vst [vmem:[#allocation1 + $0x1] ss:$4 sm:$0xff] %v1672_v61  ;;  %v1527_v57 = vadd.f32 %v1496_v26, %v1235_v35  ;;  %v2085_v61 = vrot.slane %v2071_v24, 4  ;;  %v2086_v26 = vrot.slane %v2006_v34, 6  ;;  %v4408_v24 = vld [vmem:[#allocation3 + $0x150] sm:$0xff]  ;;  %v2075_v34 = vrot.slane %v5730_v63, 1 }
 0x36e   : > { %v1795_v48 = vld.sshfl [vmem:[#allocation1 + $0x20] sm:$0xff pattern:$0x73625140]  ;;  %1798 = vst [vmem:[#allocation1 + $0x2] ss:$4 sm:$0xff] %v1673_v25  ;;  %v2131_v25 = vsel %vm2118_vm8, %v5714_v30, %v2084_v58  ;;  %v2022_v30 = vshrl.u32 %v5730_v63, 16  ;;  %2757 = vmatpush.bf16.msrb.mxu0 %v4408_v24 }
 0x36f   : > { %v1865_v8 = vpack.c.bf16 %v1795_v48, %v1795_v48  ;;  %1799 = vst [vmem:[#allocation1 + $0x3] ss:$4 sm:$0xff] %v1674_v60  ;;  %v1556_v7 = vadd.f32 %v5617_v31, %v1527_v57  ;;  %v5743_v60 = vor.u32 %v4356_v36, %v4003_v0  ;;  %v4359_v57 = vld [vmem:[#allocation2 + $0x38] sm:$0x70]  ;;  %v5748_v48 = vsel %vm2114_vm7, %v2127_v2, %v2085_v61 }
 0x370   : > { %1892 = vst [vmem:[#allocation2 + $0x58] sm:$0xf] %v1864_v33  ;;  %v4358_v33 = vld [vmem:[#allocation2 + $0x30] sm:$0x70]  ;;  %v5753_v4 = vsel %vm2109_vm5, %v2085_v61, %v2131_v25  ;;  %v2130_v46 = vrot.slane %v5748_v48, 2  ;;  %v2027_v50 = vor.u32 %v2026_v29, %v2022_v30  ;;  %v2143_v13 = vsel %vm2118_vm8, %v5720_v53, %v2086_v26  ;;  %v4391_v2 = vld [vmem:[#allocation3 + $0xc8] sm:$0xff] }
 0x371   : > { %1893 = vst [vmem:[#allocation2 + $0x5c] sm:$0x7] %v1865_v8  ;;  %v1581_v28 = vmax.f32 %v1556_v7, 0.0  ;;  %v2088_v8 = vrot.slane %v2013_v16, 6  ;;  %v4011_v7 = vld [vmem:[#allocation2 + $0x30] sm:$0xf]  ;;  %v2136_v42 = vsel %vm2106_vm4, %v5720_v53, %v2086_v26 }
 0x372   : > { %v5755_v12 = vor.u32 %v4358_v33, %v4011_v7  ;;  %v2134_v18 = vrot.slane %v5753_v4, 4  ;;  %v5781_v17 = vrot.slane %v2027_v50, 6  ;;  %v2074_v0 = vrot.slane %v5743_v60, 1  ;;  %v4407_v33 = vld [vmem:[#allocation3 + $0x148] sm:$0xff]  ;;  %v4390_v30 = vld [vmem:[#allocation3 + $0xc0] sm:$0xff] }
 0x373   : > { %v1675_v47 = vrot.slane %v1581_v28, 2  ;;  %v1676_v21 = vrot.slane %v1581_v28, 4  ;;  %v1677_v41 = vrot.slane %v1581_v28, 6  ;;  %1800 = vst [vmem:[#allocation1 + $0x20] ss:$4 sm:$0xff] %v1581_v28  ;;  %v2151_v59 = vsel %vm2112_vm6, %v5722_v10, %v2088_v8  ;;  %2758 = vmatpush.bf16.msrb.mxu0 %v4407_v33 }
 0x374   : > { %v1498_v56 = vpop.f32.mrf.mxu2  ;;  %v4015_v28 = vld [vmem:[#allocation2 + $0x38] sm:$0xf]  ;;  %v2148_v3 = vsel %vm2106_vm4, %v5722_v10, %v2088_v8  ;;  %v2175_v25 = vsel %vm2112_vm6, %v5730_v63, %v5781_v17  ;;  %v2172_v24 = vsel %vm2106_vm4, %v5730_v63, %v5781_v17 }
 0x375   : > { %1801 = vst [vmem:[#allocation1 + $0x21] ss:$4 sm:$0xff] %v1675_v47  ;;  %v1528_v15 = vadd.f32 %v1498_v56, %v1237_v62  ;;  %v2017_v47 = vshll.u32 %v5743_v60, 16  ;;  %v5762_v56 = vsel %vm2109_vm5, %v2124_v40, %v2085_v61  ;;  %v2029_v61 = vshrl.u32 %v5755_v12, 16 }
 0x376   : > { %v1803_v38 = vld.sshfl [vmem:[#allocation1] sm:$0xff pattern:$0x73625140]  ;;  %1802 = vst [vmem:[#allocation1 + $0x22] ss:$4 sm:$0xff] %v1676_v21  ;;  %v5759_v21 = vor.u32 %v4359_v57, %v4015_v28  ;;  %v2093_v40 = vrot.slane %v2075_v34, 4 }
 0x377   : > { %v1866_v52 = vpack.c.bf16 %v1803_v38, %v1803_v38  ;;  %1805 = vst [vmem:[#allocation1] ss:$4 sm:$0xff] %v1677_v41  ;;  %v1557_v23 = vadd.f32 %v5617_v31, %v1528_v15  ;;  %v4393_v41 = vld [vmem:[#allocation3 + $0xd8] sm:$0xff]  ;;  %v2139_v15 = vsel %vm2112_vm6, %v5720_v53, %v2086_v26  ;;  %v2087_v38 = vrot.slane %v2072_v5, 4 }
 0x378   : > { %2648 = vmatpush.bf16.msra.mxu3 %v4393_v41  ;;  %v2038_v11 = vshll.u32 %v5759_v21, 16  ;;  %v2176_v5 = vsel %vm2114_vm7, %v2175_v25, %v2093_v40  ;;  %v5820_v41 = vrot.slane %v2074_v0, 4  ;;  %v5861_v0 = vsel %vm2109_vm5, %v2172_v24, %v2093_v40  ;;  %v4370_v25 = vld [vmem:[#allocation3 + $0x20] sm:$0xff] }
 0x379   : > { %1894 = vst [vmem:[#allocation2 + $0x60] sm:$0xf] %v1866_v52  ;;  %v1582_v1 = vmax.f32 %v1557_v23, 0.0  ;;  %v2031_v23 = vshll.u32 %v5755_v12, 16  ;;  %v2140_v19 = vsel %vm2114_vm7, %v2139_v15, %v2087_v38  ;;  %v2144_v53 = vsel %vm2109_vm5, %v2087_v38, %v2143_v13 }
 0x37a   : > { %v5800_v54 = vrot.slane %v2144_v53, 4  ;;  %v2076_v15 = vrot.slane %v5755_v12, 1  ;;  %v2179_v13 = vsel %vm2118_vm8, %v5730_v63, %v5781_v17 }
 0x37b   : > { %1806 = vst [vmem:[#allocation1 + $0x1] ss:$4 sm:$0xff] %v1582_v1  ;;  %v1678_v14 = vrot.slane %v1582_v1, 2  ;;  %v1679_v9 = vrot.slane %v1582_v1, 4  ;;  %v1680_v22 = vrot.slane %v1582_v1, 6  ;;  %v2019_v1 = vrot.slane %v2017_v47, 1 }
 0x37c   : > { %v1501_v44 = vpop.f32.mrf.mxu2  ;;  %2649 = vmatpush.bf16.msra.mxu3 %v4392_v6  ;;  %v2033_v36 = vrot.slane %v2031_v23, 1  ;;  %v4406_v47 = vld [vmem:[#allocation3 + $0x140] sm:$0xff]  ;;  %v2077_v23 = vrot.slane %v5759_v21, 1  ;;  %v4031_v6 = vld [vmem:[#allocation2 + $0x58] sm:$0xf]  ;;  %v2180_v34 = vsel %vm2109_vm5, %v2093_v40, %v2179_v13 }
 0x37d   : > { %v1804_v20 = vld.sshfl [vmem:[#allocation1 + $0x20] sm:$0xff pattern:$0x73625140]  ;;  %v1529_v43 = vadd.f32 %v1501_v44, %v1240_v37  ;;  %1807 = vst [vmem:[#allocation1 + $0x2] ss:$4 sm:$0xff] %v1678_v14  ;;  %v2015_v14 = vshrl.u32 %v5743_v60, 16  ;;  %v5789_v44 = vsel %vm2109_vm5, %v2136_v42, %v2087_v38  ;;  %2759 = vmatpush.bf16.msrb.mxu0 %v4406_v47 }
 0x37e   : > { %v1867_v51 = vpack.c.bf16 %v1804_v20, %v1804_v20  ;;  %1808 = vst [vmem:[#allocation1 + $0x3] ss:$4 sm:$0xff] %v1679_v9  ;;  %v4019_v37 = vld [vmem:[#allocation2 + $0x40] sm:$0xf]  ;;  %v5793_v20 = vrot.slane %v2140_v19, 2  ;;  %v5893_v47 = vrot.slane %v2077_v23, 4 }
 0x37f   : > { %v1558_v35 = vadd.f32 %v5617_v31, %v1529_v43  ;;  %1809 = vst [vmem:[#allocation1 + $0x20] ss:$4 sm:$0xff] %v1680_v22  ;;  %v2073_v31 = vrot.slane %v5722_v10, 1  ;;  %v5785_v9 = vor.u32 %v4360_v55, %v4019_v37  ;;  %v2155_v43 = vsel %vm2118_vm8, %v5722_v10, %v2088_v8  ;;  %v4363_v38 = vld [vmem:[#allocation2 + $0x58] sm:$0x70] }
 0x380   : > { %1895 = vst [vmem:[#allocation2 + $0x64] sm:$0x7] %v1867_v51  ;;  %v2020_v16 = vor.u32 %v2019_v1, %v2015_v14  ;;  %v2040_v51 = vrot.slane %v2038_v11, 1  ;;  %v2036_v10 = vshrl.u32 %v5759_v21, 16  ;;  %2650 = vmatpush.bf16.msra.mxu3 %v4391_v2  ;;  %v4371_v1 = vld [vmem:[#allocation3 + $0x28] sm:$0xff]  ;;  %v4405_v11 = vld [vmem:[#allocation3 + $0x138] sm:$0xff]  ;;  %v5858_v2 = vor.u32 %v4363_v38, %v4031_v6 }
 0x381   : > { %v1583_v27 = vmax.f32 %v1558_v35, 0.0  ;;  %v2089_v52 = vrot.slane %v2073_v31, 4  ;;  %v2045_v26 = vshll.u32 %v5785_v9, 16  ;;  %v4362_v31 = vld [vmem:[#allocation2 + $0x50] sm:$0x70]  ;;  %v2043_v55 = vshrl.u32 %v5785_v9, 16  ;;  %3051 = vmatpush.bf16.msrb.mxu1 %v4371_v1 }
 0x382   : > { %v2090_v8 = vrot.slane %v2020_v16, 6  ;;  %v2041_v7 = vor.u32 %v2040_v51, %v2036_v10  ;;  %v4361_v19 = vld [vmem:[#allocation2 + $0x48] sm:$0x70]  ;;  %v5868_v10 = vrot.slane %v2076_v15, 4  ;;  %v2066_v15 = vshll.u32 %v5858_v2, 16  ;;  %v4403_v38 = vld [vmem:[#allocation3 + $0x128] sm:$0xff] }
 0x383   : > { %v1681_v62 = vrot.slane %v1583_v27, 2  ;;  %1810 = vst [vmem:[#allocation1 + $0x21] ss:$4 sm:$0xff] %v1583_v27  ;;  %v2152_v58 = vsel %vm2114_vm7, %v2151_v59, %v2089_v52  ;;  %v5813_v57 = vsel %vm2109_vm5, %v2148_v3, %v2089_v52  ;;  %v2156_v29 = vsel %vm2109_vm5, %v2089_v52, %v2155_v43  ;;  %v4378_v3 = vld [vmem:[#allocation3 + $0x60] sm:$0xff]  ;;  %v4404_v43 = vld [vmem:[#allocation3 + $0x130] sm:$0xff] }
 0x384   : > { %v1503_v45 = vpop.f32.mrf.mxu2  ;;  %v5803_v35 = vrot.slane %v2152_v58, 2  ;;  %v2034_v27 = vor.u32 %v2033_v36, %v2029_v61  ;;  %v5822_v39 = vrot.slane %v2156_v29, 4  ;;  %2651 = vmatpush.bf16.msra.mxu3 %v4390_v30  ;;  %v2163_v52 = vsel %vm2112_vm6, %v5743_v60, %v2090_v8  ;;  %v4376_v1 = vld [vmem:[#allocation3 + $0x50] sm:$0xff] }
 0x385   : > { %1811 = vst [vmem:[#allocation1 + $0x22] ss:$4 sm:$0xff] %v1681_v62  ;;  %v1812_v32 = vld.sshfl [vmem:[#allocation1] sm:$0xff pattern:$0x73625140]  ;;  %v2047_v45 = vrot.slane %v2045_v26, 1  ;;  %v2167_v16 = vsel %vm2118_vm8, %v5743_v60, %v2090_v8  ;;  %v2164_v51 = vsel %vm2114_vm7, %v2163_v52, %v5820_v41  ;;  %v2160_v33 = vsel %vm2106_vm4, %v5743_v60, %v2090_v8  ;;  %3052 = vmatpush.bf16.msrb.mxu1 %v4370_v25 }
 0x386   : > { %v1868_v49 = vpack.c.bf16 %v1812_v32, %v1812_v32  ;;  %2379 = vst [vmem:[#allocation1] ss:$4 sm:$0xff] %v5762_v56  ;;  %v4027_v62 = vld [vmem:[#allocation2 + $0x50] sm:$0xf]  ;;  %v5827_v59 = vrot.slane %v2034_v27, 6  ;;  %v5829_v32 = vrot.slane %v2176_v5, 2  ;;  %v2168_v40 = vsel %vm2109_vm5, %v5820_v41, %v2167_v16 }
 0x387   : > { %2382 = vst [vmem:[#allocation1 + $0x1] ss:$4 sm:$0xff] %v2130_v46  ;;  %v5824_v50 = vor.u32 %v4362_v31, %v4027_v62  ;;  %v5838_v42 = vrot.slane %v2041_v7, 6  ;;  %v2048_v53 = vor.u32 %v2047_v45, %v2043_v55  ;;  %v4023_v26 = vld [vmem:[#allocation2 + $0x48] sm:$0xf]  ;;  %v5870_v29 = vrot.slane %v2180_v34, 4 }
 0x388   : > { %1896 = vst [vmem:[#allocation2 + $0x68] sm:$0xf] %v1868_v49  ;;  %v4379_v49 = vld [vmem:[#allocation3 + $0x68] sm:$0xff]  ;;  %2698 = vmatpush.bf16.msrb.mxu3 %v4405_v11  ;;  %v5875_v27 = vor.u32 %v4361_v19, %v4023_v26  ;;  %v4369_v7 = vld [vmem:[#allocation3 + $0x18] sm:$0xff]  ;;  %v5878_v60 = vrot.slane %v2164_v51, 2  ;;  %v2078_v8 = vrot.slane %v5785_v9, 1  ;;  %v5891_v62 = vsel %vm2109_vm5, %v2160_v33, %v5820_v41 }
 0x389   : > { %2385 = vst [vmem:[#allocation1 + $0x2] ss:$4 sm:$0xff] %v2134_v18  ;;  %v2059_v14 = vshll.u32 %v5824_v50, 16  ;;  %3105 = vmatpush.bf16.msrb.mxu2 %v4379_v49  ;;  %v2098_v31 = vrot.slane %v2048_v53, 6  ;;  %v4377_v5 = vld [vmem:[#allocation3 + $0x58] sm:$0xff]  ;;  %v2203_v30 = vsel %vm2118_vm8, %v5759_v21, %v5838_v42  ;;  %v5897_v13 = vrot.slane %v2168_v40, 4  ;;  %3053 = vmatpush.bf16.msrb.mxu1 %v4369_v7 }
 0x38a   : > { %2387 = vst [vmem:[#allocation1 + $0x3] ss:$4 sm:$0xff] %v5789_v44  ;;  %v2052_v52 = vshll.u32 %v5875_v27, 16  ;;  %v2204_v55 = vsel %vm2109_vm5, %v5893_v47, %v2203_v30  ;;  %v2057_v23 = vshrl.u32 %v5824_v50, 16  ;;  %v4368_v49 = vld [vmem:[#allocation3 + $0x10] sm:$0xff]  ;;  %v2099_v11 = vrot.slane %v2078_v8, 4 }
 0x38b   : > { %v2061_v45 = vrot.slane %v2059_v14, 1  ;;  %v2211_v41 = vsel %vm2112_vm6, %v5785_v9, %v2098_v31  ;;  %v2215_v19 = vsel %vm2118_vm8, %v5785_v9, %v2098_v31  ;;  %v2187_v6 = vsel %vm2112_vm6, %v5755_v12, %v5827_v59  ;;  %v4367_v16 = vld [vmem:[#allocation3 + $0x8] sm:$0xff] }
 0x38c   : > { %v1813_v22 = vld.sshfl [vmem:[#allocation1 + $0x20] sm:$0xff pattern:$0x73625140]  ;;  %2699 = vmatpush.bf16.msrb.mxu3 %v4404_v43  ;;  %v5913_v53 = vrot.slane %v2204_v55, 4  ;;  %v2212_v14 = vsel %vm2114_vm7, %v2211_v41, %v2099_v11  ;;  %v2054_v34 = vrot.slane %v2052_v52, 1  ;;  %v2064_v43 = vshrl.u32 %v5858_v2, 16 }
 0x38d   : > { %2390 = vst [vmem:[#allocation1 + $0x20] ss:$4 sm:$0xff] %v5793_v20  ;;  %v1869_v28 = vpack.c.bf16 %v1813_v22, %v1813_v22  ;;  %v2184_v22 = vsel %vm2106_vm4, %v5755_v12, %v5827_v59  ;;  %3106 = vmatpush.bf16.msrb.mxu2 %v4378_v3  ;;  %v2062_v24 = vor.u32 %v2061_v45, %v2057_v23  ;;  %v4375_v51 = vld [vmem:[#allocation3 + $0x48] sm:$0xff]  ;;  %v5930_v40 = vrot.slane %v2212_v14, 2  ;;  %v4364_v45 = vld [vmem:[#allocation2 + $0x60] sm:$0x70] }
 0x38e   : > { %2393 = vst [vmem:[#allocation1 + $0x21] ss:$4 sm:$0xff] %v5800_v54  ;;  %v2216_v3 = vsel %vm2109_vm5, %v2099_v11, %v2215_v19  ;;  %3054 = vmatpush.bf16.msrb.mxu1 %v4368_v49  ;;  %v2188_v25 = vsel %vm2114_vm7, %v2187_v6, %v5868_v10  ;;  %v2080_v30 = vrot.slane %v5824_v50, 1  ;;  %v4035_v52 = vld [vmem:[#allocation2 + $0x60] sm:$0xf]  ;;  %v4366_v55 = vld [vmem:[#allocation3] sm:$0xff]  ;;  %v2196_v23 = vsel %vm2106_vm4, %v5759_v21, %v5838_v42 }
 0x38f   : > { %2395 = vst [vmem:[#allocation1 + $0x22] ss:$4 sm:$0xff] %v5813_v57  ;;  %v5932_v7 = vrot.slane %v2062_v24, 6  ;;  %v5942_v8 = vrot.slane %v2216_v3, 4  ;;  %v4374_v41 = vld [vmem:[#allocation3 + $0x40] sm:$0xff]  ;;  %v5952_v49 = vrot.slane %v2188_v25, 2  ;;  %v5964_v6 = vor.u32 %v4364_v45, %v4035_v52 }
 0x390   : > { %2398 = vst [vmem:[#allocation1 + $0x23] ss:$4 sm:$0xff] %v5803_v35  ;;  %2700 = vmatpush.bf16.msrb.mxu3 %v4403_v38 }
 0x391   : > { %1897 = vst [vmem:[#allocation2 + $0x6c] sm:$0x7] %v1869_v28  ;;  %v2399_v58 = vld.sshfl [vmem:[#allocation1] sm:$0xff pattern:$0x73625140]  ;;  %v5883_v28 = vsel %vm2109_vm5, %v2184_v22, %v5868_v10  ;;  %3107 = vmatpush.bf16.msrb.mxu2 %v4377_v5  ;;  %v2191_v22 = vsel %vm2118_vm8, %v5755_v12, %v5827_v59  ;;  %v2199_v12 = vsel %vm2112_vm6, %v5759_v21, %v5838_v42 }
 0x392   : > { %v5843_v37 = vld.sshfl [vmem:[#allocation1 + $0x8] sm:$0xff pattern:$0x73625140]  ;;  %v2401_v36 = vld.sshfl [vmem:[#allocation1 + $0x10] sm:$0xff pattern:$0x73625140]  ;;  %2652 = vmatmul.bf16.vlgmr.msra.gmra.mxu3 %v2399_v58  ;;  %3055 = vmatpush.bf16.msrb.mxu1 %v4367_v16  ;;  %v2235_v19 = vsel %vm2112_vm6, %v5824_v50, %v5932_v7 }
 0x393   : > { %2760 = vmatmul.bf16.vlgmr.msrb.gmra.mxu0 %v2401_v36  ;;  %2406 = vst [vmem:[#allocation1] ss:$4 sm:$0xff] %v5822_v39  ;;  %v2068_v58 = vrot.slane %v2066_v15, 1  ;;  %v2208_v36 = vsel %vm2106_vm4, %v5785_v9, %v2098_v31  ;;  %v2050_v9 = vshrl.u32 %v5875_v27, 16  ;;  %v2192_v15 = vsel %vm2109_vm5, %v5868_v10, %v2191_v22 }
 0x394   : > { %2407 = vst [vmem:[#allocation1 + $0x1] ss:$4 sm:$0xff] %v5891_v62  ;;  %v5940_v59 = vsel %vm2109_vm5, %v2208_v36, %v2099_v11  ;;  %v5969_v42 = vrot.slane %v2192_v15, 4  ;;  %v5979_v36 = vsel %vm2109_vm5, %v2196_v23, %v5893_v47 }
 0x395   : > { %2409 = vst [vmem:[#allocation1 + $0x2] ss:$4 sm:$0xff] %v5878_v60  ;;  %3108 = vmatpush.bf16.msrb.mxu2 %v4376_v1  ;;  %v2069_v31 = vor.u32 %v2068_v58, %v2064_v43  ;;  %v2055_v38 = vor.u32 %v2054_v34, %v2050_v9  ;;  %v2200_v1 = vsel %vm2114_vm7, %v2199_v12, %v5893_v47  ;;  %v2079_v58 = vrot.slane %v5875_v27, 1  ;;  %v3987_v47 = vld [vmem:[#allocation2] sm:$0xf] }
 0x396   : > { %2411 = vst [vmem:[#allocation1 + $0x3] ss:$4 sm:$0xff] %v5897_v13  ;;  %v2239_v34 = vsel %vm2118_vm8, %v5824_v50, %v5932_v7  ;;  %3056 = vmatpush.bf16.msrb.mxu1 %v4366_v55  ;;  %v5981_v3 = vrot.slane %v2200_v1, 2  ;;  %v4352_v9 = vld [vmem:[#allocation2] sm:$0x70] }
 0x397   : > { %v5851_v63 = vld.sshfl [vmem:[#allocation1 + $0x20] sm:$0xff pattern:$0x73625140]  ;;  %v5853_v17 = vld.sshfl [vmem:[#allocation1 + $0x28] sm:$0xff pattern:$0x73625140] }
 0x398   : > { %v5863_v61 = vld.sshfl [vmem:[#allocation1 + $0x30] sm:$0xff pattern:$0x73625140]  ;;  %v5959_v11 = vrot.slane %v2069_v31, 6  ;;  %v2100_v14 = vrot.slane %v2055_v38, 6  ;;  %v2101_v31 = vrot.slane %v2079_v58, 4 }
 0x399   : > { %2412 = vst [vmem:[#allocation1 + $0x20] ss:$4 sm:$0xff] %v5861_v0  ;;  %3109 = vmatpush.bf16.msrb.mxu2 %v4375_v51  ;;  %v2311_v51 = vshll.u32 %v5964_v6, 16 }
 0x39a   : > { %2414 = vst [vmem:[#allocation1 + $0x21] ss:$4 sm:$0xff] %v5829_v32  ;;  %v2247_v16 = vsel %vm2112_vm6, %v5858_v2, %v5959_v11  ;;  %v2223_v12 = vsel %vm2112_vm6, %v5875_v27, %v2100_v14  ;;  %v2244_v45 = vsel %vm2106_vm4, %v5858_v2, %v5959_v11  ;;  %v2227_v55 = vsel %vm2118_vm8, %v5875_v27, %v2100_v14 }
 0x39b   : > { %2416 = vst [vmem:[#allocation1 + $0x22] ss:$4 sm:$0xff] %v5870_v29  ;;  %v2313_v23 = vrot.slane %v2311_v51, 1  ;;  %v2220_v58 = vsel %vm2106_vm4, %v5875_v27, %v2100_v14  ;;  %v2228_v51 = vsel %vm2109_vm5, %v2101_v31, %v2227_v55  ;;  %v2232_v14 = vsel %vm2106_vm4, %v5824_v50, %v5932_v7 }
 0x39c   : > { %2417 = vst [vmem:[#allocation1 + $0x23] ss:$4 sm:$0xff] %v5883_v28  ;;  %v6031_v27 = vsel %vm2109_vm5, %v2220_v58, %v2101_v31  ;;  %v6041_v55 = vrot.slane %v2228_v51, 4  ;;  %v2251_v50 = vsel %vm2118_vm8, %v5858_v2, %v5959_v11  ;;  %v2315_v7 = vrot.slane %v5964_v6, 1  ;;  %v4402_v11 = vld [vmem:[#allocation3 + $0x120] sm:$0xff] }
 0x39d   : > { %v2418_v10 = vld.sshfl [vmem:[#allocation1] sm:$0xff pattern:$0x73625140]  ;;  %v5967_v21 = vld.sshfl [vmem:[#allocation1 + $0x8] sm:$0xff pattern:$0x73625140]  ;;  %3110 = vmatpush.bf16.msrb.mxu2 %v4374_v41  ;;  %2701 = vmatpush.bf16.msrb.mxu3 %v4402_v11 }
 0x39e   : > { %v2420_v24 = vld.sshfl [vmem:[#allocation1 + $0x10] sm:$0xff pattern:$0x73625140] }
 0x39f   : > { %2425 = vst [vmem:[#allocation1] ss:$4 sm:$0xff] %v5952_v49 }
 0x3a0   : > { %2427 = vst [vmem:[#allocation1 + $0x1] ss:$4 sm:$0xff] %v5969_v42 }
 0x3a1   : > { %2428 = vst [vmem:[#allocation1 + $0x2] ss:$4 sm:$0xff] %v5979_v36 }
 0x3a2   : > { %2657 = vmatmul.bf16.gmra.mxu3 %v5851_v63  ;;  %v2081_v63 = vrot.slane %v5858_v2, 1  ;;  %2430 = vst [vmem:[#allocation1 + $0x3] ss:$4 sm:$0xff] %v5981_v3 }
 0x3a3   : > { %v5925_v33 = vld.sshfl [vmem:[#allocation1 + $0x20] sm:$0xff pattern:$0x73625140]  ;;  %v5927_v26 = vld.sshfl [vmem:[#allocation1 + $0x28] sm:$0xff pattern:$0x73625140]  ;;  %2765 = vmatmul.bf16.gmra.mxu0 %v5863_v61 }
 0x3a4   : > { %v5934_v5 = vld.sshfl [vmem:[#allocation1 + $0x30] sm:$0xff pattern:$0x73625140]  ;;  %v2103_v61 = vrot.slane %v2080_v30, 4  ;;  %v2105_v22 = vrot.slane %v2081_v63, 4  ;;  %v2224_v63 = vsel %vm2114_vm7, %v2223_v12, %v2101_v31 }
 0x3a5   : > { %2432 = vst [vmem:[#allocation1 + $0x20] ss:$4 sm:$0xff] %v5913_v53 }
 0x3a6   : > { %2433 = vst [vmem:[#allocation1 + $0x21] ss:$4 sm:$0xff] %v5940_v59  ;;  %v2236_v43 = vsel %vm2114_vm7, %v2235_v19, %v2103_v61  ;;  %v2240_v25 = vsel %vm2109_vm5, %v2103_v61, %v2239_v34  ;;  %v2248_v15 = vsel %vm2114_vm7, %v2247_v16, %v2105_v22  ;;  %v6010_v19 = vor.u32 %v4352_v9, %v3987_v47 }
 0x3a7   : > { %2435 = vst [vmem:[#allocation1 + $0x22] ss:$4 sm:$0xff] %v5930_v40  ;;  %v5994_v30 = vrot.slane %v2236_v43, 2  ;;  %v6006_v41 = vrot.slane %v2240_v25, 4  ;;  %v6017_v34 = vsel %vm2109_vm5, %v2244_v45, %v2105_v22  ;;  %v6019_v43 = vrot.slane %v2248_v15, 2 }
 0x3a8   : > { %2437 = vst [vmem:[#allocation1 + $0x23] ss:$4 sm:$0xff] %v5942_v8  ;;  %v2309_v16 = vshrl.u32 %v5964_v6, 16  ;;  %v6025_v25 = vrot.slane %v2224_v63, 2  ;;  %v1989_v15 = vshll.u32 %v6010_v19, 16  ;;  %v6046_v31 = vsel %vm2109_vm5, %v2232_v14, %v2103_v61 }
 0x3a9   : > { %v6028_v9 = vld.sshfl [vmem:[#allocation1] sm:$0xff pattern:$0x73625140]  ;;  %v6036_v12 = vld.sshfl [vmem:[#allocation1 + $0x8] sm:$0xff pattern:$0x73625140] }
 0x3aa   : > { %v2314_v47 = vor.u32 %v2313_v23, %v2309_v16  ;;  %v6038_v45 = vld.sshfl [vmem:[#allocation1 + $0x10] sm:$0xff pattern:$0x73625140]  ;;  %v1991_v63 = vrot.slane %v1989_v15, 1  ;;  %v1987_v51 = vshrl.u32 %v6010_v19, 16 }
 0x3ab   : > { %2444 = vst [vmem:[#allocation1] ss:$4 sm:$0xff] %v6031_v27 }
 0x3ac   : > { %2446 = vst [vmem:[#allocation1 + $0x1] ss:$4 sm:$0xff] %v6025_v25  ;;  %v2316_v23 = vrot.slane %v2314_v47, 6  ;;  %v2317_v47 = vrot.slane %v2315_v7, 4  ;;  %v1992_v14 = vor.u32 %v1991_v63, %v1987_v51 }
 0x3ad   : > { %2448 = vst [vmem:[#allocation1 + $0x2] ss:$4 sm:$0xff] %v6041_v55 }
 0x3ae   : > { %2449 = vst [vmem:[#allocation1 + $0x3] ss:$4 sm:$0xff] %v6046_v31  ;;  %v2322_v61 = vsel %vm2112_vm6, %v5964_v6, %v2316_v23  ;;  %v2326_v2 = vsel %vm2118_vm8, %v5964_v6, %v2316_v23  ;;  %v2319_v15 = vsel %vm2106_vm4, %v5964_v6, %v2316_v23  ;;  %v2070_v23 = vrot.slane %v6010_v19, 1 }
 0x3af   : > { %v6000_v38 = vld.sshfl [vmem:[#allocation1 + $0x20] sm:$0xff pattern:$0x73625140]  ;;  %v6002_v52 = vld.sshfl [vmem:[#allocation1 + $0x28] sm:$0xff pattern:$0x73625140]  ;;  %v6079_v7 = vsel %vm2109_vm5, %v2317_v47, %v2326_v2 }
 0x3b0   : > { %v6008_v1 = vld.sshfl [vmem:[#allocation1 + $0x30] sm:$0xff pattern:$0x73625140]  ;;  %v2082_v63 = vrot.slane %v1992_v14, 6 }
 0x3b1   : > { %2451 = vst [vmem:[#allocation1 + $0x20] ss:$4 sm:$0xff] %v5994_v30 }
 0x3b2   : > { %2453 = vst [vmem:[#allocation1 + $0x21] ss:$4 sm:$0xff] %v6006_v41  ;;  %2662 = vmatmul.bf16.gmra.mxu3 %v2418_v10  ;;  %v2113_v51 = vsel %vm2112_vm6, %v6010_v19, %v2082_v63 }
 0x3b3   : > { %2454 = vst [vmem:[#allocation1 + $0x22] ss:$4 sm:$0xff] %v6017_v34  ;;  %2770 = vmatmul.bf16.gmra.mxu0 %v2420_v24  ;;  %v2252_v24 = vsel %vm2109_vm5, %v2105_v22, %v2251_v50  ;;  %v6075_v50 = vsel %vm2114_vm7, %v2322_v61, %v2317_v47  ;;  %v2083_v61 = vrot.slane %v2070_v23, 4  ;;  %v4401_v23 = vld [vmem:[#allocation3 + $0x118] sm:$0xff] }
 0x3b4   : > { %2456 = vst [vmem:[#allocation1 + $0x23] ss:$4 sm:$0xff] %v6019_v43  ;;  %v6070_v22 = vrot.slane %v2252_v24, 4  ;;  %v6777_v6 = vrot.slane %v6075_v50, 2  ;;  %v6776_v24 = vrot.slane %v6079_v7, 4  ;;  %2702 = vmatpush.bf16.msrb.mxu3 %v4401_v23 }
 0x3b5   : > { %v6081_v48 = vld.sshfl [vmem:[#allocation1] sm:$0xff pattern:$0x73625140]  ;;  %v6085_v4 = vld.sshfl [vmem:[#allocation1 + $0x10] sm:$0xff pattern:$0x73625140] }
 0x3bb   : > { %v6054_v58 = vld.sshfl [vmem:[#allocation1 + $0x20] sm:$0xff pattern:$0x73625140]  ;;  %v6056_v10 = vld.sshfl [vmem:[#allocation1 + $0x28] sm:$0xff pattern:$0x73625140] }
 0x3bc   : > { %6911 = vst [vmem:[#allocation47_spill] sm:$0xff] %v6056_v10  ;;  %v6061_v16 = vld.sshfl [vmem:[#allocation1 + $0x30] sm:$0xff pattern:$0x73625140] }
 0x3bd   : > { %2816 = vst [vmem:[#allocation1 + $0x20] ss:$4 sm:$0xff] %v2130_v46  ;;  %v6083_v46 = vld.sshfl [vmem:[#allocation1 + $0x8] sm:$0xff pattern:$0x73625140] }
 0x3be   : > { %2818 = vst [vmem:[#allocation1 + $0x21] ss:$4 sm:$0xff] %v2134_v18  ;;  %v6089_v18 = vsel %vm2109_vm5, %v2319_v15, %v2317_v47  ;;  %v2119_v47 = vsel %vm2118_vm8, %v6010_v19, %v2082_v63  ;;  %v2108_v15 = vsel %vm2106_vm4, %v6010_v19, %v2082_v63 }
 0x3bf   : > { %2820 = vst [vmem:[#allocation1 + $0x22] ss:$4 sm:$0xff] %v5789_v44 }
 0x3c0   : > { %6912 = vst [vmem:[#allocation48_spill] sm:$0xff] %v6083_v46 }
 0x3c1   : > { %2822 = vst [vmem:[#allocation1 + $0x23] ss:$4 sm:$0xff] %v5793_v20 }
 0x3c2   : > { %2464 = vst [vmem:[#allocation1] ss:$4 sm:$0xff] %v6070_v22  ;;  %2667 = vmatmul.bf16.gmra.mxu3 %v5925_v33 }
 0x3c3   : > { %2465 = vst [vmem:[#allocation1 + $0x1] ss:$4 sm:$0xff] %v6089_v18  ;;  %2775 = vmatmul.bf16.gmra.mxu0 %v5934_v5 }
 0x3c4   : > { %2467 = vst [vmem:[#allocation1 + $0x2] ss:$4 sm:$0xff] %v6777_v6  ;;  %v2120_v6 = vsel %vm2109_vm5, %v2083_v61, %v2119_v47 }
 0x3c5   : > { %2469 = vst [vmem:[#allocation1 + $0x3] ss:$4 sm:$0xff] %v6776_v24  ;;  %v2115_v24 = vsel %vm2114_vm7, %v2113_v51, %v2083_v61  ;;  %v2122_v19 = vrot.slane %v2120_v6, 4 }
 0x3c6   : > { %v2117_v10 = vrot.slane %v2115_v24, 2 }
 0x3c8   : > { %v2826_v2 = vld.sshfl [vmem:[#allocation1 + $0x20] sm:$0xff pattern:$0x73625140]  ;;  %v6106_v11 = vld.sshfl [vmem:[#allocation1 + $0x30] sm:$0xff pattern:$0x73625140] }
 0x3c9   : > { %6913 = vst [vmem:[#allocation49_spill] sm:$0xff] %v6106_v11  ;;  %v2827_v14 = vld.sshfl [vmem:[#allocation1 + $0x28] sm:$0xff pattern:$0x73625140]  ;;  %v2111_v11 = vsel %vm2109_vm5, %v2108_v15, %v2083_v61 }
 0x3ca   : > { %2833 = vst [vmem:[#allocation1 + $0x20] ss:$4 sm:$0xff] %v5891_v62  ;;  %v4400_v15 = vld [vmem:[#allocation3 + $0x110] sm:$0xff] }
 0x3cb   : > { %2834 = vst [vmem:[#allocation1 + $0x21] ss:$4 sm:$0xff] %v5878_v60  ;;  %2703 = vmatpush.bf16.msrb.mxu3 %v4400_v15  ;;  %v4421_v15 = vld [vmem:[#allocation3 + $0x1b8] sm:$0xff] }
 0x3cc   : > { %v6114_v33 = vld.sshfl [vmem:[#allocation1] sm:$0xff pattern:$0x73625140]  ;;  %v6116_v5 = vld.sshfl [vmem:[#allocation1 + $0x8] sm:$0xff pattern:$0x73625140]  ;;  %3530 = vmatpush.bf16.msra.mxu0 %v4421_v15 }
 0x3cd   : > { %v6119_v46 = vld.sshfl [vmem:[#allocation1 + $0x10] sm:$0xff pattern:$0x73625140]  ;;  %2835 = vst [vmem:[#allocation1 + $0x22] ss:$4 sm:$0xff] %v5897_v13  ;;  %v6916_v15 = vrot.slane %v6075_v50, 2 }
 0x3ce   : > { %2806 = vst [vmem:[#allocation1] ss:$4 sm:$0xff] %v2111_v11 }
 0x3cf   : > { %2809 = vst [vmem:[#allocation1 + $0x1] ss:$4 sm:$0xff] %v2117_v10 }
 0x3d0   : > { %2812 = vst [vmem:[#allocation1 + $0x2] ss:$4 sm:$0xff] %v2122_v19 }
 0x3d1   : > { %2814 = vst [vmem:[#allocation1 + $0x3] ss:$4 sm:$0xff] %v5762_v56 }
 0x3d2   : > { %2836 = vst [vmem:[#allocation1 + $0x23] ss:$4 sm:$0xff] %v5861_v0  ;;  %2672 = vmatmul.bf16.gmra.mxu3 %v6028_v9 }
 0x3d3   : > { %2780 = vmatmul.bf16.gmra.mxu0 %v6038_v45 }
 0x3d8   : > { %v2823_v63 = vld.sshfl [vmem:[#allocation1] sm:$0xff pattern:$0x73625140]  ;;  %v6126_v51 = vld.sshfl [vmem:[#allocation1 + $0x10] sm:$0xff pattern:$0x73625140] }
 0x3d9   : > { %3057 = vmatmul.bf16.vlgmr.msrb.gmra.mxu1 %v2823_v63  ;;  %v2824_v24 = vld.sshfl [vmem:[#allocation1 + $0x8] sm:$0xff pattern:$0x73625140]  ;;  %v6128_v61 = vld.sshfl [vmem:[#allocation1 + $0x20] sm:$0xff pattern:$0x73625140] }
 0x3da   : > { %3111 = vmatmul.bf16.vlgmr.msrb.gmra.mxu2 %v2824_v24  ;;  %2829 = vst [vmem:[#allocation1] ss:$4 sm:$0xff] %v5800_v54  ;;  %v6131_v10 = vld.sshfl [vmem:[#allocation1 + $0x30] sm:$0xff pattern:$0x73625140]  ;;  %v4399_v24 = vld [vmem:[#allocation3 + $0x108] sm:$0xff] }
 0x3db   : > { %2830 = vst [vmem:[#allocation1 + $0x1] ss:$4 sm:$0xff] %v5813_v57  ;;  %v6134_v56 = vld.sshfl [vmem:[#allocation1 + $0x28] sm:$0xff pattern:$0x73625140]  ;;  %2704 = vmatpush.bf16.msrb.mxu3 %v4399_v24 }
 0x3dc   : > { %2831 = vst [vmem:[#allocation1 + $0x2] ss:$4 sm:$0xff] %v5803_v35 }
 0x3dd   : > { %2832 = vst [vmem:[#allocation1 + $0x3] ss:$4 sm:$0xff] %v5822_v39 }
 0x3de   : > { %2847 = vst [vmem:[#allocation1 + $0x20] ss:$4 sm:$0xff] %v5969_v42 }
 0x3df   : > { %2848 = vst [vmem:[#allocation1 + $0x21] ss:$4 sm:$0xff] %v5979_v36 }
 0x3e0   : > { %2849 = vst [vmem:[#allocation1 + $0x22] ss:$4 sm:$0xff] %v5981_v3 }
 0x3e1   : > { %2850 = vst [vmem:[#allocation1 + $0x23] ss:$4 sm:$0xff] %v5913_v53 }
 0x3e2   : > { %2677 = vmatmul.bf16.gmra.mxu3 %v6000_v38 }
 0x3e3   : > { %2785 = vmatmul.bf16.gmra.mxu0 %v6008_v1 }
 0x3e4   : > { %v2837_v9 = vld.sshfl [vmem:[#allocation1] sm:$0xff pattern:$0x73625140]  ;;  %v6142_v45 = vld.sshfl [vmem:[#allocation1 + $0x10] sm:$0xff pattern:$0x73625140] }
 0x3e5   : > { %v2838_v6 = vld.sshfl [vmem:[#allocation1 + $0x8] sm:$0xff pattern:$0x73625140] }
 0x3e6   : > { %2843 = vst [vmem:[#allocation1] ss:$4 sm:$0xff] %v5829_v32 }
 0x3e7   : > { %2844 = vst [vmem:[#allocation1 + $0x1] ss:$4 sm:$0xff] %v5870_v29 }
 0x3e8   : > { %2845 = vst [vmem:[#allocation1 + $0x2] ss:$4 sm:$0xff] %v5883_v28  ;;  %v6149_v47 = vld.sshfl [vmem:[#allocation1 + $0x20] sm:$0xff pattern:$0x73625140] }
 0x3e9   : > { %3062 = vmatmul.bf16.gmra.mxu1 %v2826_v2  ;;  %2846 = vst [vmem:[#allocation1 + $0x3] ss:$4 sm:$0xff] %v5952_v49  ;;  %v6152_v11 = vld.sshfl [vmem:[#allocation1 + $0x30] sm:$0xff pattern:$0x73625140] }
 0x3ea   : > { %6914 = vst [vmem:[#allocation9_spill] sm:$0xff] %v6152_v11  ;;  %3116 = vmatmul.bf16.gmra.mxu2 %v2827_v14  ;;  %v6154_v23 = vld.sshfl [vmem:[#allocation1 + $0x28] sm:$0xff pattern:$0x73625140] }
 0x3eb   : > { %2861 = vst [vmem:[#allocation1 + $0x20] ss:$4 sm:$0xff] %v6025_v25  ;;  %v4420_v11 = vld [vmem:[#allocation3 + $0x1b0] sm:$0xff] }
 0x3ec   : > { %2862 = vst [vmem:[#allocation1 + $0x21] ss:$4 sm:$0xff] %v6041_v55  ;;  %3531 = vmatpush.bf16.msra.mxu0 %v4420_v11 }
 0x3ed   : > { %2863 = vst [vmem:[#allocation1 + $0x22] ss:$4 sm:$0xff] %v6046_v31 }
 0x3ee   : > { %2864 = vst [vmem:[#allocation1 + $0x23] ss:$4 sm:$0xff] %v5994_v30 }
 0x3f0   : > { %v6160_v38 = vld.sshfl [vmem:[#allocation1] sm:$0xff pattern:$0x73625140]  ;;  %v6162_v1 = vld.sshfl [vmem:[#allocation1 + $0x10] sm:$0xff pattern:$0x73625140] }
 0x3f1   : > { %v6164_v2 = vld.sshfl [vmem:[#allocation1 + $0x8] sm:$0xff pattern:$0x73625140] }
 0x3f2   : > { %2857 = vst [vmem:[#allocation1] ss:$4 sm:$0xff] %v5940_v59  ;;  %2682 = vmatmul.bf16.gmra.mxu3 %v6081_v48 }
 0x3f3   : > { %2858 = vst [vmem:[#allocation1 + $0x1] ss:$4 sm:$0xff] %v5930_v40  ;;  %2790 = vmatmul.bf16.gmra.mxu0 %v6085_v4 }
 0x3f4   : > { %2859 = vst [vmem:[#allocation1 + $0x2] ss:$4 sm:$0xff] %v5942_v8 }
 0x3f5   : > { %2860 = vst [vmem:[#allocation1 + $0x3] ss:$4 sm:$0xff] %v6031_v27  ;;  %v6170_v14 = vld.sshfl [vmem:[#allocation1 + $0x20] sm:$0xff pattern:$0x73625140] }
 0x3f6   : > { %v6172_v19 = vld.sshfl [vmem:[#allocation1 + $0x30] sm:$0xff pattern:$0x73625140]  ;;  %v6174_v63 = vld.sshfl [vmem:[#allocation1 + $0x28] sm:$0xff pattern:$0x73625140] }
 0x3f7   : > { %6915 = vst [vmem:[#allocation10_spill] sm:$0xff] %v6172_v19 }
 0x3f8   : > { %3295 = vst [vmem:[#allocation1 + $0x20] ss:$4 sm:$0xff] %v5803_v35 }
 0x3f9   : > { %3297 = vst [vmem:[#allocation1 + $0x21] ss:$4 sm:$0xff] %v5822_v39  ;;  %3067 = vmatmul.bf16.gmra.mxu1 %v2837_v9 }
 0x3fa   : > { %3299 = vst [vmem:[#allocation1 + $0x22] ss:$4 sm:$0xff] %v5891_v62  ;;  %3121 = vmatmul.bf16.gmra.mxu2 %v2838_v6 }
 0x3fb   : > { %3301 = vst [vmem:[#allocation1 + $0x23] ss:$4 sm:$0xff] %v5878_v60 }
 0x3fc   : > { %v6182_v19 = vld.sshfl [vmem:[#allocation1] sm:$0xff pattern:$0x73625140]  ;;  %v6184_v48 = vld.sshfl [vmem:[#allocation1 + $0x10] sm:$0xff pattern:$0x73625140] }
 0x3fd   : > { %v6186_v4 = vld.sshfl [vmem:[#allocation1 + $0x8] sm:$0xff pattern:$0x73625140] }
 0x3fe   : > { %2871 = vst [vmem:[#allocation1] ss:$4 sm:$0xff] %v6006_v41 }
 0x3ff   : > { %2872 = vst [vmem:[#allocation1 + $0x1] ss:$4 sm:$0xff] %v6017_v34 }
 0x400   : > { %2873 = vst [vmem:[#allocation1 + $0x2] ss:$4 sm:$0xff] %v6019_v43 }
 0x401   : > { %2874 = vst [vmem:[#allocation1 + $0x3] ss:$4 sm:$0xff] %v6070_v22 }
 0x402   : > { %v6192_v35 = vld.sshfl [vmem:[#allocation1 + $0x20] sm:$0xff pattern:$0x73625140]  ;;  %v6194_v39 = vld.sshfl [vmem:[#allocation1 + $0x28] sm:$0xff pattern:$0x73625140]  ;;  %2687 = vmatmul.bf16.gmra.mxu3 %v6054_v58 }
 0x403   : > { %v6196_v60 = vld.sshfl [vmem:[#allocation1 + $0x30] sm:$0xff pattern:$0x73625140]  ;;  %2795 = vmatmul.bf16.gmra.mxu0 %v6061_v16 }
 0x404   : > { %3312 = vst [vmem:[#allocation1 + $0x20] ss:$4 sm:$0xff] %v5883_v28  ;;  %v4419_v28 = vld [vmem:[#allocation3 + $0x1a8] sm:$0xff] }
 0x405   : > { %3313 = vst [vmem:[#allocation1 + $0x21] ss:$4 sm:$0xff] %v5952_v49  ;;  %v4398_v49 = vld [vmem:[#allocation3 + $0x100] sm:$0xff]  ;;  %3532 = vmatpush.bf16.msra.mxu0 %v4419_v28 }
 0x406   : > { %3314 = vst [vmem:[#allocation1 + $0x22] ss:$4 sm:$0xff] %v5969_v42  ;;  %v4418_v42 = vld [vmem:[#allocation3 + $0x1a0] sm:$0xff]  ;;  %2705 = vmatpush.bf16.msrb.mxu3 %v4398_v49  ;;  %v4428_v49 = vld [vmem:[#allocation3 + $0x1f0] sm:$0xff] }
 0x407   : > { %3315 = vst [vmem:[#allocation1 + $0x23] ss:$4 sm:$0xff] %v5979_v36 }
 0x408   : > { %v6204_v62 = vld.sshfl [vmem:[#allocation1] sm:$0xff pattern:$0x73625140]  ;;  %v6206_v9 = vld.sshfl [vmem:[#allocation1 + $0x8] sm:$0xff pattern:$0x73625140] }
 0x409   : > { %3072 = vmatmul.bf16.gmra.mxu1 %v6128_v61  ;;  %v6209_v6 = vld.sshfl [vmem:[#allocation1 + $0x10] sm:$0xff pattern:$0x73625140]  ;;  %3533 = vmatpush.bf16.msra.mxu0 %v4418_v42  ;;  %v4427_v42 = vld [vmem:[#allocation3 + $0x1e8] sm:$0xff] }
 0x40a   : > { %3126 = vmatmul.bf16.gmra.mxu2 %v6134_v56  ;;  %3287 = vst [vmem:[#allocation1] ss:$4 sm:$0xff] %v5789_v44  ;;  %v4417_v61 = vld [vmem:[#allocation3 + $0x198] sm:$0xff]  ;;  %v4416_v44 = vld [vmem:[#allocation3 + $0x190] sm:$0xff] }
 0x40b   : > { %3289 = vst [vmem:[#allocation1 + $0x1] ss:$4 sm:$0xff] %v5793_v20  ;;  %v4365_v56 = vld [vmem:[#allocation2 + $0x68] sm:$0x70] }
 0x40c   : > { %3291 = vst [vmem:[#allocation1 + $0x2] ss:$4 sm:$0xff] %v5800_v54 }
 0x40d   : > { %3293 = vst [vmem:[#allocation1 + $0x3] ss:$4 sm:$0xff] %v5813_v57  ;;  %3534 = vmatpush.bf16.msra.mxu0 %v4417_v61  ;;  %v4388_v61 = vld [vmem:[#allocation3 + $0xb0] sm:$0xff] }
 0x40e   : > { %v6216_v36 = vld.sshfl [vmem:[#allocation1 + $0x20] sm:$0xff pattern:$0x73625140]  ;;  %v6218_v58 = vld.sshfl [vmem:[#allocation1 + $0x28] sm:$0xff pattern:$0x73625140] }
 0x40f   : > { %v6220_v16 = vld.sshfl [vmem:[#allocation1 + $0x30] sm:$0xff pattern:$0x73625140] }
 0x410   : > { %3326 = vst [vmem:[#allocation1 + $0x20] ss:$4 sm:$0xff] %v5942_v8 }
 0x411   : > { %3327 = vst [vmem:[#allocation1 + $0x21] ss:$4 sm:$0xff] %v6031_v27  ;;  %3535 = vmatpush.bf16.msra.mxu0 %v4416_v44  ;;  %v4389_v27 = vld [vmem:[#allocation3 + $0xb8] sm:$0xff] }
 0x412   : > { %3328 = vst [vmem:[#allocation1 + $0x22] ss:$4 sm:$0xff] %v6025_v25  ;;  %2692 = vmatmul.bf16.gmra.mxu3 %v6114_v33  ;;  %v4415_v25 = vld [vmem:[#allocation3 + $0x188] sm:$0xff]  ;;  %v4429_v33 = vld [vmem:[#allocation3 + $0x1f8] sm:$0xff] }
 0x413   : > { %3329 = vst [vmem:[#allocation1 + $0x23] ss:$4 sm:$0xff] %v6041_v55  ;;  %2800 = vmatmul.bf16.gmra.mxu0 %v6119_v46  ;;  %v4437_v55 = vld [vmem:[#allocation3 + $0x238] sm:$0xff]  ;;  %3157 = vmatpush.bf16.msra.mxu3 %v4389_v27 }
 0x414   : > { %v3302_v20 = vld.sshfl [vmem:[#allocation1] sm:$0xff pattern:$0x73625140]  ;;  %v6226_v54 = vld.sshfl [vmem:[#allocation1 + $0x8] sm:$0xff pattern:$0x73625140]  ;;  %3638 = vmatpush.bf16.msra.mxu2 %v4437_v55  ;;  %3584 = vmatpush.bf16.msra.mxu1 %v4429_v33 }
 0x415   : > { %v6228_v57 = vld.sshfl [vmem:[#allocation1 + $0x10] sm:$0xff pattern:$0x73625140]  ;;  %v6238_v8 = vpop.f32.mrf.mxu3  ;;  %3536 = vmatpush.bf16.msra.mxu0 %v4415_v25  ;;  %v4426_v33 = vld [vmem:[#allocation3 + $0x1e0] sm:$0xff] }
 0x416   : > { %3308 = vst [vmem:[#allocation1] ss:$4 sm:$0xff] %v5897_v13 }
 0x417   : > { %3309 = vst [vmem:[#allocation1 + $0x1] ss:$4 sm:$0xff] %v5861_v0  ;;  %v4414_v0 = vld [vmem:[#allocation3 + $0x180] sm:$0xff]  ;;  %3158 = vmatpush.bf16.msra.mxu3 %v4388_v61 }
 0x418   : > { %3310 = vst [vmem:[#allocation1 + $0x2] ss:$4 sm:$0xff] %v5829_v32  ;;  %3585 = vmatpush.bf16.msra.mxu1 %v4428_v49 }
 0x419   : > { %3077 = vmatmul.bf16.gmra.mxu1 %v6160_v38  ;;  %3311 = vst [vmem:[#allocation1 + $0x3] ss:$4 sm:$0xff] %v5870_v29  ;;  %v4231_v29 = vld [vmem:[#allocation2 + $0x68] sm:$0xf]  ;;  %3537 = vmatpush.bf16.msra.mxu0 %v4414_v0  ;;  %v4434_v0 = vld [vmem:[#allocation3 + $0x220] sm:$0xff] }
 0x41a   : > { %3131 = vmatmul.bf16.gmra.mxu2 %v6164_v2  ;;  %v6240_v13 = vld.sshfl [vmem:[#allocation1 + $0x20] sm:$0xff pattern:$0x73625140]  ;;  %v6242_v46 = vld.sshfl [vmem:[#allocation1 + $0x28] sm:$0xff pattern:$0x73625140]  ;;  %v4232_v11 = vor.u32 %v4365_v56, %v4231_v29  ;;  %v6291_v29 = vpop.f32.mrf.mxu0 }
 0x41b   : > { %v6244_v32 = vld.sshfl [vmem:[#allocation1 + $0x30] sm:$0xff pattern:$0x73625140] }
 0x41c   : > { %3340 = vst [vmem:[#allocation1 + $0x20] ss:$4 sm:$0xff] %v6019_v43  ;;  %v3219_v43 = vshll.u32 %v4232_v11, 16  ;;  %3586 = vmatpush.bf16.msra.mxu1 %v4427_v42  ;;  %v4423_v42 = vld [vmem:[#allocation3 + $0x1c8] sm:$0xff] }
 0x41d   : > { %3341 = vst [vmem:[#allocation1 + $0x21] ss:$4 sm:$0xff] %v6070_v22  ;;  %v6257_v28 = vpop.f32.mrf.mxu3 }
 0x41e   : > { %3342 = vst [vmem:[#allocation1 + $0x22] ss:$4 sm:$0xff] %v6089_v18  ;;  %v3221_v22 = vrot.slane %v3219_v43, 1  ;;  %v3217_v18 = vshrl.u32 %v4232_v11, 16 }
 0x41f   : > { %3343 = vst [vmem:[#allocation1 + $0x23] ss:$4 sm:$0xff] %v6916_v15 }
 0x420   : > { %v6249_v38 = vld.sshfl [vmem:[#allocation1] sm:$0xff pattern:$0x73625140]  ;;  %v6251_v2 = vld.sshfl [vmem:[#allocation1 + $0x8] sm:$0xff pattern:$0x73625140]  ;;  %v3222_v44 = vor.u32 %v3221_v22, %v3217_v18  ;;  %3587 = vmatpush.bf16.msra.mxu1 %v4426_v33 }
 0x421   : > { %v6253_v24 = vld.sshfl [vmem:[#allocation1 + $0x10] sm:$0xff pattern:$0x73625140]  ;;  %v6917_v18 = vrot.slane %v6079_v7, 4  ;;  %v4387_v7 = vld [vmem:[#allocation3 + $0xa8] sm:$0xff] }
 0x422   : > { %3322 = vst [vmem:[#allocation1] ss:$4 sm:$0xff] %v5981_v3  ;;  %2706 = vmatmul.bf16.vlgmr.msrb.gmra.mxu3 %v5843_v37  ;;  %v4436_v3 = vld [vmem:[#allocation3 + $0x230] sm:$0xff]  ;;  %v4433_v22 = vld [vmem:[#allocation3 + $0x218] sm:$0xff]  ;;  %v6304_v61 = vpop.f32.mrf.mxu0 }
 0x423   : > { %3323 = vst [vmem:[#allocation1 + $0x1] ss:$4 sm:$0xff] %v5913_v53  ;;  %3538 = vmatmul.bf16.vlgmr.msra.gmra.mxu0 %v3302_v20  ;;  %v4435_v53 = vld [vmem:[#allocation3 + $0x228] sm:$0xff]  ;;  %3639 = vmatpush.bf16.msra.mxu2 %v4436_v3  ;;  %v4432_v3 = vld [vmem:[#allocation3 + $0x210] sm:$0xff] }
 0x424   : > { %3324 = vst [vmem:[#allocation1 + $0x2] ss:$4 sm:$0xff] %v5940_v59  ;;  %3159 = vmatpush.bf16.msra.mxu3 %v4387_v7  ;;  %v6927_v7 = vld [vmem:[#allocation47_spill] sm:$0xff] }
 0x425   : > { %3325 = vst [vmem:[#allocation1 + $0x3] ss:$4 sm:$0xff] %v5930_v40  ;;  %v6266_v50 = vpop.f32.mrf.mxu3 }
 0x427   : > { %3640 = vmatpush.bf16.msra.mxu2 %v4435_v53  ;;  %v4431_v53 = vld [vmem:[#allocation3 + $0x208] sm:$0xff] }
 0x429   : > { %3082 = vmatmul.bf16.gmra.mxu1 %v6149_v47  ;;  %v3224_v47 = vrot.slane %v3222_v44, 6  ;;  %v4422_v44 = vld [vmem:[#allocation3 + $0x1c0] sm:$0xff] }
 0x42a   : > { %3136 = vmatmul.bf16.gmra.mxu2 %v6154_v23  ;;  %v3223_v23 = vrot.slane %v4232_v11, 1 }
 0x42b   : > { %v3230_v25 = vsel %vm2112_vm6, %v4232_v11, %v3224_v47  ;;  %v3234_v55 = vsel %vm2118_vm8, %v4232_v11, %v3224_v47  ;;  %3641 = vmatpush.bf16.msra.mxu2 %v4434_v0 }
 0x42c   : > { %v6268_v40 = vld.sshfl [vmem:[#allocation1] sm:$0xff pattern:$0x73625140]  ;;  %v6270_v37 = vld.sshfl [vmem:[#allocation1 + $0x8] sm:$0xff pattern:$0x73625140] }
 0x42d   : > { %v6272_v59 = vld.sshfl [vmem:[#allocation1 + $0x10] sm:$0xff pattern:$0x73625140]  ;;  %v6278_v20 = vpop.f32.mrf.mxu3  ;;  %v3225_v27 = vrot.slane %v3223_v23, 4 }
 0x42e   : > { %3336 = vst [vmem:[#allocation1] ss:$4 sm:$0xff] %v6046_v31  ;;  %v3227_v31 = vsel %vm2106_vm4, %v4232_v11, %v3224_v47  ;;  %v4430_v47 = vld [vmem:[#allocation3 + $0x200] sm:$0xff] }
 0x42f   : > { %3337 = vst [vmem:[#allocation1 + $0x1] ss:$4 sm:$0xff] %v5994_v30  ;;  %v3231_v30 = vsel %vm2114_vm7, %v3230_v25, %v3225_v27  ;;  %v3229_v11 = vsel %vm2109_vm5, %v3227_v31, %v3225_v27  ;;  %3642 = vmatpush.bf16.msra.mxu2 %v4433_v22  ;;  %v6312_v25 = vpop.f32.mrf.mxu0  ;;  %v4385_v31 = vld [vmem:[#allocation3 + $0x98] sm:$0xff] }
 0x430   : > { %3338 = vst [vmem:[#allocation1 + $0x2] ss:$4 sm:$0xff] %v6006_v41  ;;  %v3235_v41 = vsel %vm2109_vm5, %v3225_v27, %v3234_v55  ;;  %v3233_v43 = vrot.slane %v3231_v30, 2  ;;  %v4386_v55 = vld [vmem:[#allocation3 + $0xa0] sm:$0xff] }
 0x431   : > { %3339 = vst [vmem:[#allocation1 + $0x3] ss:$4 sm:$0xff] %v6017_v34  ;;  %v3237_v49 = vrot.slane %v3235_v41, 4  ;;  %3160 = vmatpush.bf16.msra.mxu3 %v4386_v55  ;;  %v4382_v55 = vld [vmem:[#allocation3 + $0x80] sm:$0xff] }
 0x432   : > { %2711 = vmatmul.bf16.gmra.mxu3 %v5853_v17 }
 0x433   : > { %3543 = vmatmul.bf16.gmra.mxu0 %v6192_v35  ;;  %v4425_v35 = vld [vmem:[#allocation3 + $0x1d8] sm:$0xff]  ;;  %3643 = vmatpush.bf16.msra.mxu2 %v4432_v3 }
 0x434   : > { %3588 = vmatpush.bf16.msra.mxu1 %v4425_v35 }
 0x435   : > { %v6298_v17 = vpop.f32.mrf.mxu3  ;;  %3161 = vmatpush.bf16.msra.mxu3 %v4385_v31 }
 0x437   : > { %3644 = vmatpush.bf16.msra.mxu2 %v4431_v53  ;;  %v6316_v33 = vpop.f32.mrf.mxu0  ;;  %v3347_v53 = vld.sshfl [vmem:[#allocation1 + $0x20] sm:$0xff pattern:$0x73625140] }
 0x438   : > { %v6287_v34 = vld.sshfl [vmem:[#allocation1] sm:$0xff pattern:$0x73625140]  ;;  %v6289_v56 = vld.sshfl [vmem:[#allocation1 + $0x8] sm:$0xff pattern:$0x73625140] }
 0x439   : > { %3087 = vmatmul.bf16.gmra.mxu1 %v6182_v19  ;;  %v6294_v15 = vld.sshfl [vmem:[#allocation1 + $0x10] sm:$0xff pattern:$0x73625140]  ;;  %v4424_v19 = vld [vmem:[#allocation3 + $0x1d0] sm:$0xff] }
 0x43a   : > { %3141 = vmatmul.bf16.gmra.mxu2 %v6186_v4  ;;  %3350 = vst [vmem:[#allocation1] ss:$4 sm:$0xff] %v6917_v18  ;;  %3589 = vmatpush.bf16.msra.mxu1 %v4424_v19  ;;  %v6923_v18 = vld [vmem:[#allocation48_spill] sm:$0xff] }
 0x43b   : > { %3351 = vst [vmem:[#allocation1 + $0x1] ss:$4 sm:$0xff] %v3229_v11  ;;  %3645 = vmatpush.bf16.msra.mxu2 %v4430_v47 }
 0x43c   : > { %3353 = vst [vmem:[#allocation1 + $0x2] ss:$4 sm:$0xff] %v3233_v43 }
 0x43d   : > { %3355 = vst [vmem:[#allocation1 + $0x3] ss:$4 sm:$0xff] %v3237_v49  ;;  %v6302_v4 = vpop.f32.mrf.mxu3  ;;  %v4383_v49 = vld [vmem:[#allocation3 + $0x88] sm:$0xff] }
 0x43e   : > { %3590 = vmatpush.bf16.msra.mxu1 %v4423_v42 }
 0x442   : > { %2716 = vmatmul.bf16.gmra.mxu3 %v5967_v21  ;;  %3591 = vmatpush.bf16.msra.mxu1 %v4422_v44 }
 0x443   : > { %3548 = vmatmul.bf16.gmra.mxu0 %v6249_v38 }
 0x445   : > { %v6310_v23 = vpop.f32.mrf.mxu3 }
 0x449   : > { %3092 = vmatmul.bf16.gmra.mxu1 %v6170_v14 }
 0x44a   : > { %3146 = vmatmul.bf16.gmra.mxu2 %v6174_v63  ;;  %v6326_v63 = vpop.f32.mrf.mxu0 }
 0x44d   : > { %v6314_v27 = vpop.f32.mrf.mxu3 }
 0x452   : > { %2721 = vmatmul.bf16.gmra.mxu3 %v5927_v26 }
 0x453   : > { %3553 = vmatmul.bf16.gmra.mxu0 %v6216_v36 }
 0x455   : > { %v6322_v21 = vpop.f32.mrf.mxu3 }
 0x456   : > { %v6324_v14 = vpop.f32.mrf.mxu1 }
 0x459   : > { %3097 = vmatmul.bf16.gmra.mxu1 %v6204_v62 }
 0x45a   : > { %3151 = vmatmul.bf16.gmra.mxu2 %v6206_v9  ;;  %v6340_v9 = vpop.f32.mrf.mxu0 }
 0x45d   : > { %v6328_v38 = vpop.f32.mrf.mxu2  ;;  %v6330_v0 = vpop.f32.mrf.mxu3 }
 0x45e   : > { %6918 = vst [vmem:[#allocation11_spill] sm:$0xff] %v6330_v0  ;;  %v6335_v26 = vpop.f32.mrf.mxu1 }
 0x462   : > { %2726 = vmatmul.bf16.gmra.mxu3 %v6036_v12  ;;  %v6348_v12 = vpop.f32.mrf.mxu0 }
 0x463   : > { %3558 = vmatmul.bf16.gmra.mxu0 %v6268_v40 }
 0x465   : > { %v6338_v62 = vpop.f32.mrf.mxu3  ;;  %v6342_v36 = vpop.f32.mrf.mxu2 }
 0x466   : > { %6919 = vst [vmem:[#allocation12_spill] sm:$0xff] %v6338_v62  ;;  %v6346_v41 = vpop.f32.mrf.mxu1 }
 0x469   : > { %3592 = vmatmul.bf16.vlgmr.msra.gmra.mxu1 %v6226_v54 }
 0x46a   : > { %3646 = vmatmul.bf16.vlgmr.msra.gmra.mxu2 %v6228_v57  ;;  %v4384_v57 = vld [vmem:[#allocation3 + $0x90] sm:$0xff]  ;;  %v6360_v43 = vpop.f32.mrf.mxu0 }
 0x46b   : > { %3162 = vmatpush.bf16.msra.mxu3 %v4384_v57 }
 0x46d   : > { %v6344_v30 = vpop.f32.mrf.mxu3  ;;  %v6350_v40 = vpop.f32.mrf.mxu2 }
 0x46e   : > { %6920 = vst [vmem:[#allocation13_spill] sm:$0xff] %v6344_v30  ;;  %v6358_v11 = vpop.f32.mrf.mxu1 }
 0x46f   : > { %3163 = vmatpush.bf16.msra.mxu3 %v4383_v49 }
 0x472   : > { %2731 = vmatmul.bf16.gmra.mxu3 %v6002_v52 }
 0x473   : > { %3563 = vmatmul.bf16.gmra.mxu0 %v6240_v13  ;;  %3164 = vmatpush.bf16.msra.mxu3 %v4382_v55 }
 0x475   : > { %v6356_v54 = vpop.f32.mrf.mxu3  ;;  %v6362_v35 = vpop.f32.mrf.mxu2 }
 0x476   : > { %6921 = vst [vmem:[#allocation14_spill] sm:$0xff] %v6356_v54  ;;  %v6368_v52 = vpop.f32.mrf.mxu1  ;;  %v3348_v54 = vld.sshfl [vmem:[#allocation1 + $0x28] sm:$0xff pattern:$0x73625140] }
 0x479   : > { %3597 = vmatmul.bf16.gmra.mxu1 %v6194_v39  ;;  %v6370_v39 = vpop.f32.mrf.mxu0 }
 0x47a   : > { %3651 = vmatmul.bf16.gmra.mxu2 %v6196_v60 }
 0x47d   : > { %v6364_v22 = vpop.f32.mrf.mxu3  ;;  %v6373_v60 = vpop.f32.mrf.mxu2 }
 0x47e   : > { %6922 = vst [vmem:[#allocation15_spill] sm:$0xff] %v6364_v22  ;;  %v6378_v19 = vpop.f32.mrf.mxu1 }
 0x481   : > { %v6382_v42 = vpop.f32.mrf.mxu0 }
 0x482   : > { %2736 = vmatmul.bf16.gmra.mxu3 %v6923_v18  ;;  %6926 = vst [vmem:[#allocation18_spill] sm:$0xff] %v6382_v42  ;;  %v3356_v18 = vld.sshfl [vmem:[#allocation1] sm:$0xff pattern:$0x73625140] }
 0x483   : > { %3568 = vmatmul.bf16.gmra.mxu0 %v6287_v34 }
 0x485   : > { %v6376_v13 = vpop.f32.mrf.mxu3  ;;  %v6384_v34 = vpop.f32.mrf.mxu2 }
 0x486   : > { %6924 = vst [vmem:[#allocation16_spill] sm:$0xff] %v6376_v13 }
 0x489   : > { %3602 = vmatmul.bf16.gmra.mxu1 %v6251_v2  ;;  %v6393_v44 = vpop.f32.mrf.mxu0 }
 0x48a   : > { %3656 = vmatmul.bf16.gmra.mxu2 %v6253_v24  ;;  %v6391_v24 = vpop.f32.mrf.mxu1  ;;  %6929 = vst [vmem:[#allocation20_spill] sm:$0xff] %v6393_v44 }
 0x48d   : > { %v6380_v3 = vpop.f32.mrf.mxu3  ;;  %v6395_v47 = vpop.f32.mrf.mxu2 }
 0x48e   : > { %6925 = vst [vmem:[#allocation17_spill] sm:$0xff] %v6380_v3  ;;  %v6938_v3 = vld [vmem:[#allocation49_spill] sm:$0xff] }
 0x491   : > { %v6401_v49 = vpop.f32.mrf.mxu0 }
 0x492   : > { %2741 = vmatmul.bf16.gmra.mxu3 %v6927_v7  ;;  %v6399_v57 = vpop.f32.mrf.mxu1  ;;  %6931 = vst [vmem:[#allocation22_spill] sm:$0xff] %v6401_v49 }
 0x493   : > { %3573 = vmatmul.bf16.gmra.mxu0 %v3347_v53 }
 0x495   : > { %v6389_v2 = vpop.f32.mrf.mxu3 }
 0x496   : > { %6928 = vst [vmem:[#allocation19_spill] sm:$0xff] %v6389_v2 }
 0x499   : > { %3607 = vmatmul.bf16.gmra.mxu1 %v6218_v58  ;;  %v6404_v58 = vpop.f32.mrf.mxu2 }
 0x49a   : > { %3661 = vmatmul.bf16.gmra.mxu2 %v6220_v16  ;;  %v6410_v53 = vpop.f32.mrf.mxu1 }
 0x49b   : > { %6932 = vst [vmem:[#allocation23_spill] sm:$0xff] %v6410_v53 }
 0x49d   : > { %v6397_v31 = vpop.f32.mrf.mxu3 }
 0x49e   : > { %6930 = vst [vmem:[#allocation21_spill] sm:$0xff] %v6397_v31 }
 0x4a1   : > { %v6412_v7 = vpop.f32.mrf.mxu2 }
 0x4a2   : > { %2746 = vmatmul.bf16.gmra.mxu3 %v6116_v5  ;;  %6933 = vst [vmem:[#allocation24_spill] sm:$0xff] %v6412_v7  ;;  %v6418_v5 = vpop.f32.mrf.mxu1 }
 0x4a3   : > { %3578 = vmatmul.bf16.gmra.mxu0 %v3356_v18  ;;  %6934 = vst [vmem:[#allocation26_spill] sm:$0xff] %v6418_v5 }
 0x4a5   : > { %v6408_v16 = vpop.f32.mrf.mxu3 }
 0x4a9   : > { %3612 = vmatmul.bf16.gmra.mxu1 %v6270_v37  ;;  %v6423_v37 = vpop.f32.mrf.mxu2 }
 0x4aa   : > { %3666 = vmatmul.bf16.gmra.mxu2 %v6272_v59  ;;  %6935 = vst [vmem:[#allocation27_spill] sm:$0xff] %v6423_v37  ;;  %v6427_v31 = vpop.f32.mrf.mxu1 }
 0x4ab   : > { %6936 = vst [vmem:[#allocation25_spill] sm:$0xff] %v6427_v31 }
 0x4ad   : > { %v6414_v55 = vpop.f32.mrf.mxu3 }
 0x4b1   : > { %v6429_v2 = vpop.f32.mrf.mxu2 }
 0x4b2   : > { %3165 = vmatmul.bf16.vlgmr.msra.gmra.mxu3 %v6126_v51  ;;  %6937 = vst [vmem:[#allocation29_spill] sm:$0xff] %v6429_v2  ;;  %v6445_v2 = vpop.f32.mrf.mxu0 }
 0x4b3   : > { %6942 = vst [vmem:[#allocation34_spill] sm:$0xff] %v6445_v2 }
 0x4b5   : > { %v6421_v18 = vpop.f32.mrf.mxu3 }
 0x4b9   : > { %3617 = vmatmul.bf16.gmra.mxu1 %v6242_v46  ;;  %v6436_v46 = vpop.f32.mrf.mxu1 }
 0x4ba   : > { %3671 = vmatmul.bf16.gmra.mxu2 %v6244_v32  ;;  %6939 = vst [vmem:[#allocation30_spill] sm:$0xff] %v6436_v46  ;;  %v6438_v32 = vpop.f32.mrf.mxu2 }
 0x4bb   : > { %6940 = vst [vmem:[#allocation31_spill] sm:$0xff] %v6438_v32  ;;  %v6455_v32 = vpop.f32.mrf.mxu0 }
 0x4bc   : > { %6945 = vst [vmem:[#allocation37_spill] sm:$0xff] %v6455_v32 }
 0x4bd   : > { %v6425_v59 = vpop.f32.mrf.mxu3 }
 0x4c1   : > { %v6443_v22 = vpop.f32.mrf.mxu1 }
 0x4c2   : > { %3170 = vmatmul.bf16.gmra.mxu3 %v6938_v3  ;;  %6941 = vst [vmem:[#allocation33_spill] sm:$0xff] %v6443_v22  ;;  %v3349_v3 = vld.sshfl [vmem:[#allocation1 + $0x30] sm:$0xff pattern:$0x73625140] }
 0x4c3   : > { %v3358_v22 = vld.sshfl [vmem:[#allocation1 + $0x10] sm:$0xff pattern:$0x73625140] }
 0x4c5   : > { %v6434_v51 = vpop.f32.mrf.mxu3 }
 0x4c9   : > { %3622 = vmatmul.bf16.gmra.mxu1 %v6289_v56  ;;  %v6447_v56 = vpop.f32.mrf.mxu2  ;;  %v6451_v49 = vpop.f32.mrf.mxu1 }
 0x4ca   : > { %3676 = vmatmul.bf16.gmra.mxu2 %v6294_v15  ;;  %6943 = vst [vmem:[#allocation35_spill] sm:$0xff] %v6447_v56 }
 0x4cb   : > { %6944 = vst [vmem:[#allocation32_spill] sm:$0xff] %v6451_v49 }
 0x4cd   : > { %v6440_v13 = vpop.f32.mrf.mxu3 }
 0x4d1   : > { %v6457_v31 = vpop.f32.mrf.mxu2  ;;  %v6462_v56 = vpop.f32.mrf.mxu1 }
 0x4d2   : > { %3175 = vmatmul.bf16.gmra.mxu3 %v6142_v45  ;;  %6946 = vst [vmem:[#allocation38_spill] sm:$0xff] %v6457_v31  ;;  %v3357_v45 = vld.sshfl [vmem:[#allocation1 + $0x8] sm:$0xff pattern:$0x73625140] }
 0x4d3   : > { %6947 = vst [vmem:[#allocation40_spill] sm:$0xff] %v6462_v56 }
 0x4d5   : > { %v6449_v15 = vpop.f32.mrf.mxu3 }
 0x4d9   : > { %3627 = vmatmul.bf16.gmra.mxu1 %v3348_v54  ;;  %v6466_v2 = vpop.f32.mrf.mxu2  ;;  %v6470_v30 = vpop.f32.mrf.mxu1 }
 0x4da   : > { %3681 = vmatmul.bf16.gmra.mxu2 %v3349_v3  ;;  %v6464_v3 = vpop.f32.mrf.mxu0  ;;  %6949 = vst [vmem:[#allocation42_spill] sm:$0xff] %v6466_v2  ;;  %v6959_v2 = vld [vmem:[#allocation9_spill] sm:$0xff] }
 0x4db   : > { %6948 = vst [vmem:[#allocation41_spill] sm:$0xff] %v6464_v3 }
 0x4dc   : > { %6951 = vst [vmem:[#allocation44_spill] sm:$0xff] %v6470_v30 }
 0x4dd   : > { %v6453_v46 = vpop.f32.mrf.mxu3 }
 0x4e2   : > { %3180 = vmatmul.bf16.gmra.mxu3 %v6131_v10  ;;  %v6472_v32 = vpop.f32.mrf.mxu0  ;;  %v6475_v10 = vpop.f32.mrf.mxu2 }
 0x4e3   : > { %6952 = vst [vmem:[#allocation46_spill] sm:$0xff] %v6472_v32 }
 0x4e4   : > { %6953 = vst [vmem:[#allocation28_spill] sm:$0xff] %v6475_v10 }
 0x4e5   : > { %v6460_v54 = vpop.f32.mrf.mxu3 }
 0x4e9   : > { %3632 = vmatmul.bf16.gmra.mxu1 %v3357_v45 }
 0x4ea   : > { %3686 = vmatmul.bf16.gmra.mxu2 %v3358_v22  ;;  %v6479_v22 = vpop.f32.mrf.mxu1  ;;  %v6481_v31 = vpop.f32.mrf.mxu0 }
 0x4eb   : > { %6955 = vst [vmem:[#allocation43_spill] sm:$0xff] %v6479_v22  ;;  %v6483_v56 = vpop.f32.mrf.mxu2 }
 0x4ec   : > { %6956 = vst [vmem:[#allocation45_spill] sm:$0xff] %v6481_v31 }
 0x4ed   : > { %v6468_v49 = vpop.f32.mrf.mxu3  ;;  %6957 = vst [vmem:[#allocation48_spill] sm:$0xff] %v6483_v56 }
 0x4ee   : > { %6950 = vst [vmem:[#allocation39_spill] sm:$0xff] %v6468_v49 }
 0x4f2   : > { %3185 = vmatmul.bf16.gmra.mxu3 %v6162_v1  ;;  %v6488_v37 = vpop.f32.mrf.mxu1  ;;  %v6492_v32 = vpop.f32.mrf.mxu0 }
 0x4f3   : > { %6960 = vst [vmem:[#allocation49_spill] sm:$0xff] %v6488_v37  ;;  %v6494_v1 = vpop.f32.mrf.mxu2  ;;  %v6967_v37 = vld [vmem:[#allocation10_spill] sm:$0xff] }
 0x4f4   : > { %6962 = vst [vmem:[#allocation50_spill] sm:$0xff] %v6492_v32 }
 0x4f5   : > { %v6477_v45 = vpop.f32.mrf.mxu3  ;;  %6963 = vst [vmem:[#allocation51_spill] sm:$0xff] %v6494_v1 }
 0x4f6   : > { %6954 = vst [vmem:[#allocation36_spill] sm:$0xff] %v6477_v45 }
 0x4fa   : > { %v3593_v44 = vpop.f32.mrf.mxu1  ;;  %v3539_v22 = vpop.f32.mrf.mxu0 }
 0x4fb   : > { %v3647_v5 = vpop.f32.mrf.mxu2  ;;  %v3594_v49 = vadd.f32 %v3593_v44, %v3539_v22 }
 0x4fd   : > { %v6485_v3 = vpop.f32.mrf.mxu3 }
 0x4fe   : > { %6958 = vst [vmem:[#allocation47_spill] sm:$0xff] %v6485_v3 }
 0x502   : > { %3190 = vmatmul.bf16.gmra.mxu3 %v6959_v2  ;;  %v3595_v31 = vpop.f32.mrf.mxu1  ;;  %v3541_v3 = vpop.f32.mrf.mxu0 }
 0x503   : > { %v3649_v2 = vpop.f32.mrf.mxu2 }
 0x505   : > { %v6490_v30 = vpop.f32.mrf.mxu3 }
 0x506   : > { %6961 = vst [vmem:[#allocation9_spill] sm:$0xff] %v6490_v30 }
 0x50a   : > { %v3598_v32 = vpop.f32.mrf.mxu1  ;;  %v3544_v30 = vpop.f32.mrf.mxu0 }
 0x50b   : > { %v3652_v1 = vpop.f32.mrf.mxu2 }
 0x50d   : > { %v6496_v10 = vpop.f32.mrf.mxu3 }
 0x50e   : > { %6964 = vst [vmem:[#allocation52_spill] sm:$0xff] %v6496_v10  ;;  %v2708_v10 = vadd.f32 %v6408_v16, %v6238_v8  ;;  %v3648_v16 = vadd.f32 %v3647_v5, %v3594_v49 }
 0x512   : > { %3195 = vmatmul.bf16.gmra.mxu3 %v6184_v48  ;;  %v2762_v48 = vadd.f32 %v6291_v29, %v2708_v10  ;;  %v3600_v7 = vpop.f32.mrf.mxu1  ;;  %v3546_v42 = vpop.f32.mrf.mxu0 }
 0x513   : > { %v3654_v53 = vpop.f32.mrf.mxu2 }
 0x515   : > { %v6499_v56 = vpop.f32.mrf.mxu3 }
 0x516   : > { %6965 = vst [vmem:[#allocation53_spill] sm:$0xff] %v6499_v56 }
 0x51a   : > { %v3603_v0 = vpop.f32.mrf.mxu1 }
 0x51b   : > { %v3657_v44 = vpop.f32.mrf.mxu2 }
 0x51d   : > { %v6501_v45 = vpop.f32.mrf.mxu3 }
 0x51e   : > { %6966 = vst [vmem:[#allocation54_spill] sm:$0xff] %v6501_v45  ;;  %v3059_v45 = vadd.f32 %v6324_v14, %v2762_v48 }
 0x520   : > { %v3113_v8 = vadd.f32 %v6328_v38, %v3059_v45 }
 0x522   : > { %3200 = vmatmul.bf16.gmra.mxu3 %v6967_v37  ;;  %v2710_v37 = vadd.f32 %v6414_v55, %v6257_v28  ;;  %v3549_v28 = vpop.f32.mrf.mxu0  ;;  %v3596_v55 = vadd.f32 %v3595_v31, %v3541_v3 }
 0x523   : > { %v3659_v3 = vpop.f32.mrf.mxu2 }
 0x524   : > { %v3650_v48 = vadd.f32 %v3649_v2, %v3596_v55  ;;  %v3599_v2 = vadd.f32 %v3598_v32, %v3544_v30  ;;  %v3601_v32 = vadd.f32 %v3600_v7, %v3546_v42  ;;  %v3604_v42 = vadd.f32 %v3603_v0, %v3549_v28 }
 0x525   : > { %v6504_v62 = vpop.f32.mrf.mxu3 }
 0x526   : > { %6968 = vst [vmem:[#allocation10_spill] sm:$0xff] %v6504_v62  ;;  %v2764_v62 = vadd.f32 %v6304_v61, %v2710_v37  ;;  %v3605_v37 = vpop.f32.mrf.mxu1  ;;  %v3655_v55 = vadd.f32 %v3654_v53, %v3601_v32 }
 0x528   : > { %v3061_v14 = vadd.f32 %v6335_v26, %v2764_v62  ;;  %v2715_v26 = vadd.f32 %v6425_v59, %v6278_v20  ;;  %v2718_v20 = vadd.f32 %v6434_v51, %v6298_v17  ;;  %v2720_v17 = vadd.f32 %v6440_v13, %v6302_v4 }
 0x529   : > { %v2723_v4 = vadd.f32 %v6449_v15, %v6310_v23  ;;  %v2725_v23 = vadd.f32 %v6453_v46, %v6314_v27  ;;  %v2728_v27 = vadd.f32 %v6460_v54, %v6322_v21  ;;  %v6970_v21 = vld [vmem:[#allocation11_spill] sm:$0xff] }
 0x52a   : > { %v3115_v45 = vadd.f32 %v6342_v36, %v3061_v14  ;;  %v2769_v36 = vadd.f32 %v6316_v33, %v2715_v26  ;;  %v2772_v33 = vadd.f32 %v6326_v63, %v2718_v20  ;;  %v2774_v63 = vadd.f32 %v6340_v9, %v2720_v17  ;;  %v6971_v54 = vld [vmem:[#allocation39_spill] sm:$0xff]  ;;  %v6973_v17 = vld [vmem:[#allocation18_spill] sm:$0xff] }
 0x52b   : > { %v2777_v0 = vadd.f32 %v6348_v12, %v2723_v4 }
 0x52c   : > { %v3066_v59 = vadd.f32 %v6358_v11, %v2769_v36  ;;  %v3069_v51 = vadd.f32 %v6368_v52, %v2772_v33  ;;  %v3071_v13 = vadd.f32 %v6378_v19, %v2774_v63 }
 0x52d   : > { %v6509_v56 = vpop.f32.mrf.mxu3  ;;  %v3074_v19 = vadd.f32 %v6391_v24, %v2777_v0 }
 0x52e   : > { %6969 = vst [vmem:[#allocation55_spill] sm:$0xff] %v6509_v56  ;;  %v6521_v56 = vld [vmem:[%s6684_s4] ss:$0 sm:$0xff]  ;;  %v3608_v14 = vpop.f32.mrf.mxu1 }
 0x532   : > { %3205 = vmatmul.bf16.gmra.mxu3 %v6209_v6  ;;  %v2713_v6 = vadd.f32 %v6421_v18, %v6266_v50 }
 0x534   : > { %v2767_v49 = vadd.f32 %v6312_v25, %v2713_v6  ;;  %v3551_v25 = vpop.f32.mrf.mxu0 }
 0x535   : > { %v3166_v29 = vpop.f32.mrf.mxu3  ;;  %v3606_v28 = vadd.f32 %v3605_v37, %v3551_v25  ;;  %v2779_v37 = vadd.f32 %v6360_v43, %v2725_v23 }
 0x536   : > { %v3167_v10 = vadd.f32 %v3166_v29, %v3113_v8  ;;  %v3064_v18 = vadd.f32 %v6346_v41, %v2767_v49 }
 0x537   : > { %v3660_v36 = vadd.f32 %v3659_v3, %v3606_v28  ;;  %v3128_v3 = vadd.f32 %v6395_v47, %v3074_v19  ;;  %v3076_v24 = vadd.f32 %v6399_v57, %v2779_v37  ;;  %v6981_v19 = vld [vmem:[#allocation47_spill] sm:$0xff]  ;;  %v6982_v37 = vld [vmem:[#allocation25_spill] sm:$0xff] }
 0x538   : > { %v3692_v61 = vadd.f32 %v3648_v16, %v3167_v10  ;;  %v3118_v29 = vadd.f32 %v6350_v40, %v3064_v18  ;;  %v3653_v10 = vadd.f32 %v3652_v1, %v3599_v2  ;;  %v3120_v40 = vadd.f32 %v6362_v35, %v3066_v59  ;;  %v3662_v1 = vpop.f32.mrf.mxu2 }
 0x539   : > { %v3123_v35 = vadd.f32 %v6373_v60, %v3069_v51  ;;  %v3125_v18 = vadd.f32 %v6384_v34, %v3071_v13  ;;  %v3130_v33 = vadd.f32 %v6404_v58, %v3076_v24  ;;  %v6974_v58 = vld [vmem:[#allocation24_spill] sm:$0xff] }
 0x53a   : > { %v3714_v38 = vadd.f32 %v6521_v56, %v3692_v61  ;;  %v6978_v13 = vld [vmem:[#allocation20_spill] sm:$0xff] }
 0x53c   : > { %v3732_v5 = vmax.f32 %v3714_v38, 0.0  ;;  %v3554_v30 = vpop.f32.mrf.mxu0 }
 0x53d   : > { %v3168_v22 = vpop.f32.mrf.mxu3  ;;  %v3609_v25 = vadd.f32 %v3608_v14, %v3554_v30 }
 0x53e   : > { %3750 = vst [vmem:[%s6531_s6] sm:$0xff] %v3732_v5  ;;  %v3169_v50 = vadd.f32 %v3168_v22, %v3115_v45  ;;  %v3610_v22 = vpop.f32.mrf.mxu1 }
 0x540   : > { %v3693_v62 = vadd.f32 %v3650_v48, %v3169_v50  ;;  %v3658_v50 = vadd.f32 %v3657_v44, %v3604_v42 }
 0x542   : > { %v3715_v31 = vadd.f32 %v6521_v56, %v3693_v62  ;;  %v3664_v62 = vpop.f32.mrf.mxu2 }
 0x544   : > { %v3733_v8 = vmax.f32 %v3715_v31, 0.0  ;;  %v3556_v53 = vpop.f32.mrf.mxu0 }
 0x545   : > { %v3171_v16 = vpop.f32.mrf.mxu3  ;;  %v3611_v14 = vadd.f32 %v3610_v22, %v3556_v53  ;;  %v6976_v53 = vld [vmem:[#allocation36_spill] sm:$0xff] }
 0x546   : > { %3751 = vst [vmem:[%s6531_s6 + $0x8] sm:$0xff] %v3733_v8  ;;  %v3172_v6 = vadd.f32 %v3171_v16, %v3118_v29  ;;  %v3613_v2 = vpop.f32.mrf.mxu1 }
 0x547   : > { %v3665_v32 = vadd.f32 %v3664_v62, %v3611_v14  ;;  %v6977_v62 = vld [vmem:[#allocation26_spill] sm:$0xff]  ;;  %v6986_v14 = vld [vmem:[#allocation9_spill] sm:$0xff] }
 0x548   : > { %v3694_v41 = vadd.f32 %v3653_v10, %v3172_v6  ;;  %v3663_v10 = vadd.f32 %v3662_v1, %v3609_v25  ;;  %v6972_v1 = vld [vmem:[#allocation23_spill] sm:$0xff] }
 0x54a   : > { %v3716_v61 = vadd.f32 %v6521_v56, %v3694_v41  ;;  %v3667_v29 = vpop.f32.mrf.mxu2 }
 0x54c   : > { %v3734_v38 = vmax.f32 %v3716_v61, 0.0  ;;  %v3559_v15 = vpop.f32.mrf.mxu0  ;;  %v2782_v61 = vadd.f32 %v6370_v39, %v2728_v27  ;;  %v6984_v27 = vld [vmem:[#allocation29_spill] sm:$0xff] }
 0x54d   : > { %v3173_v49 = vpop.f32.mrf.mxu3  ;;  %v3614_v51 = vadd.f32 %v3613_v2, %v3559_v15 }
 0x54e   : > { %3752 = vst [vmem:[%s6531_s6 + $0x10] sm:$0xff] %v3734_v38  ;;  %v3174_v5 = vadd.f32 %v3173_v49, %v3120_v40  ;;  %v3615_v20 = vpop.f32.mrf.mxu1  ;;  %v2730_v40 = vadd.f32 %v6971_v54, %v6970_v21  ;;  %v3079_v49 = vadd.f32 %v6972_v1, %v2782_v61  ;;  %v6985_v61 = vld [vmem:[#allocation14_spill] sm:$0xff] }
 0x54f   : > { %v6988_v54 = vld [vmem:[#allocation34_spill] sm:$0xff] }
 0x550   : > { %v3695_v11 = vadd.f32 %v3655_v55, %v3174_v5  ;;  %v2784_v39 = vadd.f32 %v6973_v17, %v2730_v40  ;;  %v3133_v63 = vadd.f32 %v6974_v58, %v3079_v49  ;;  %v6989_v49 = vld [vmem:[#allocation31_spill] sm:$0xff] }
 0x552   : > { %v3717_v45 = vadd.f32 %v6521_v56, %v3695_v11  ;;  %v3669_v43 = vpop.f32.mrf.mxu2  ;;  %v3081_v4 = vadd.f32 %v6977_v62, %v2784_v39 }
 0x554   : > { %v3735_v7 = vmax.f32 %v3717_v45, 0.0  ;;  %v3561_v41 = vpop.f32.mrf.mxu0 }
 0x555   : > { %v3176_v48 = vpop.f32.mrf.mxu3  ;;  %v3616_v0 = vadd.f32 %v3615_v20, %v3561_v41 }
 0x556   : > { %3753 = vst [vmem:[%s6531_s6 + $0x18] sm:$0xff] %v3735_v7  ;;  %v3177_v26 = vadd.f32 %v3176_v48, %v3123_v35  ;;  %v3618_v5 = vpop.f32.mrf.mxu1  ;;  %v3668_v35 = vadd.f32 %v3667_v29, %v3614_v51  ;;  %v6975_v48 = vld [vmem:[#allocation12_spill] sm:$0xff] }
 0x557   : > { %v3670_v2 = vadd.f32 %v3669_v43, %v3616_v0  ;;  %v6991_v51 = vld [vmem:[#allocation52_spill] sm:$0xff] }
 0x558   : > { %v3696_v52 = vadd.f32 %v3658_v50, %v3177_v26  ;;  %v2733_v50 = vadd.f32 %v6976_v53, %v6975_v48  ;;  %v6993_v53 = vld [vmem:[#allocation37_spill] sm:$0xff] }
 0x55a   : > { %v3718_v9 = vadd.f32 %v6521_v56, %v3696_v52  ;;  %v3672_v42 = vpop.f32.mrf.mxu2 }
 0x55c   : > { %v3736_v60 = vmax.f32 %v3718_v9, 0.0  ;;  %v3564_v11 = vpop.f32.mrf.mxu0  ;;  %v2787_v9 = vadd.f32 %v6978_v13, %v2733_v50 }
 0x55d   : > { %v3178_v31 = vpop.f32.mrf.mxu3 }
 0x55e   : > { %3754 = vst [vmem:[%s6531_s6 + $0x20] sm:$0xff] %v3736_v60  ;;  %v3179_v44 = vadd.f32 %v3178_v31, %v3125_v18  ;;  %v6979_v60 = vld [vmem:[#allocation27_spill] sm:$0xff]  ;;  %v3620_v31 = vpop.f32.mrf.mxu1  ;;  %v3084_v25 = vadd.f32 %v6982_v37, %v2787_v9  ;;  %v6999_v37 = vld [vmem:[#allocation38_spill] sm:$0xff] }
 0x55f   : > { %v3135_v18 = vadd.f32 %v6979_v60, %v3081_v4  ;;  %v6994_v4 = vld [vmem:[#allocation35_spill] sm:$0xff]  ;;  %v6996_v60 = vld [vmem:[#allocation53_spill] sm:$0xff] }
 0x560   : > { %v3697_v8 = vadd.f32 %v3660_v36, %v3179_v44 }
 0x562   : > { %v3719_v12 = vadd.f32 %v6521_v56, %v3697_v8  ;;  %v3674_v15 = vpop.f32.mrf.mxu2  ;;  %v6980_v8 = vld [vmem:[#allocation13_spill] sm:$0xff] }
 0x563   : > { %v2735_v29 = vadd.f32 %v6981_v19, %v6980_v8  ;;  %v6998_v8 = vld [vmem:[#allocation41_spill] sm:$0xff] }
 0x564   : > { %v3737_v34 = vmax.f32 %v3719_v12, 0.0  ;;  %v3566_v44 = vpop.f32.mrf.mxu0 }
 0x565   : > { %v3181_v16 = vpop.f32.mrf.mxu3 }
 0x566   : > { %3755 = vst [vmem:[%s6531_s6 + $0x28] sm:$0xff] %v3737_v34  ;;  %v3182_v6 = vadd.f32 %v3181_v16, %v3128_v3  ;;  %v6983_v3 = vld [vmem:[#allocation22_spill] sm:$0xff] }
 0x567   : > { %v2789_v16 = vadd.f32 %v6983_v3, %v2735_v29 }
 0x568   : > { %v3698_v46 = vadd.f32 %v3663_v10, %v3182_v6  ;;  %v3619_v10 = vadd.f32 %v3618_v5, %v3564_v11  ;;  %v6990_v11 = vld [vmem:[#allocation15_spill] sm:$0xff] }
 0x56a   : > { %v3720_v59 = vadd.f32 %v6521_v56, %v3698_v46  ;;  %v3138_v46 = vadd.f32 %v6984_v27, %v3084_v25  ;;  %v3673_v20 = vadd.f32 %v3672_v42, %v3619_v10  ;;  %v7001_v27 = vld [vmem:[#allocation54_spill] sm:$0xff] }
 0x56c   : > { %v3738_v47 = vmax.f32 %v3720_v59, 0.0  ;;  %v3623_v59 = vpop.f32.mrf.mxu1  ;;  %v3569_v43 = vpop.f32.mrf.mxu0 }
 0x56d   : > { %v3183_v30 = vpop.f32.mrf.mxu3 }
 0x56e   : > { %3756 = vst [vmem:[%s6531_s6 + $0x30] sm:$0xff] %v3738_v47  ;;  %v3184_v38 = vadd.f32 %v3183_v30, %v3130_v33  ;;  %v2738_v47 = vadd.f32 %v6986_v14, %v6985_v61  ;;  %v6987_v30 = vld [vmem:[#allocation30_spill] sm:$0xff] }
 0x570   : > { %v3699_v57 = vadd.f32 %v3665_v32, %v3184_v38  ;;  %v3086_v32 = vadd.f32 %v6987_v30, %v2789_v16  ;;  %v3677_v38 = vpop.f32.mrf.mxu2  ;;  %v2792_v40 = vadd.f32 %v6988_v54, %v2738_v47 }
 0x572   : > { %v3721_v55 = vadd.f32 %v6521_v56, %v3699_v57  ;;  %v3621_v57 = vadd.f32 %v3620_v31, %v3566_v44 }
 0x574   : > { %v3739_v45 = vmax.f32 %v3721_v55, 0.0  ;;  %v3140_v55 = vadd.f32 %v6989_v49, %v3086_v32  ;;  %v3675_v17 = vadd.f32 %v3674_v15, %v3621_v57  ;;  %v7006_v49 = vld [vmem:[#allocation10_spill] sm:$0xff] }
 0x575   : > { %v3186_v7 = vpop.f32.mrf.mxu3 }
 0x576   : > { %3757 = vst [vmem:[%s6531_s6 + $0x38] sm:$0xff] %v3739_v45  ;;  %v3187_v22 = vadd.f32 %v3186_v7, %v3133_v63  ;;  %v2740_v45 = vadd.f32 %v6991_v51, %v6990_v11  ;;  %v6992_v63 = vld [vmem:[#allocation33_spill] sm:$0xff]  ;;  %v3625_v7 = vpop.f32.mrf.mxu1 }
 0x577   : > { %v3089_v42 = vadd.f32 %v6992_v63, %v2792_v40  ;;  %v7008_v51 = vld [vmem:[#allocation45_spill] sm:$0xff] }
 0x578   : > { %v3700_v26 = vadd.f32 %v3668_v35, %v3187_v22  ;;  %v3571_v35 = vpop.f32.mrf.mxu0  ;;  %v3679_v48 = vpop.f32.mrf.mxu2  ;;  %v2794_v50 = vadd.f32 %v6993_v53, %v2740_v45 }
 0x579   : > { %v3626_v29 = vadd.f32 %v3625_v7, %v3571_v35 }
 0x57a   : > { %v3722_v52 = vadd.f32 %v6521_v56, %v3700_v26  ;;  %v3624_v26 = vadd.f32 %v3623_v59, %v3569_v43  ;;  %v7003_v43 = vld [vmem:[#allocation46_spill] sm:$0xff] }
 0x57b   : > { %v3680_v16 = vadd.f32 %v3679_v48, %v3626_v29  ;;  %v7015_v29 = vld [vmem:[#allocation49_spill] sm:$0xff] }
 0x57c   : > { %v3740_v28 = vmax.f32 %v3722_v52, 0.0  ;;  %v3143_v52 = vadd.f32 %v6994_v4, %v3089_v42  ;;  %v3678_v9 = vadd.f32 %v3677_v38, %v3624_v26  ;;  %v7009_v42 = vld [vmem:[#allocation28_spill] sm:$0xff]  ;;  %v7011_v26 = vld [vmem:[#allocation55_spill] sm:$0xff] }
 0x57d   : > { %v3188_v36 = vpop.f32.mrf.mxu3 }
 0x57e   : > { %3758 = vst [vmem:[%s6531_s6 + $0x40] sm:$0xff] %v3740_v28  ;;  %v3189_v23 = vadd.f32 %v3188_v36, %v3135_v18  ;;  %v6995_v28 = vld [vmem:[#allocation16_spill] sm:$0xff] }
 0x57f   : > { %v2743_v18 = vadd.f32 %v6996_v60, %v6995_v28  ;;  %v6997_v36 = vld [vmem:[#allocation32_spill] sm:$0xff]  ;;  %v7013_v60 = vld [vmem:[#allocation50_spill] sm:$0xff] }
 0x580   : > { %v3701_v12 = vadd.f32 %v3670_v2, %v3189_v23  ;;  %v3091_v44 = vadd.f32 %v6997_v36, %v2794_v50  ;;  %v3628_v23 = vpop.f32.mrf.mxu1  ;;  %v3574_v15 = vpop.f32.mrf.mxu0  ;;  %v7010_v50 = vld [vmem:[#allocation21_spill] sm:$0xff] }
 0x581   : > { %v2797_v19 = vadd.f32 %v6998_v8, %v2743_v18  ;;  %v3629_v14 = vadd.f32 %v3628_v23, %v3574_v15 }
 0x582   : > { %v3723_v34 = vadd.f32 %v6521_v56, %v3701_v12  ;;  %v3145_v25 = vadd.f32 %v6999_v37, %v3091_v44  ;;  %v7014_v44 = vld [vmem:[#allocation48_spill] sm:$0xff] }
 0x584   : > { %v3741_v6 = vmax.f32 %v3723_v34, 0.0  ;;  %v3682_v34 = vpop.f32.mrf.mxu2 }
 0x585   : > { %v3191_v24 = vpop.f32.mrf.mxu3 }
 0x586   : > { %3759 = vst [vmem:[%s6531_s6 + $0x48] sm:$0xff] %v3741_v6  ;;  %v3192_v41 = vadd.f32 %v3191_v24, %v3138_v46  ;;  %v7000_v6 = vld [vmem:[#allocation17_spill] sm:$0xff] }
 0x587   : > { %v2745_v46 = vadd.f32 %v7001_v27, %v7000_v6  ;;  %v7016_v6 = vld [vmem:[#allocation51_spill] sm:$0xff] }
 0x588   : > { %v3702_v33 = vadd.f32 %v3673_v20, %v3192_v41  ;;  %v7002_v20 = vld [vmem:[#allocation40_spill] sm:$0xff]  ;;  %v3630_v32 = vpop.f32.mrf.mxu1  ;;  %v3576_v40 = vpop.f32.mrf.mxu0 }
 0x589   : > { %v3094_v41 = vadd.f32 %v7002_v20, %v2797_v19  ;;  %v2799_v61 = vadd.f32 %v7003_v43, %v2745_v46 }
 0x58a   : > { %v3724_v21 = vadd.f32 %v6521_v56, %v3702_v33  ;;  %v7004_v33 = vld [vmem:[#allocation42_spill] sm:$0xff] }
 0x58b   : > { %v3148_v30 = vadd.f32 %v7004_v33, %v3094_v41 }
 0x58c   : > { %v3742_v1 = vmax.f32 %v3724_v21, 0.0  ;;  %v3683_v21 = vadd.f32 %v3682_v34, %v3629_v14  ;;  %v3684_v57 = vpop.f32.mrf.mxu2 }
 0x58d   : > { %v3193_v5 = vpop.f32.mrf.mxu3 }
 0x58e   : > { %3760 = vst [vmem:[%s6531_s6 + $0x50] sm:$0xff] %v3742_v1  ;;  %v3194_v39 = vadd.f32 %v3193_v5, %v3140_v55  ;;  %v7005_v1 = vld [vmem:[#allocation19_spill] sm:$0xff] }
 0x58f   : > { %v2748_v55 = vadd.f32 %v7006_v49, %v7005_v1 }
 0x590   : > { %v3703_v58 = vadd.f32 %v3675_v17, %v3194_v39  ;;  %v7007_v17 = vld [vmem:[#allocation44_spill] sm:$0xff]  ;;  %v3633_v53 = vpop.f32.mrf.mxu1 }
 0x591   : > { %v3096_v39 = vadd.f32 %v7007_v17, %v2799_v61  ;;  %v2802_v45 = vadd.f32 %v7008_v51, %v2748_v55 }
 0x592   : > { %v3725_v22 = vadd.f32 %v6521_v56, %v3703_v58  ;;  %v3631_v58 = vadd.f32 %v3630_v32, %v3576_v40 }
 0x593   : > { %v3150_v7 = vadd.f32 %v7009_v42, %v3096_v39 }
 0x594   : > { %v3743_v62 = vmax.f32 %v3725_v22, 0.0  ;;  %v3685_v22 = vadd.f32 %v3684_v57, %v3631_v58 }
 0x595   : > { %v3196_v13 = vpop.f32.mrf.mxu3 }
 0x596   : > { %3761 = vst [vmem:[%s6531_s6 + $0x58] sm:$0xff] %v3743_v62  ;;  %v3197_v0 = vadd.f32 %v3196_v13, %v3143_v52  ;;  %v2750_v62 = vadd.f32 %v7011_v26, %v7010_v50  ;;  %v7012_v52 = vld [vmem:[#allocation43_spill] sm:$0xff] }
 0x597   : > { %v3099_v13 = vadd.f32 %v7012_v52, %v2802_v45 }
 0x598   : > { %v3704_v31 = vadd.f32 %v3678_v9, %v3197_v0  ;;  %v3579_v9 = vpop.f32.mrf.mxu0  ;;  %v3687_v0 = vpop.f32.mrf.mxu2  ;;  %v2804_v18 = vadd.f32 %v7013_v60, %v2750_v62 }
 0x599   : > { %v3635_v37 = vpop.f32.mrf.mxu1 }
 0x59a   : > { %v3726_v2 = vadd.f32 %v6521_v56, %v3704_v31  ;;  %v3634_v31 = vadd.f32 %v3633_v53, %v3579_v9 }
 0x59c   : > { %v3744_v12 = vmax.f32 %v3726_v2, 0.0  ;;  %v3153_v2 = vadd.f32 %v7014_v44, %v3099_v13  ;;  %v3688_v15 = vadd.f32 %v3687_v0, %v3634_v31 }
 0x59d   : > { %v3198_v3 = vpop.f32.mrf.mxu3 }
 0x59e   : > { %3762 = vst [vmem:[%s6531_s6 + $0x60] sm:$0xff] %v3744_v12  ;;  %v3199_v10 = vadd.f32 %v3198_v3, %v3145_v25  ;;  %v3101_v12 = vadd.f32 %v7015_v29, %v2804_v18 }
 0x5a0   : > { %v3705_v24 = vadd.f32 %v3680_v16, %v3199_v10  ;;  %v3581_v34 = vpop.f32.mrf.mxu0  ;;  %v3689_v3 = vpop.f32.mrf.mxu2  ;;  %v3155_v27 = vadd.f32 %v7016_v6, %v3101_v12 }
 0x5a1   : > { %v3636_v16 = vadd.f32 %v3635_v37, %v3581_v34 }
 0x5a2   : > { %v3727_v59 = vadd.f32 %v6521_v56, %v3705_v24 }
 0x5a3   : > { %v3690_v24 = vadd.f32 %v3689_v3, %v3636_v16 }
 0x5a4   : > { %v3745_v47 = vmax.f32 %v3727_v59, 0.0 }
 0x5a5   : > { %v3201_v38 = vpop.f32.mrf.mxu3 }
 0x5a6   : > { %3763 = vst [vmem:[%s6531_s6 + $0x68] sm:$0xff] %v3745_v47  ;;  %v3202_v54 = vadd.f32 %v3201_v38, %v3148_v30 }
 0x5a8   : > { %v3706_v5 = vadd.f32 %v3683_v21, %v3202_v54 }
 0x5aa   : > { %v3728_v11 = vadd.f32 %v6521_v56, %v3706_v5 }
 0x5ac   : > { %v3746_v63 = vmax.f32 %v3728_v11, 0.0 }
 0x5ad   : > { %v3203_v35 = vpop.f32.mrf.mxu3 }
 0x5ae   : > { %3764 = vst [vmem:[%s6531_s6 + $0x70] sm:$0xff] %v3746_v63  ;;  %v3204_v48 = vadd.f32 %v3203_v35, %v3150_v7 }
 0x5b0   : > { %v3707_v4 = vadd.f32 %v3685_v22, %v3204_v48 }
 0x5b2   : > { %v3729_v28 = vadd.f32 %v6521_v56, %v3707_v4 }
 0x5b4   : > { %v3747_v36 = vmax.f32 %v3729_v28, 0.0 }
 0x5b5   : > { %v3206_v23 = vpop.f32.mrf.mxu3 }
 0x5b6   : > { %3765 = vst [vmem:[%s6531_s6 + $0x78] sm:$0xff] %v3747_v36  ;;  %v3207_v8 = vadd.f32 %v3206_v23, %v3153_v2 }
 0x5b8   : > { %v3708_v19 = vadd.f32 %v3688_v15, %v3207_v8 }
 0x5ba   : > { %v3730_v25 = vadd.f32 %v6521_v56, %v3708_v19 }
 0x5bc   : > { %v3748_v10 = vmax.f32 %v3730_v25, 0.0 }
 0x5bd   : > { %v3208_v46 = vpop.f32.mrf.mxu3 }
 0x5be   : > { %3766 = vst [vmem:[%s6531_s6 + $0x80] sm:$0xff] %v3748_v10  ;;  %v3209_v20 = vadd.f32 %v3208_v46, %v3155_v27 }
 0x5c0   : > { %v3709_v41 = vadd.f32 %v3690_v24, %v3209_v20 }
 0x5c2   : > { %v3731_v59 = vadd.f32 %v6521_v56, %v3709_v41 }
 0x5c4   : > { %v3749_v43 = vmax.f32 %v3731_v59, 0.0 }
 0x5c6   : > { %3767 = vst [vmem:[%s6531_s6 + $0x88] sm:$0xff] %v3749_v43 }
 0x5c7   : > { %4554 = shalt.err (!%p4551_p8)
}
 0x5c8   : > { %s4600_s17 = smov 128  }
 0x5c9   : > { %4444 = dma.vmem_to_hbm [thread:$0]  (%p4669_p5), %s3782_s11, 2304, %s3784_s22, %s3769_s12, %s4600_s17, %s4600_s17, %s4599_s23  }
 0x5ca PF: > { %p4456_p9 = scmp.ge.s32.totalorder %s4593_s21, 2  ;;  %s3798_s6 = sand.u32 1, %s4581_s18  }
 0x5cb   : > { %s3799_s7 = scalar_lea.sflag [#allocation5], %s3798_s6 }
 0x5cc   : > { %p4451_p10 = pnand %p4456_p9, %p4673_p6 }
 0x5ce   : > { %p4452_p11 = pneg %p4451_p10 }
 0x5d0   : > { %4576 = dma.done.wait (%p4452_p11), %s3799_s7, 2304  }
 0x5d1   : > { %4578 = vsyncadd (%p4452_p11), %s3799_s7, 4294964992  ;;  %p16_p12 = scmp.ge.s32.totalorder %s4656_s24, 4   ;;  %s7017_s18 = smov %s4585_s19 }
 0x5d2   : > { %s7018_s19 = smov %s4589_s20  ;;  %s7019_s20 = smov %s4667_s27 }
 0x5d3   : > { %s7020_s21 = smov %s4656_s24  ;;  %18 = sbr.rel (!%p16_p12) target bundleno = 4 (0x4), region = 132 }
 0x5d8   :  { %3805 = vsyncpa [#allocation4], 1 }
 0x5d9   :  { %3807 = vsyncpa [#allocation4 + $0x1], 1 }
 0x5da   :  { %3808 = vsyncpa [#allocation5], 1 }
 0x5db   :  { %3810 = vsyncpa [#allocation5 + $0x1], 1 }

</bundles_post_ra>
